<compile_context>
chip_gen: v7x
topology: tpu7x:2x2x1
jax: 0.10.0
libtpu: 0.0.40
codegen_flags: <defaults>
</compile_context>

<pallas_src>
import functools
import math

import jax
import jax.numpy as jnp
from jax.experimental import pallas as pl
from jax.experimental.pallas import tpu as pltpu


def _encode_layer_kernel(q_ref, k_ref, v_ref, w_ref, p_ref, o_ref, *,
                         n_cav, n_head, eps):
    C, TS = q_ref.shape
    f32 = jnp.float32

    w = w_ref[...]                                        # (6C + n_head, C) f32
    p = p_ref[...]                                        # (C, 10 + n_head) f32
    wq, wk, wv = w[0:C], w[C:2 * C], w[2 * C:3 * C]       # wq pre-scaled 1/sqrt(d)
    wo, w1, w2 = w[3 * C:4 * C], w[4 * C:5 * C], w[5 * C:6 * C]
    hmap = w[6 * C:6 * C + n_head]                        # (n_head, C) head reduce
    bq, bk, bv, bo = p[:, 0:1], p[:, 1:2], p[:, 2:3], p[:, 3:4]
    b1, b2 = p[:, 4:5], p[:, 5:6]
    g1, be1, g2, be2 = p[:, 6:7], p[:, 7:8], p[:, 8:9], p[:, 9:10]
    hmap_t = p[:, 10:10 + n_head]                         # (C, n_head) head expand

    # ---- pass 1: per-CAV attention scores (only (n_head, TS) stay live) ----
    qp = jnp.dot(wq, q_ref[...].astype(f32), preferred_element_type=f32) + bq
    scores = []
    for m in range(n_cav):                                # n_cav tiny & static
        km = k_ref[m * C:(m + 1) * C, :].astype(f32)
        kp = jnp.dot(wk, km, preferred_element_type=f32) + bk
        scores.append(jnp.dot(hmap, qp * kp, preferred_element_type=f32))

    m_max = functools.reduce(jnp.maximum, scores)         # (n_head, TS)
    probs = [jnp.exp(s - m_max) for s in scores]
    denom = functools.reduce(jnp.add, probs)
    inv = pl.reciprocal(denom, approx=True)               # EUP slot
    inv = inv * (2.0 - denom * inv)                       # one Newton step
    probs = [pm * inv for pm in probs]                    # normalize in head space

    # ---- pass 2: weighted value accumulation (one V projection live) ----
    ctx = jnp.zeros((C, TS), f32)
    for m in range(n_cav):
        vm = v_ref[m * C:(m + 1) * C, :].astype(f32)
        vp = jnp.dot(wv, vm, preferred_element_type=f32) + bv
        ctx = ctx + jnp.dot(hmap_t, probs[m], preferred_element_type=f32) * vp

    attn_out = jnp.dot(wo, ctx, preferred_element_type=f32) + bo

    # ---- residual + LayerNorm1 (channel mean/var on the MXU) ----
    inv_c = jnp.full((1, C), 1.0 / C, f32)
    y = q_ref[...].astype(f32) + attn_out                 # re-read q: no live copy
    mu = jnp.dot(inv_c, y, preferred_element_type=f32)    # (1, TS)
    yc = y - mu
    var = jnp.dot(inv_c, yc * yc, preferred_element_type=f32)
    y1 = yc * jax.lax.rsqrt(var + eps) * g1 + be1

    # ---- feed-forward: linear2(relu(linear1(y1))) ----
    h1 = jnp.maximum(jnp.dot(w1, y1, preferred_element_type=f32) + b1, 0.0)
    f = jnp.dot(w2, h1, preferred_element_type=f32) + b2

    # ---- residual + LayerNorm2 ----
    y2 = y1 + f
    mu2 = jnp.dot(inv_c, y2, preferred_element_type=f32)
    yc2 = y2 - mu2
    var2 = jnp.dot(inv_c, yc2 * yc2, preferred_element_type=f32)
    out = yc2 * jax.lax.rsqrt(var2 + eps) * g2 + be2

    o_ref[...] = out.astype(o_ref.dtype)


def pack_params(params, *, channels, n_head):
    """Stack the tiny per-layer parameters into two VMEM-resident blocks.

    Do this once per layer (it is cheap, but amortize it outside hot loops).
    """
    C = channels
    d = C // n_head
    inv_sqrt_d = 1.0 / math.sqrt(d)
    head_of = jnp.arange(C, dtype=jnp.int32) // d
    hmap = (head_of[None, :] == jnp.arange(n_head, dtype=jnp.int32)[:, None]
            ).astype(jnp.float32)                          # (n_head, C)

    wstack = jnp.concatenate(
        [params['wq'] * inv_sqrt_d, params['wk'], params['wv'],
         params['wo'], params['w1'], params['w2'], hmap],
        axis=0).astype(jnp.float32)                        # (6C + n_head, C)
    pstack = jnp.concatenate(
        [jnp.stack([params['bq'] * inv_sqrt_d, params['bk'], params['bv'],
                    params['bo'], params['b1'], params['b2'],
                    params['g1'], params['beta1'],
                    params['g2'], params['beta2']], axis=1),
         hmap.T], axis=1).astype(jnp.float32)              # (C, 10 + n_head)
    return wstack, pstack


def _pick_tile_s(S, tile_s):
    S128 = pl.cdiv(S, 128) * 128
    if tile_s is None:
        # Target >= 4 grid steps when S allows (>= 2 per TensorCore on v7x) so
        # the BlockSpec pipeline can hide q/k/v/out DMA; cap at 512 lanes to
        # bound the (C, TS) live-vreg working set.
        tile_s = max(128, min(512, (S128 // 4) // 128 * 128))
    else:
        tile_s = max(128, (int(tile_s) // 128) * 128)
    return min(tile_s, S128)


def encode_layer_chan_major(q2d, k2d, v2d, wstack, pstack, *,
                            n_head=8, tile_s=None, eps=1e-5):
    """Channel-major core.  q2d: (C, S), k2d/v2d: (N*C, S) -> (C, S)."""
    C, S = q2d.shape
    NC = k2d.shape[0]
    n_cav = NC // C

    ts = _pick_tile_s(S, tile_s)
    S_pad = pl.cdiv(S, ts) * ts
    if S_pad != S:
        pad = ((0, 0), (0, S_pad - S))
        q2d = jnp.pad(q2d, pad)
        k2d = jnp.pad(k2d, pad)
        v2d = jnp.pad(v2d, pad)

    kernel = functools.partial(_encode_layer_kernel,
                               n_cav=n_cav, n_head=n_head, eps=eps)

    out2d = pl.pallas_call(
        kernel,
        out_shape=jax.ShapeDtypeStruct((C, S_pad), q2d.dtype),
        grid_spec=pltpu.PrefetchScalarGridSpec(
            num_scalar_prefetch=0,
            grid=(S_pad // ts,),
            in_specs=[
                pl.BlockSpec((C, ts), lambda s: (0, s)),
                pl.BlockSpec((NC, ts), lambda s: (0, s)),
                pl.BlockSpec((NC, ts), lambda s: (0, s)),
                pl.BlockSpec(wstack.shape, lambda s: (0, 0)),   # VMEM-resident
                pl.BlockSpec(pstack.shape, lambda s: (0, 0)),   # VMEM-resident
            ],
            out_specs=pl.BlockSpec((C, ts), lambda s: (0, s)),
        ),
        compiler_params=pltpu.CompilerParams(
            dimension_semantics=("parallel",)),
    )(q2d, k2d, v2d, wstack, pstack)
    return out2d[:, :S]


@functools.partial(jax.jit,
                   static_argnames=("n_head", "tile_s", "eps", "stream_dtype"))
def encode_layer(q, k, v, params, *, n_head=8, tile_s=None, eps=1e-5,
                 stream_dtype=None):
    """q: (1, S, C), k/v: (N, S, C) -> (1, S, C) in q.dtype.

    stream_dtype=jnp.bfloat16 halves streamed HBM bytes (v6e/v7x); in-kernel
    math stays f32.
    """
    _, S, C = q.shape
    N = k.shape[0]
    assert C % n_head == 0 and k.shape == v.shape

    sdt = q.dtype if stream_dtype is None else stream_dtype
    # Layout conversion to the kernel's channel-major layout, kept in this
    # thin jit-fused wrapper.  Graphs that already carry (C, S) / (N*C, S)
    # activations should call encode_layer_chan_major directly and skip it.
    # TODO(synk): keep channel-major layout upstream/downstream in the div2x
    # fusion graph so these transposes disappear entirely.
    q2d = q[0].T.astype(sdt)                                     # (C, S)
    k2d = jnp.transpose(k, (0, 2, 1)).reshape(N * C, S).astype(sdt)
    v2d = jnp.transpose(v, (0, 2, 1)).reshape(N * C, S).astype(sdt)

    wstack, pstack = pack_params(params, channels=C, n_head=n_head)
    out2d = encode_layer_chan_major(q2d, k2d, v2d, wstack, pstack,
                                    n_head=n_head, tile_s=tile_s, eps=eps)
    return out2d.T[None].astype(q.dtype)                         # (1, S, C)
    # TODO(synk): confidence_map / quality_map attention branch is not a
    # standard nn.MultiheadAttention feature and is not implemented.


# ---------------- pure-JAX reference (mirrors the PyTorch forward) ----------
def _layer_norm(x, g, b, eps=1e-5):
    mu = jnp.mean(x, axis=-1, keepdims=True)
    var = jnp.mean((x - mu) ** 2, axis=-1, keepdims=True)
    return (x - mu) * jax.lax.rsqrt(var + eps) * g + b


def _reference(q, k, v, P, *, n_head, eps=1e-5):
    _, S, C = q.shape
    N = k.shape[0]
    d = C // n_head
    hi = jax.lax.Precision.HIGHEST

    qp = jnp.einsum('qsc,oc->qso', q, P['wq'], precision=hi) + P['bq']
    kp = jnp.einsum('nsc,oc->nso', k, P['wk'], precision=hi) + P['bk']
    vp = jnp.einsum('nsc,oc->nso', v, P['wv'], precision=hi) + P['bv']

    qh = qp[0].reshape(S, n_head, d)
    kh = kp.reshape(N, S, n_head, d)
    vh = vp.reshape(N, S, n_head, d)

    score = jnp.einsum('shd,nshd->shn', qh, kh, precision=hi) / math.sqrt(d)
    attn = jax.nn.softmax(score, axis=-1)
    ctx = jnp.einsum('shn,nshd->shd', attn, vh, precision=hi).reshape(S, C)
    attn_out = jnp.einsum('sc,oc->so', ctx, P['wo'], precision=hi) + P['bo']

    y1 = _layer_norm(q[0] + attn_out, P['g1'], P['beta1'], eps)
    h1 = jax.nn.relu(jnp.einsum('sc,oc->so', y1, P['w1'], precision=hi) + P['b1'])
    f = jnp.einsum('sc,oc->so', h1, P['w2'], precision=hi) + P['b2']
    y2 = _layer_norm(y1 + f, P['g2'], P['beta2'], eps)
    return y2[None]


if __name__ == "__main__":
    jax.config.update("jax_default_matmul_precision", "highest")

    N, C, H, W = 2, 32, 32, 32          # channels divisible by n_head=8
    n_head = 8
    S = H * W                           # 1024 positions -> 4 grid steps @ 256 lanes

    keys = jax.random.split(jax.random.PRNGKey(0), 20)
    q = jax.random.normal(keys[0], (1, S, C), jnp.float32)
    k = jax.random.normal(keys[1], (N, S, C), jnp.float32)
    v = jax.random.normal(keys[2], (N, S, C), jnp.float32)

    sc = 1.0 / math.sqrt(C)
    P = {
        'wq': jax.random.normal(keys[3], (C, C), jnp.float32) * sc,
        'wk': jax.random.normal(keys[4], (C, C), jnp.float32) * sc,
        'wv': jax.random.normal(keys[5], (C, C), jnp.float32) * sc,
        'wo': jax.random.normal(keys[6], (C, C), jnp.float32) * sc,
        'w1': jax.random.normal(keys[7], (C, C), jnp.float32) * sc,
        'w2': jax.random.normal(keys[8], (C, C), jnp.float32) * sc,
        'bq': jax.random.normal(keys[9], (C,), jnp.float32) * 0.1,
        'bk': jax.random.normal(keys[10], (C,), jnp.float32) * 0.1,
        'bv': jax.random.normal(keys[11], (C,), jnp.float32) * 0.1,
        'bo': jax.random.normal(keys[12], (C,), jnp.float32) * 0.1,
        'b1': jax.random.normal(keys[13], (C,), jnp.float32) * 0.1,
        'b2': jax.random.normal(keys[14], (C,), jnp.float32) * 0.1,
        'g1': 1.0 + 0.1 * jax.random.normal(keys[15], (C,), jnp.float32),
        'beta1': 0.1 * jax.random.normal(keys[16], (C,), jnp.float32),
        'g2': 1.0 + 0.1 * jax.random.normal(keys[17], (C,), jnp.float32),
        'beta2': 0.1 * jax.random.normal(keys[18], (C,), jnp.float32),
    }

    # f32-streamed path (bit-accuracy check against the HIGHEST-precision ref).
    out = encode_layer(q, k, v, P, n_head=n_head)
    out = jax.block_until_ready(out)
    ref = _reference(q, k, v, P, n_head=n_head)
    assert out.shape == (1, S, C)
    assert jnp.allclose(out, ref, atol=2e-4, rtol=2e-4), \
        f"mismatch vs reference: max abs diff {jnp.max(jnp.abs(out - ref))}"

    # bf16-streamed path (v6e/v7x HBM-byte saver); loose numeric sanity check.
    out_bf16 = jax.block_until_ready(
        encode_layer(q, k, v, P, n_head=n_head, stream_dtype=jnp.bfloat16))
    assert bool(jnp.all(jnp.isfinite(out_bf16)))
    assert float(jnp.max(jnp.abs(out_bf16 - ref))) < 0.25, "bf16 streaming mismatch"

    print("KERNEL_OK")
</pallas_src>

<mosaic_0001>
module attributes {stable_mosaic.version = 11 : i64} {
  func.func @_encode_layer_kernel(%arg0: i32, %arg1: memref<32x256xf32, #tpu.memory_space<vmem>>, %arg2: memref<64x256xf32, #tpu.memory_space<vmem>>, %arg3: memref<64x256xf32, #tpu.memory_space<vmem>>, %arg4: memref<200x32xf32, #tpu.memory_space<vmem>>, %arg5: memref<32x18xf32, #tpu.memory_space<vmem>>, %arg6: memref<32x256xf32, #tpu.memory_space<vmem>>) attributes {dimension_semantics = [#tpu.dimension_semantics<parallel>], iteration_bounds = array<i64: 4>, scalar_prefetch = 0 : i64, scratch_operands = 0 : i64, tpu.core_type = #tpu.core_type<tc>, window_params = [{transform_indices = @transform_0, window_bounds = array<i64: 32, 256>}, {transform_indices = @transform_1, window_bounds = array<i64: 64, 256>}, {transform_indices = @transform_2, window_bounds = array<i64: 64, 256>}, {pipeline_mode = #tpu.pipeline_mode<synchronous>, transform_indices = @transform_3, window_bounds = array<i64: 200, 32>}, {pipeline_mode = #tpu.pipeline_mode<synchronous>, transform_indices = @transform_4, window_bounds = array<i64: 32, 18>}, {transform_indices = @transform_5, window_bounds = array<i64: 32, 256>}]} {
    %c0 = arith.constant 0 : index
    %c0_0 = arith.constant 0 : index
    %0 = vector.load %arg4[%c0, %c0_0] : memref<200x32xf32, #tpu.memory_space<vmem>>, vector<200x32xf32>
    %c0_1 = arith.constant 0 : index
    %c0_2 = arith.constant 0 : index
    %1 = vector.load %arg5[%c0_1, %c0_2] : memref<32x18xf32, #tpu.memory_space<vmem>>, vector<32x18xf32>
    %2 = vector.extract_strided_slice %0 {offsets = [0, 0], sizes = [32, 32], strides = [1, 1]} : vector<200x32xf32> to vector<32x32xf32>
    %3 = vector.extract_strided_slice %0 {offsets = [32, 0], sizes = [32, 32], strides = [1, 1]} : vector<200x32xf32> to vector<32x32xf32>
    %4 = vector.extract_strided_slice %0 {offsets = [64, 0], sizes = [32, 32], strides = [1, 1]} : vector<200x32xf32> to vector<32x32xf32>
    %5 = vector.extract_strided_slice %0 {offsets = [96, 0], sizes = [32, 32], strides = [1, 1]} : vector<200x32xf32> to vector<32x32xf32>
    %6 = vector.extract_strided_slice %0 {offsets = [128, 0], sizes = [32, 32], strides = [1, 1]} : vector<200x32xf32> to vector<32x32xf32>
    %7 = vector.extract_strided_slice %0 {offsets = [160, 0], sizes = [32, 32], strides = [1, 1]} : vector<200x32xf32> to vector<32x32xf32>
    %8 = vector.extract_strided_slice %0 {offsets = [192, 0], sizes = [8, 32], strides = [1, 1]} : vector<200x32xf32> to vector<8x32xf32>
    %9 = vector.extract_strided_slice %1 {offsets = [0, 0], sizes = [32, 1], strides = [1, 1]} : vector<32x18xf32> to vector<32x1xf32>
    %10 = vector.extract_strided_slice %1 {offsets = [0, 1], sizes = [32, 1], strides = [1, 1]} : vector<32x18xf32> to vector<32x1xf32>
    %11 = vector.extract_strided_slice %1 {offsets = [0, 2], sizes = [32, 1], strides = [1, 1]} : vector<32x18xf32> to vector<32x1xf32>
    %12 = vector.extract_strided_slice %1 {offsets = [0, 3], sizes = [32, 1], strides = [1, 1]} : vector<32x18xf32> to vector<32x1xf32>
    %13 = vector.extract_strided_slice %1 {offsets = [0, 4], sizes = [32, 1], strides = [1, 1]} : vector<32x18xf32> to vector<32x1xf32>
    %14 = vector.extract_strided_slice %1 {offsets = [0, 5], sizes = [32, 1], strides = [1, 1]} : vector<32x18xf32> to vector<32x1xf32>
    %15 = vector.extract_strided_slice %1 {offsets = [0, 6], sizes = [32, 1], strides = [1, 1]} : vector<32x18xf32> to vector<32x1xf32>
    %16 = vector.extract_strided_slice %1 {offsets = [0, 7], sizes = [32, 1], strides = [1, 1]} : vector<32x18xf32> to vector<32x1xf32>
    %17 = vector.extract_strided_slice %1 {offsets = [0, 8], sizes = [32, 1], strides = [1, 1]} : vector<32x18xf32> to vector<32x1xf32>
    %18 = vector.extract_strided_slice %1 {offsets = [0, 9], sizes = [32, 1], strides = [1, 1]} : vector<32x18xf32> to vector<32x1xf32>
    %19 = vector.extract_strided_slice %1 {offsets = [0, 10], sizes = [32, 8], strides = [1, 1]} : vector<32x18xf32> to vector<32x8xf32>
    %c0_3 = arith.constant 0 : index
    %c0_4 = arith.constant 0 : index
    %20 = vector.load %arg1[%c0_3, %c0_4] : memref<32x256xf32, #tpu.memory_space<vmem>>, vector<32x256xf32>
    %cst = arith.constant dense<0.000000e+00> : vector<32x256xf32>
    %21 = tpu.matmul %2, %20, %cst {dimension_numbers = #tpu.dot_dimension_numbers<[1], [0], [0], [1], [0, 0, 1, 1], [], []>, precision = #tpu.contract_precision<fp32>} : vector<32x32xf32>, vector<32x256xf32>, vector<32x256xf32> -> vector<32x256xf32>
    %22 = vector.broadcast %9 : vector<32x1xf32> to vector<32x256xf32>
    %23 = arith.addf %21, %22 : vector<32x256xf32>
    %c0_5 = arith.constant 0 : index
    %c0_6 = arith.constant 0 : index
    %24 = vector.load %arg2[%c0_5, %c0_6] : memref<64x256xf32, #tpu.memory_space<vmem>>, vector<32x256xf32>
    %cst_7 = arith.constant dense<0.000000e+00> : vector<32x256xf32>
    %25 = tpu.matmul %3, %24, %cst_7 {dimension_numbers = #tpu.dot_dimension_numbers<[1], [0], [0], [1], [0, 0, 1, 1], [], []>, precision = #tpu.contract_precision<fp32>} : vector<32x32xf32>, vector<32x256xf32>, vector<32x256xf32> -> vector<32x256xf32>
    %26 = vector.broadcast %10 : vector<32x1xf32> to vector<32x256xf32>
    %27 = arith.addf %25, %26 : vector<32x256xf32>
    %28 = arith.mulf %23, %27 : vector<32x256xf32>
    %cst_8 = arith.constant dense<0.000000e+00> : vector<8x256xf32>
    %29 = tpu.matmul %8, %28, %cst_8 {dimension_numbers = #tpu.dot_dimension_numbers<[1], [0], [0], [1], [0, 0, 1, 1], [], []>, precision = #tpu.contract_precision<fp32>} : vector<8x32xf32>, vector<32x256xf32>, vector<8x256xf32> -> vector<8x256xf32>
    %c32 = arith.constant 32 : index
    %c0_9 = arith.constant 0 : index
    %30 = vector.load %arg2[%c32, %c0_9] : memref<64x256xf32, #tpu.memory_space<vmem>>, vector<32x256xf32>
    %cst_10 = arith.constant dense<0.000000e+00> : vector<32x256xf32>
    %31 = tpu.matmul %3, %30, %cst_10 {dimension_numbers = #tpu.dot_dimension_numbers<[1], [0], [0], [1], [0, 0, 1, 1], [], []>, precision = #tpu.contract_precision<fp32>} : vector<32x32xf32>, vector<32x256xf32>, vector<32x256xf32> -> vector<32x256xf32>
    %32 = vector.broadcast %10 : vector<32x1xf32> to vector<32x256xf32>
    %33 = arith.addf %31, %32 : vector<32x256xf32>
    %34 = arith.mulf %23, %33 : vector<32x256xf32>
    %cst_11 = arith.constant dense<0.000000e+00> : vector<8x256xf32>
    %35 = tpu.matmul %8, %34, %cst_11 {dimension_numbers = #tpu.dot_dimension_numbers<[1], [0], [0], [1], [0, 0, 1, 1], [], []>, precision = #tpu.contract_precision<fp32>} : vector<8x32xf32>, vector<32x256xf32>, vector<8x256xf32> -> vector<8x256xf32>
    %36 = arith.maximumf %29, %35 : vector<8x256xf32>
    %37 = arith.subf %29, %36 : vector<8x256xf32>
    %38 = math.exp %37 : vector<8x256xf32>
    %39 = arith.subf %35, %36 : vector<8x256xf32>
    %40 = math.exp %39 : vector<8x256xf32>
    %41 = arith.addf %38, %40 : vector<8x256xf32>
    %42 = tpu.reciprocal %41 {approx = true} : vector<8x256xf32> -> vector<8x256xf32>
    %43 = arith.mulf %41, %42 : vector<8x256xf32>
    %cst_12 = arith.constant 2.000000e+00 : f32
    %44 = vector.broadcast %cst_12 : f32 to vector<8x256xf32>
    %45 = arith.subf %44, %43 : vector<8x256xf32>
    %46 = arith.mulf %42, %45 : vector<8x256xf32>
    %47 = arith.mulf %38, %46 : vector<8x256xf32>
    %48 = arith.mulf %40, %46 : vector<8x256xf32>
    %cst_13 = arith.constant 0.000000e+00 : f32
    %49 = vector.broadcast %cst_13 : f32 to vector<32x256xf32>
    %c0_14 = arith.constant 0 : index
    %c0_15 = arith.constant 0 : index
    %50 = vector.load %arg3[%c0_14, %c0_15] : memref<64x256xf32, #tpu.memory_space<vmem>>, vector<32x256xf32>
    %cst_16 = arith.constant dense<0.000000e+00> : vector<32x256xf32>
    %51 = tpu.matmul %4, %50, %cst_16 {dimension_numbers = #tpu.dot_dimension_numbers<[1], [0], [0], [1], [0, 0, 1, 1], [], []>, precision = #tpu.contract_precision<fp32>} : vector<32x32xf32>, vector<32x256xf32>, vector<32x256xf32> -> vector<32x256xf32>
    %52 = vector.broadcast %11 : vector<32x1xf32> to vector<32x256xf32>
    %53 = arith.addf %51, %52 : vector<32x256xf32>
    %cst_17 = arith.constant dense<0.000000e+00> : vector<32x256xf32>
    %54 = tpu.matmul %19, %47, %cst_17 {dimension_numbers = #tpu.dot_dimension_numbers<[1], [0], [0], [1], [0, 0, 1, 1], [], []>, precision = #tpu.contract_precision<fp32>} : vector<32x8xf32>, vector<8x256xf32>, vector<32x256xf32> -> vector<32x256xf32>
    %55 = arith.mulf %54, %53 : vector<32x256xf32>
    %56 = arith.addf %49, %55 : vector<32x256xf32>
    %c32_18 = arith.constant 32 : index
    %c0_19 = arith.constant 0 : index
    %57 = vector.load %arg3[%c32_18, %c0_19] : memref<64x256xf32, #tpu.memory_space<vmem>>, vector<32x256xf32>
    %cst_20 = arith.constant dense<0.000000e+00> : vector<32x256xf32>
    %58 = tpu.matmul %4, %57, %cst_20 {dimension_numbers = #tpu.dot_dimension_numbers<[1], [0], [0], [1], [0, 0, 1, 1], [], []>, precision = #tpu.contract_precision<fp32>} : vector<32x32xf32>, vector<32x256xf32>, vector<32x256xf32> -> vector<32x256xf32>
    %59 = vector.broadcast %11 : vector<32x1xf32> to vector<32x256xf32>
    %60 = arith.addf %58, %59 : vector<32x256xf32>
    %cst_21 = arith.constant dense<0.000000e+00> : vector<32x256xf32>
    %61 = tpu.matmul %19, %48, %cst_21 {dimension_numbers = #tpu.dot_dimension_numbers<[1], [0], [0], [1], [0, 0, 1, 1], [], []>, precision = #tpu.contract_precision<fp32>} : vector<32x8xf32>, vector<8x256xf32>, vector<32x256xf32> -> vector<32x256xf32>
    %62 = arith.mulf %61, %60 : vector<32x256xf32>
    %63 = arith.addf %56, %62 : vector<32x256xf32>
    %cst_22 = arith.constant dense<0.000000e+00> : vector<32x256xf32>
    %64 = tpu.matmul %5, %63, %cst_22 {dimension_numbers = #tpu.dot_dimension_numbers<[1], [0], [0], [1], [0, 0, 1, 1], [], []>, precision = #tpu.contract_precision<fp32>} : vector<32x32xf32>, vector<32x256xf32>, vector<32x256xf32> -> vector<32x256xf32>
    %65 = vector.broadcast %12 : vector<32x1xf32> to vector<32x256xf32>
    %66 = arith.addf %64, %65 : vector<32x256xf32>
    %cst_23 = arith.constant 3.125000e-02 : f32
    %67 = vector.broadcast %cst_23 : f32 to vector<1x32xf32>
    %c0_24 = arith.constant 0 : index
    %c0_25 = arith.constant 0 : index
    %68 = vector.load %arg1[%c0_24, %c0_25] : memref<32x256xf32, #tpu.memory_space<vmem>>, vector<32x256xf32>
    %69 = arith.addf %68, %66 : vector<32x256xf32>
    %cst_26 = arith.constant dense<0.000000e+00> : vector<1x256xf32>
    %70 = tpu.matmul %67, %69, %cst_26 {dimension_numbers = #tpu.dot_dimension_numbers<[1], [0], [0], [1], [0, 0, 1, 1], [], []>, precision = #tpu.contract_precision<fp32>} : vector<1x32xf32>, vector<32x256xf32>, vector<1x256xf32> -> vector<1x256xf32>
    %71 = vector.broadcast %70 : vector<1x256xf32> to vector<32x256xf32>
    %72 = arith.subf %69, %71 : vector<32x256xf32>
    %73 = arith.mulf %72, %72 : vector<32x256xf32>
    %cst_27 = arith.constant dense<0.000000e+00> : vector<1x256xf32>
    %74 = tpu.matmul %67, %73, %cst_27 {dimension_numbers = #tpu.dot_dimension_numbers<[1], [0], [0], [1], [0, 0, 1, 1], [], []>, precision = #tpu.contract_precision<fp32>} : vector<1x32xf32>, vector<32x256xf32>, vector<1x256xf32> -> vector<1x256xf32>
    %cst_28 = arith.constant 9.99999974E-6 : f32
    %75 = vector.broadcast %cst_28 : f32 to vector<1x256xf32>
    %76 = arith.addf %74, %75 : vector<1x256xf32>
    %77 = math.rsqrt %76 : vector<1x256xf32>
    %78 = vector.broadcast %77 : vector<1x256xf32> to vector<32x256xf32>
    %79 = arith.mulf %72, %78 : vector<32x256xf32>
    %80 = vector.broadcast %15 : vector<32x1xf32> to vector<32x256xf32>
    %81 = arith.mulf %79, %80 : vector<32x256xf32>
    %82 = vector.broadcast %16 : vector<32x1xf32> to vector<32x256xf32>
    %83 = arith.addf %81, %82 : vector<32x256xf32>
    %cst_29 = arith.constant dense<0.000000e+00> : vector<32x256xf32>
    %84 = tpu.matmul %6, %83, %cst_29 {dimension_numbers = #tpu.dot_dimension_numbers<[1], [0], [0], [1], [0, 0, 1, 1], [], []>, precision = #tpu.contract_precision<fp32>} : vector<32x32xf32>, vector<32x256xf32>, vector<32x256xf32> -> vector<32x256xf32>
    %85 = vector.broadcast %13 : vector<32x1xf32> to vector<32x256xf32>
    %86 = arith.addf %84, %85 : vector<32x256xf32>
    %cst_30 = arith.constant 0.000000e+00 : f32
    %87 = vector.broadcast %cst_30 : f32 to vector<32x256xf32>
    %88 = arith.maximumf %86, %87 : vector<32x256xf32>
    %cst_31 = arith.constant dense<0.000000e+00> : vector<32x256xf32>
    %89 = tpu.matmul %7, %88, %cst_31 {dimension_numbers = #tpu.dot_dimension_numbers<[1], [0], [0], [1], [0, 0, 1, 1], [], []>, precision = #tpu.contract_precision<fp32>} : vector<32x32xf32>, vector<32x256xf32>, vector<32x256xf32> -> vector<32x256xf32>
    %90 = vector.broadcast %14 : vector<32x1xf32> to vector<32x256xf32>
    %91 = arith.addf %89, %90 : vector<32x256xf32>
    %92 = arith.addf %83, %91 : vector<32x256xf32>
    %cst_32 = arith.constant dense<0.000000e+00> : vector<1x256xf32>
    %93 = tpu.matmul %67, %92, %cst_32 {dimension_numbers = #tpu.dot_dimension_numbers<[1], [0], [0], [1], [0, 0, 1, 1], [], []>, precision = #tpu.contract_precision<fp32>} : vector<1x32xf32>, vector<32x256xf32>, vector<1x256xf32> -> vector<1x256xf32>
    %94 = vector.broadcast %93 : vector<1x256xf32> to vector<32x256xf32>
    %95 = arith.subf %92, %94 : vector<32x256xf32>
    %96 = arith.mulf %95, %95 : vector<32x256xf32>
    %cst_33 = arith.constant dense<0.000000e+00> : vector<1x256xf32>
    %97 = tpu.matmul %67, %96, %cst_33 {dimension_numbers = #tpu.dot_dimension_numbers<[1], [0], [0], [1], [0, 0, 1, 1], [], []>, precision = #tpu.contract_precision<fp32>} : vector<1x32xf32>, vector<32x256xf32>, vector<1x256xf32> -> vector<1x256xf32>
    %cst_34 = arith.constant 9.99999974E-6 : f32
    %98 = vector.broadcast %cst_34 : f32 to vector<1x256xf32>
    %99 = arith.addf %97, %98 : vector<1x256xf32>
    %100 = math.rsqrt %99 : vector<1x256xf32>
    %101 = vector.broadcast %100 : vector<1x256xf32> to vector<32x256xf32>
    %102 = arith.mulf %95, %101 : vector<32x256xf32>
    %103 = vector.broadcast %17 : vector<32x1xf32> to vector<32x256xf32>
    %104 = arith.mulf %102, %103 : vector<32x256xf32>
    %105 = vector.broadcast %18 : vector<32x1xf32> to vector<32x256xf32>
    %106 = arith.addf %104, %105 : vector<32x256xf32>
    %c0_35 = arith.constant 0 : index
    %c0_36 = arith.constant 0 : index
    %107 = vector.load %arg6[%c0_35, %c0_36] : memref<32x256xf32, #tpu.memory_space<vmem>>, vector<32x256xf32>
    tpu.vector_store %arg6[%c0_35, %c0_36], %106 {strides = array<i32>} : memref<32x256xf32, #tpu.memory_space<vmem>>, vector<32x256xf32>,
    return
  }
  func.func @transform_0(%arg0: i32) -> (i32, i32) {
    %c0_i32 = arith.constant 0 : i32
    %c0_i32_0 = arith.constant 0 : i32
    return %c0_i32, %arg0 : i32, i32
  }
  func.func @transform_1(%arg0: i32) -> (i32, i32) {
    %c0_i32 = arith.constant 0 : i32
    %c0_i32_0 = arith.constant 0 : i32
    return %c0_i32, %arg0 : i32, i32
  }
  func.func @transform_2(%arg0: i32) -> (i32, i32) {
    %c0_i32 = arith.constant 0 : i32
    %c0_i32_0 = arith.constant 0 : i32
    return %c0_i32, %arg0 : i32, i32
  }
  func.func @transform_3(%arg0: i32) -> (i32, i32) {
    %c0_i32 = arith.constant 0 : i32
    %c0_i32_0 = arith.constant 0 : i32
    %c0_i32_1 = arith.constant 0 : i32
    return %c0_i32, %c0_i32_0 : i32, i32
  }
  func.func @transform_4(%arg0: i32) -> (i32, i32) {
    %c0_i32 = arith.constant 0 : i32
    %c0_i32_0 = arith.constant 0 : i32
    %c0_i32_1 = arith.constant 0 : i32
    return %c0_i32, %c0_i32_0 : i32, i32
  }
  func.func @transform_5(%arg0: i32) -> (i32, i32) {
    %c0_i32 = arith.constant 0 : i32
    %c0_i32_0 = arith.constant 0 : i32
    return %c0_i32, %arg0 : i32, i32
  }
}

</mosaic_0001>

<bundles_post_ra>
// kernel: encode_layer.1
= control target key start
LH: loop header
LB: loop body
LE: loop exit
PB: predicated region body
PF: predicated region fallthrough
CT: control target
= control target key end

     0   :  { %10 = vsyncpa [#allocation3], 0  ;;  %s15205_s0 = inlined_call_operand.hbm [shape: f32[32,1024], index: 0, kind: input, shape index: {}]   ;;  %s15206_s1 = inlined_call_operand.vmem [shape: f32[64,1024], index: 1, kind: input, shape index: {}]   ;;  %s15207_s2 = inlined_call_operand.vmem [shape: f32[64,1024], index: 2, kind: input, shape index: {}]   ;;  %s15208_s3 = inlined_call_operand.vmem [shape: f32[200,32], index: 3, kind: input, shape index: {}]   ;;  %s15209_s4 = inlined_call_operand.vmem [shape: f32[32,18], index: 4, kind: input, shape index: {}]   ;;  %s15210_s5 = inlined_call_operand.hbm [shape: f32[32,1024], index: 5, kind: output, shape index: {}]  }
   0x1   :  { %12 = vsyncpa [#allocation3 + $0x1], 0 }
   0x2   :  { %13 = vsyncpa [#allocation4], 0 }
   0x3   :  { %15 = vsyncpa [#allocation4 + $0x1], 0  ;;  %s12573_s18 = smov 0   ;;  %s12575_s19 = smov 0  }
   0x4   :  { %s12577_s20 = smov 0   ;;  %s12579_s21 = smov 0  }
   0x5 LB: > { %s12594_s22 = sadd.s32 4294967295, %s12520_s21   ;;  %s11065_s23 = sadd.s32 4294967294, %s12520_s21   ;;  %s12520_s21 = sphi %s12579_s21, %s15272_s21   ;;  %s12516_s20 = sphi %s12577_s20, %s15271_s20   ;;  %s12512_s19 = sphi %s12575_s19, %s15270_s19   ;;  %s12508_s18 = sphi %s12573_s18, %s15269_s18  }
   0x6   : > { %s12598_s24 = sadd.s32 1, %s12520_s21   ;;  %s28_s25 = sadd.s32 1, %s12516_s20 }
   0x7   : > { %s25_s26 = ssub.s32 %s12520_s21, %s12598_s24  ;;  %p35_p0 = scmp.ne.s32.totalorder %s12516_s20, %s12512_s19 }
   0x8   : > { %p26_p1 = scmp.eq.s32.totalorder %s25_s26, 0  ;;  %p36_p2 = scmp.eq.s32.totalorder %s12520_s21, 0 }
   0x9   : > { %p41_p3 = scmp.ne.s32.totalorder %s12512_s19, %s12508_s18  ;;  %p42_p4 = scmp.eq.s32.totalorder %s12594_s22, 0 }
   0xa   : > { %s12610_s27 = scalar_select %p26_p1, %s12516_s20, %s28_s25  }
   0xb   : > { %p12612_p5 = por %p36_p2, %p35_p0  ;;  %p12616_p6 = por %p42_p4, %p41_p3 }
   0xc   : > { %p159_p7 = scmp.eq.s32.totalorder %s12594_s22, 3  ;;  %p165_p8 = scmp.eq.s32.totalorder %s11065_s23, 3 }
   0xd   : > { %p11067_p11 = scmp.ge.s32.totalorder %s12520_s21, 4 }
   0xe   : > { %p12621_p9 = por %p159_p7, %p35_p0  ;;  %p12625_p10 = por %p165_p8, %p41_p3 }
   0xf   : > { %187 = sbr.rel (%p11067_p11) target bundleno = 68 (0x44), region = 24  ;;  %s12631_s7 = sand.u32 (!%p11067_p11), 1, %s12516_s20  }
  0x10   : > { %s15240_s30 = scalar_select %p12621_p9, 1, 0 }
  0x11   : > { %s15241_s6 = scalar_select %p12625_p10, 1, 0 }
  0x12   : > { %s11099_s8 = sshll.u32 (!%p11067_p11), %s12520_s21, 8  ;;  %s11068_s9 = sshll.u32 (!%p11067_p11), %s12631_s7, 6 }
  0x13   : > { %s12638_s12 = scalar_lea.hbm (!%p11067_p11), %s15205_s0, %s11099_s8  ;;  %s195_s13 = scalar_lea.vmem (!%p11067_p11), [#allocation2], %s11068_s9 }
  0x14   : > { %s202_s14 = sshll.u32 (!%p11067_p11), %s195_s13, 4  ;;  %s192_s15 = scalar_lea.sflag (!%p11067_p11), [#allocation3], %s12631_s7  ;;  %s12640_s14 = int_to_ptr.vmem [resolvable:$true] %s202_s14 }
  0x15   : > { %s12426_s16 = scalar_lea.hbm (!%p11067_p11), %s12638_s12, 1024  ;;  %s12430_s25 = scalar_lea.hbm (!%p11067_p11), %s15205_s0, 4096 }
  0x16   : > { %p12427_p12 = scmp.ne.s32.totalorder %s12638_s12, %s12426_s16  ;;  %p12431_p1 = scmp.lt.u32.totalorder %s12638_s12, %s15205_s0 }
  0x17   : > { %p12432_p2 = scmp.lt.u32.totalorder %s12430_s25, %s12426_s16  ;;  %p12434_p4 = scmp.lt.u32.totalorder %s12426_s16, %s12638_s12 }
  0x18   : > { %p12428_p13 = pnand %p12427_p12, %p12612_p5 }
  0x19   : > { %p12433_p3 = por %p12432_p2, %p12431_p1 }
  0x1a   : > { %p12429_p0 = pneg %p12428_p13 }
  0x1b   : > { %p12435_p7 = por %p12434_p4, %p12433_p3 }
  0x1d   : > { %p12436_p8 = pnand %p12435_p7, %p12429_p0 }
  0x1f   : > { %12439 = shalt.err (!%p12436_p8)
}
  0x20   : > { %s12440_s9 = scalar_lea.vmem %s12640_s14, 1024  ;;  %s12522_s10 = smov [#allocation2]  }
  0x21   : > { %p12441_p11 = scmp.ne.s32.totalorder %s12640_s14, %s12440_s9  ;;  %s12444_s11 = sshll.u32 %s12522_s10, 4  ;;  %s12445_s11 = int_to_ptr.vmem [resolvable:$false] %s12444_s11 }
  0x22   : > { %s12446_s13 = scalar_lea.vmem %s12445_s11, 2048  ;;  %p12447_p10 = scmp.lt.s32.totalorder %s12640_s14, %s12445_s11 }
  0x23   : > { %p12442_p12 = pnand %p12441_p11, %p12612_p5  ;;  %p12448_p9 = scmp.lt.s32.totalorder %s12446_s13, %s12440_s9 }
  0x25   : > { %p12443_p13 = pneg %p12442_p12  ;;  %p12449_p1 = por %p12448_p9, %p12447_p10 }
  0x27   : > { %p12450_p2 = pnand %p12449_p1, %p12443_p13 }
  0x29   : > { %12453 = shalt.err (!%p12450_p2)
}
  0x2a   : > { %s12523_s16 = smov 1024   ;;  %s12524_s17 = smov 256  }
  0x2b   : > { %s12525_s23 = smov 16   ;;  %211 = sbr.rel (!%p12612_p5) target bundleno = 56 (0x38), region = 32 }
  0x2c   : > { %12303 = dma.hbm_to_vmem [thread:$0]  (%p12612_p5), %s12638_s12, 1024, %s12640_s14, %s192_s15, %s12523_s16, %s12524_s17, %s12525_s23  }
  0x2d   : > { %s11071_s25 = sshll.u32 (%p12612_p5), %s12631_s7, 7  ;;  %s11100_s26 = sshll.u32 (%p12612_p5), %s12520_s21, 4 }
  0x2e   : > { %s12673_s10 = scalar_lea.vmem (%p12612_p5), %s15206_s1, %s11100_s26  ;;  %s215_s12 = scalar_lea.vmem (%p12612_p5), [#allocation5], %s11071_s25 }
  0x2f   : > { %v231_v0 = vld [vmem:[%s12673_s10] sm:$0xff] (%p12612_p5)  ;;  %v233_v1 = vld [vmem:[%s12673_s10 + $0x8] sm:$0xff] (%p12612_p5) }
  0x30   : > { %v235_v2 = vld [vmem:[%s12673_s10 + $0x40] sm:$0xff] (%p12612_p5)  ;;  %232 = vst [vmem:[%s215_s12] sm:$0xff] (%p12612_p5), %v231_v0  ;;  %234 = vst [vmem:[%s215_s12 + $0x8] sm:$0xff] (%p12612_p5), %v233_v1  ;;  %v237_v3 = vld [vmem:[%s12673_s10 + $0x48] sm:$0xff] (%p12612_p5) }
  0x31   : > { %236 = vst [vmem:[%s215_s12 + $0x10] sm:$0xff] (%p12612_p5), %v235_v2  ;;  %v239_v4 = vld [vmem:[%s12673_s10 + $0x80] sm:$0xff] (%p12612_p5)  ;;  %v241_v5 = vld [vmem:[%s12673_s10 + $0x88] sm:$0xff] (%p12612_p5)  ;;  %238 = vst [vmem:[%s215_s12 + $0x18] sm:$0xff] (%p12612_p5), %v237_v3 }
  0x32   : > { %240 = vst [vmem:[%s215_s12 + $0x20] sm:$0xff] %v239_v4  ;;  %242 = vst [vmem:[%s215_s12 + $0x28] sm:$0xff] %v241_v5  ;;  %v243_v6 = vld [vmem:[%s12673_s10 + $0xc0] sm:$0xff]  ;;  %v245_v7 = vld [vmem:[%s12673_s10 + $0xc8] sm:$0xff] }
  0x33   : > { %v247_v8 = vld [vmem:[%s12673_s10 + $0x100] sm:$0xff]  ;;  %244 = vst [vmem:[%s215_s12 + $0x30] sm:$0xff] %v243_v6  ;;  %246 = vst [vmem:[%s215_s12 + $0x38] sm:$0xff] %v245_v7  ;;  %v249_v9 = vld [vmem:[%s12673_s10 + $0x108] sm:$0xff] }
  0x34   : > { %248 = vst [vmem:[%s215_s12 + $0x40] sm:$0xff] %v247_v8  ;;  %v251_v10 = vld [vmem:[%s12673_s10 + $0x140] sm:$0xff]  ;;  %v253_v11 = vld [vmem:[%s12673_s10 + $0x148] sm:$0xff]  ;;  %250 = vst [vmem:[%s215_s12 + $0x48] sm:$0xff] %v249_v9 }
  0x35   : > { %252 = vst [vmem:[%s215_s12 + $0x50] sm:$0xff] %v251_v10  ;;  %254 = vst [vmem:[%s215_s12 + $0x58] sm:$0xff] %v253_v11  ;;  %v255_v12 = vld [vmem:[%s12673_s10 + $0x180] sm:$0xff]  ;;  %v257_v13 = vld [vmem:[%s12673_s10 + $0x188] sm:$0xff] }
  0x36   : > { %v259_v14 = vld [vmem:[%s12673_s10 + $0x1c0] sm:$0xff]  ;;  %256 = vst [vmem:[%s215_s12 + $0x60] sm:$0xff] %v255_v12  ;;  %258 = vst [vmem:[%s215_s12 + $0x68] sm:$0xff] %v257_v13  ;;  %v261_v15 = vld [vmem:[%s12673_s10 + $0x1c8] sm:$0xff] }
  0x37   : > { %260 = vst [vmem:[%s215_s12 + $0x70] sm:$0xff] %v259_v14  ;;  %262 = vst [vmem:[%s215_s12 + $0x78] sm:$0xff] %v261_v15 }
  0x38 PF: > { %268 = sbr.rel (!%p12612_p5) target bundleno = 68 (0x44), region = 55  ;;  %s11074_s14 = sshll.u32 (%p12612_p5), %s12631_s7, 7 }
  0x39   : > { %s11101_s15 = sshll.u32 (%p12612_p5), %s12520_s21, 4  ;;  %s272_s28 = scalar_lea.vmem (%p12612_p5), [#allocation6], %s11074_s14 }
  0x3a   : > { %s12698_s16 = scalar_lea.vmem (%p12612_p5), %s15207_s2, %s11101_s15 }
  0x3b   : > { %v288_v16 = vld [vmem:[%s12698_s16] sm:$0xff] (%p12612_p5)  ;;  %v290_v17 = vld [vmem:[%s12698_s16 + $0x8] sm:$0xff] (%p12612_p5) }
  0x3c   : > { %v292_v18 = vld [vmem:[%s12698_s16 + $0x40] sm:$0xff] (%p12612_p5)  ;;  %289 = vst [vmem:[%s272_s28] sm:$0xff] (%p12612_p5), %v288_v16  ;;  %291 = vst [vmem:[%s272_s28 + $0x8] sm:$0xff] (%p12612_p5), %v290_v17  ;;  %v294_v19 = vld [vmem:[%s12698_s16 + $0x48] sm:$0xff] (%p12612_p5) }
  0x3d   : > { %293 = vst [vmem:[%s272_s28 + $0x10] sm:$0xff] (%p12612_p5), %v292_v18  ;;  %v296_v20 = vld [vmem:[%s12698_s16 + $0x80] sm:$0xff] (%p12612_p5)  ;;  %v298_v21 = vld [vmem:[%s12698_s16 + $0x88] sm:$0xff] (%p12612_p5)  ;;  %295 = vst [vmem:[%s272_s28 + $0x18] sm:$0xff] (%p12612_p5), %v294_v19 }
  0x3e   : > { %297 = vst [vmem:[%s272_s28 + $0x20] sm:$0xff] (%p12612_p5), %v296_v20  ;;  %299 = vst [vmem:[%s272_s28 + $0x28] sm:$0xff] (%p12612_p5), %v298_v21  ;;  %v300_v22 = vld [vmem:[%s12698_s16 + $0xc0] sm:$0xff] (%p12612_p5)  ;;  %v302_v23 = vld [vmem:[%s12698_s16 + $0xc8] sm:$0xff] (%p12612_p5) }
  0x3f   : > { %v304_v24 = vld [vmem:[%s12698_s16 + $0x100] sm:$0xff]  ;;  %301 = vst [vmem:[%s272_s28 + $0x30] sm:$0xff] %v300_v22  ;;  %303 = vst [vmem:[%s272_s28 + $0x38] sm:$0xff] %v302_v23  ;;  %v306_v25 = vld [vmem:[%s12698_s16 + $0x108] sm:$0xff] }
  0x40   : > { %305 = vst [vmem:[%s272_s28 + $0x40] sm:$0xff] %v304_v24  ;;  %v308_v26 = vld [vmem:[%s12698_s16 + $0x140] sm:$0xff]  ;;  %v310_v27 = vld [vmem:[%s12698_s16 + $0x148] sm:$0xff]  ;;  %307 = vst [vmem:[%s272_s28 + $0x48] sm:$0xff] %v306_v25 }
  0x41   : > { %309 = vst [vmem:[%s272_s28 + $0x50] sm:$0xff] %v308_v26  ;;  %311 = vst [vmem:[%s272_s28 + $0x58] sm:$0xff] %v310_v27  ;;  %v312_v28 = vld [vmem:[%s12698_s16 + $0x180] sm:$0xff]  ;;  %v314_v29 = vld [vmem:[%s12698_s16 + $0x188] sm:$0xff] }
  0x42   : > { %v316_v30 = vld [vmem:[%s12698_s16 + $0x1c0] sm:$0xff]  ;;  %313 = vst [vmem:[%s272_s28 + $0x60] sm:$0xff] %v312_v28  ;;  %315 = vst [vmem:[%s272_s28 + $0x68] sm:$0xff] %v314_v29  ;;  %v318_v31 = vld [vmem:[%s12698_s16 + $0x1c8] sm:$0xff] }
  0x43   : > { %317 = vst [vmem:[%s272_s28 + $0x70] sm:$0xff] %v316_v30  ;;  %319 = vst [vmem:[%s272_s28 + $0x78] sm:$0xff] %v318_v31 }
  0x44 PF: > { %p11077_p5 = scmp.ge.s32.totalorder %s12520_s21, 1  ;;  %p324_p9 = scmp.lt.s32.totalorder %s12520_s21, 5 }
  0x46   : > { %p325_p10 = pnand %p11077_p5, %p324_p9 }
  0x47   : > { %s12719_s7 = sand.u32 (!%p325_p10), 1, %s12512_s19  }
  0x48   : > { %328 = sbr.rel (%p325_p10) target bundleno = 3304 (0xce8), region = 78  ;;  %s11078_s17 = sshll.u32 (!%p325_p10), %s12719_s7, 6 }
  0x49   : > { %s331_s23 = scalar_lea.sflag (!%p325_p10), [#allocation3], %s12719_s7  ;;  %s12725_s25 = scalar_lea.vmem (!%p325_p10), [#allocation2], %s11078_s17 }
  0x4f   : > { %12499 = dma.done.wait (%p12616_p6), %s331_s23, 1024  }
  0x50   : > { %12501 = vsyncadd (%p12616_p6), %s331_s23, 4294966272  ;;  %s11079_s26 = sshll.u32 %s12719_s7, 7  ;;  %v12526_v32 = vmov 0.0   ;;  %v417_v33 = vld [vmem:[%s12725_s25 + $0x8] sm:$0xff]  ;;  %v419_v34 = vld [vmem:[%s12725_s25 + $0x18] sm:$0xff]  ;;  %vm444_vm0 = vcmask 261120  }
  0x51   : > { %529 = vmatprep.mubr.f32.mxu0 %v12526_v32  ;;  %1255 = vmatprep.mubr.f32.mxu1 %v12526_v32  ;;  %s12738_s8 = scalar_lea.vmem [#allocation5], %s11079_s26  ;;  %v457_v36 = vand.u32 4294901760, %v417_v33  ;;  %v461_v37 = vand.u32 4294901760, %v419_v34  ;;  %v416_v40 = vld [vmem:[%s12725_s25] sm:$0xff]  ;;  %v418_v41 = vld [vmem:[%s12725_s25 + $0x10] sm:$0xff]  ;;  %v421_v47 = vld [vmem:[%s12725_s25 + $0x28] sm:$0xff] }
  0x52   : > { %v1148_v35 = vld [vmem:[%s12738_s8 + $0x8] sm:$0xff]  ;;  %v1150_v38 = vld [vmem:[%s12738_s8 + $0x18] sm:$0xff]  ;;  %v459_v43 = vand.u32 4294901760, %v416_v40  ;;  %v463_v44 = vand.u32 4294901760, %v418_v41  ;;  %v1147_v45 = vld [vmem:[%s12738_s8] sm:$0xff]  ;;  %v465_v63 = vand.u32 4294901760, %v421_v47 }
  0x53   : > { %v1183_v39 = vand.u32 4294901760, %v1148_v35  ;;  %v1187_v42 = vand.u32 4294901760, %v1150_v38  ;;  %v1149_v46 = vld [vmem:[%s12738_s8 + $0x10] sm:$0xff]  ;;  %v12747_v48 = vpack.c.bf16 %v461_v37, %v457_v36  ;;  %v12749_v49 = vsub.f32 %v417_v33, %v457_v36  ;;  %v423_v52 = vld [vmem:[%s12725_s25 + $0x38] sm:$0xff]  ;;  %v1152_v53 = vld [vmem:[%s12738_s8 + $0x28] sm:$0xff]  ;;  %s12529_s28 = smov 118  }
  0x54   : > { %v12751_v50 = vsub.f32 %v419_v34, %v461_v37  ;;  %v1154_v54 = vld [vmem:[%s12738_s8 + $0x38] sm:$0xff]  ;;  %v12762_v57 = vpack.c.bf16 %v463_v44, %v459_v43  ;;  %v12764_v58 = vsub.f32 %v416_v40, %v459_v43  ;;  %v420_v59 = vld [vmem:[%s12725_s25 + $0x20] sm:$0xff]  ;;  %v12768_v60 = vsub.f32 %v418_v41, %v463_v44  ;;  %v422_v0 = vld [vmem:[%s12725_s25 + $0x30] sm:$0xff]  ;;  %s13494_s23 = scalar_lea.vmem [#allocation6], %s11079_s26  ;;  %s15141_s11 = scalar_lea.vmem [#allocation7], %s11078_s17 }
  0x55   : > { %v12753_v51 = vsub.f32 %v1148_v35, %v1183_v39  ;;  %v12758_v55 = vpack.c.bf16 %v1187_v42, %v1183_v39  ;;  %v12760_v56 = vsub.f32 %v1150_v38, %v1187_v42  ;;  %11104 = vmatprep.subr.bf16.mxu0 %v12747_v48  ;;  %v1185_v61 = vand.u32 4294901760, %v1147_v45  ;;  %v1151_v5 = vld [vmem:[%s12738_s8 + $0x20] sm:$0xff]  ;;  %v1153_v6 = vld [vmem:[%s12738_s8 + $0x30] sm:$0xff]  ;;  %v388_v13 = vld [vmem:[%s15208_s3 + $0x8] sm:$0xff]  ;;  %s10956_s13 = sshll.u32 %s15141_s11, 4  ;;  %s11102_s16 = sshll.u32 %s12594_s22, 8  ;;  %s15149_s13 = int_to_ptr.vmem [resolvable:$true] %s10956_s13 }
  0x56   : > { %v1189_v62 = vand.u32 4294901760, %v1149_v46  ;;  %11106 = vmatpush1.bf16.msra.mxu0 %v12762_v57  ;;  %v469_v1 = vand.u32 4294901760, %v423_v52  ;;  %v1191_v2 = vand.u32 4294901760, %v1152_v53  ;;  %v1195_v3 = vand.u32 4294901760, %v1154_v54  ;;  %v387_v11 = vld [vmem:[%s15208_s3] sm:$0xff]  ;;  %v392_v26 = vld [vmem:[%s15208_s3 + $0x28] sm:$0xff] }
  0x57   : > { %11152 = vmatprep.subr.bf16.mxu1 %v12758_v55  ;;  %v467_v4 = vand.u32 4294901760, %v420_v59  ;;  %v12777_v8 = vsub.f32 %v1147_v45, %v1185_v61  ;;  %v12781_v10 = vsub.f32 %v421_v47, %v465_v63  ;;  %v391_v12 = vld [vmem:[%s15208_s3 + $0x20] sm:$0xff]  ;;  %v471_v19 = vand.u32 4294901760, %v422_v0  ;;  %v389_v27 = vld [vmem:[%s15208_s3 + $0x10] sm:$0xff]  ;;  %s12454_s26 = scalar_lea.vmem %s15149_s13, 1024  ;;  %p15267_p0 = scmp.ne.s32.totalorder %s15240_s30, 0 }
  0x58   : > { %v12775_v7 = vpack.c.bf16 %v1189_v62, %v1185_v61  ;;  %v12779_v9 = vsub.f32 %v1149_v46, %v1189_v62  ;;  %v12792_v14 = vpack.c.bf16 %v469_v1, %v465_v63  ;;  %v12794_v15 = vsub.f32 %v423_v52, %v469_v1  ;;  %v393_v37 = vld [vmem:[%s15208_s3 + $0x30] sm:$0xff]  ;;  %p12455_p6 = scmp.ne.s32.totalorder %s15149_s13, %s12454_s26  ;;  %s12539_s29 = smov [#allocation7]  }
  0x59   : > { %v12796_v16 = vpack.c.bf16 %v1195_v3, %v1191_v2  ;;  %v12798_v17 = vsub.f32 %v1152_v53, %v1191_v2  ;;  %v12801_v18 = vsub.f32 %v1154_v54, %v1195_v3  ;;  %v12803_v20 = vsub.f32 %v420_v59, %v467_v4  ;;  %s12458_s9 = sshll.u32 %s12539_s29, 4  ;;  %s12459_s9 = int_to_ptr.vmem [resolvable:$false] %s12458_s9 }
  0x5a   : > { %11154 = vmatpush1.bf16.msra.mxu1 %v12775_v7  ;;  %v1193_v21 = vand.u32 4294901760, %v1151_v5  ;;  %11108 = vmatprep.subr.bf16.mxu0 %v12792_v14  ;;  %v1197_v22 = vand.u32 4294901760, %v1153_v6  ;;  %v446_v23 = vsel %vm444_vm0, %v387_v11, 0  ;;  %v1172_v24 = vsel %vm444_vm0, %v391_v12, 0  ;;  %p12456_p3 = pnand %p12455_p6, %p15267_p0  ;;  %p12461_p7 = scmp.lt.s32.totalorder %s15149_s13, %s12459_s9 }
  0x5b   : > { %11156 = vmatprep.subr.bf16.mxu1 %v12796_v16  ;;  %v449_v25 = vsel %vm444_vm0, %v388_v13, 0  ;;  %v12816_v28 = vpack.c.bf16 %v471_v19, %v467_v4  ;;  %v12818_v29 = vsub.f32 %v422_v0, %v471_v19  ;;  %v12822_v31 = vand.u32 4294901760, %v446_v23 }
  0x5c   : > { %v12820_v30 = vsub.f32 %v1151_v5, %v1193_v21  ;;  %v12824_v33 = vpack.c.bf16 %v1197_v22, %v1193_v21  ;;  %v12826_v34 = vsub.f32 %v1153_v6, %v1197_v22  ;;  %v12828_v35 = vand.u32 4294901760, %v1172_v24  ;;  %p12457_p4 = pneg %p12456_p3 }
  0x5d   : > { %v12830_v36 = vand.u32 4294901760, %v449_v25  ;;  %11110 = vmatpush1.bf16.msra.mxu0 %v12816_v28  ;;  %v12837_v38 = vsub.f32 %v446_v23, %v12822_v31  ;;  %v1175_v39 = vsel %vm444_vm0, %v392_v26, 0  ;;  %v452_v40 = vsel %vm444_vm0, %v389_v27, 0 }
  0x5e   : > { %v15228_v41 = vand.u32 4294901760, %v12749_v49  ;;  %11158 = vmatpush1.bf16.msra.mxu1 %v12824_v33  ;;  %v12844_v42 = vsub.f32 %v1172_v24, %v12828_v35  ;;  %v12849_v44 = vand.u32 4294901760, %v1175_v39  ;;  %v12851_v45 = vand.u32 4294901760, %v452_v40 }
  0x5f   : > { %v12847_v43 = vsub.f32 %v449_v25, %v12830_v36  ;;  %v15214_v46 = vand.u32 4294901760, %v12837_v38  ;;  %v15220_v52 = vand.u32 4294901760, %v12751_v50  ;;  %v1178_v53 = vsel %vm444_vm0, %v393_v37, 0 }
  0x60   : > { %v577_v47 = vsub.f32 %v12749_v49, %v15228_v41  ;;  %v12860_v54 = vand.u32 4294901760, %v12844_v42  ;;  %v12864_v61 = vsub.f32 %v1175_v39, %v12849_v44  ;;  %v12867_v62 = vsub.f32 %v452_v40, %v12851_v45  ;;  %v390_v39 = vld [vmem:[%s15208_s3 + $0x18] sm:$0xff] }
  0x61   : > { %v15213_v59 = vand.u32 4294901760, %v12847_v43  ;;  %v533_v63 = vsub.f32 %v12837_v38, %v15214_v46  ;;  %v589_v1 = vsub.f32 %v12751_v50, %v15220_v52  ;;  %v12875_v2 = vand.u32 4294901760, %v1178_v53  ;;  %v394_v46 = vld [vmem:[%s15208_s3 + $0x38] sm:$0xff] }
  0x62   : > { %v578_v0 = vand.u32 4294901760, %v577_v47  ;;  %v1259_v3 = vsub.f32 %v12844_v42, %v12860_v54  ;;  %v12883_v5 = vand.u32 4294901760, %v12864_v61  ;;  %v15212_v6 = vand.u32 4294901760, %v12867_v62 }
  0x63   : > { %v544_v4 = vsub.f32 %v12847_v43, %v15213_v59  ;;  %v534_v11 = vand.u32 4294901760, %v533_v63  ;;  %v590_v12 = vand.u32 4294901760, %v589_v1  ;;  %v12887_v13 = vsub.f32 %v1178_v53, %v12875_v2 }
  0x64   : > { %v15219_v19 = vand.u32 4294901760, %v12753_v51  ;;  %v12890_v21 = vand.u32 4294901760, %v1259_v3  ;;  %v1270_v23 = vsub.f32 %v12864_v61, %v12883_v5  ;;  %v555_v24 = vsub.f32 %v12867_v62, %v15212_v6 }
  0x65   : > { %v545_v22 = vand.u32 4294901760, %v544_v4  ;;  %535 = vmatmul.mubr.f32.vlgmr.msra.gmra.mrb[0].mxu0 %v534_v11  ;;  %v11111_v25 = vpack.c.bf16 %v590_v12, %v578_v0  ;;  %v12898_v26 = vand.u32 4294901760, %v12887_v13  ;;  %v15218_v37 = vand.u32 4294901760, %v12760_v56 }
  0x66   : > { %v1303_v27 = vsub.f32 %v12753_v51, %v15219_v19  ;;  %1261 = vmatmul.mubr.f32.vlgmr.msra.gmra.mrb[0].mxu1 %v12890_v21  ;;  %540 = vmatprep.mubr.f32.mxu0 %v12526_v32  ;;  %v12909_v40 = vand.u32 4294901760, %v1270_v23  ;;  %v556_v47 = vand.u32 4294901760, %v555_v24  ;;  %v15217_v53 = vand.u32 4294901760, %v12764_v58 }
  0x67   : > { %v15215_v63 = vand.u32 4294901760, %v12768_v60  ;;  %1266 = vmatprep.mubr.f32.mxu1 %v12526_v32  ;;  %11112 = vmatprep.subr.bf16.mxu0 %v11111_v25  ;;  %v1281_v0 = vsub.f32 %v12887_v13, %v12898_v26  ;;  %v1315_v3 = vsub.f32 %v12760_v56, %v15218_v37  ;;  %v15216_v4 = vand.u32 4294901760, %v12777_v8 }
  0x68   : > { %v1304_v1 = vand.u32 4294901760, %v1303_v27  ;;  %v583_v11 = vsub.f32 %v12764_v58, %v15217_v53  ;;  %v15221_v23 = vand.u32 4294901760, %v12779_v9  ;;  %v455_v24 = vsel %vm444_vm0, %v390_v39, 0 }
  0x69   : > { %v595_v12 = vsub.f32 %v12768_v60, %v15215_v63  ;;  %546 = vmatmul.mubr.f32.gmra.mrb[2].mxu0 %v545_v22  ;;  %v12928_v25 = vand.u32 4294901760, %v1281_v0  ;;  %v1316_v27 = vand.u32 4294901760, %v1315_v3  ;;  %v1309_v6 = vsub.f32 %v12777_v8, %v15216_v4 }
  0x6a   : > { %v12933_v59 = vand.u32 4294901760, %v455_v24  ;;  %1272 = vmatmul.mubr.f32.gmra.mrb[2].mxu1 %v12909_v40  ;;  %551 = vmatprep.mubr.f32.mxu0 %v12526_v32  ;;  %v584_v63 = vand.u32 4294901760, %v583_v11  ;;  %v1321_v22 = vsub.f32 %v12779_v9, %v15221_v23  ;;  %v15224_v0 = vand.u32 4294901760, %v12781_v10 }
  0x6b   : > { %v596_v39 = vand.u32 4294901760, %v595_v12  ;;  %1277 = vmatprep.mubr.f32.mxu1 %v12526_v32  ;;  %v11159_v3 = vpack.c.bf16 %v1316_v27, %v1304_v1  ;;  %v1310_v4 = vand.u32 4294901760, %v1309_v6  ;;  %v15223_v37 = vand.u32 4294901760, %v12794_v15 }
  0x6c   : > { %v12946_v53 = vsub.f32 %v455_v24, %v12933_v59  ;;  %v1322_v52 = vand.u32 4294901760, %v1321_v22  ;;  %v601_v11 = vsub.f32 %v12781_v10, %v15224_v0  ;;  %v1181_v12 = vsel %vm444_vm0, %v394_v46, 0 }
  0x6d   : > { %v11113_v19 = vpack.c.bf16 %v596_v39, %v584_v63  ;;  %557 = vmatmul.mubr.f32.gmra.mrb[4].mxu0 %v556_v47  ;;  %11160 = vmatprep.subr.bf16.mxu1 %v11159_v3  ;;  %v613_v6 = vsub.f32 %v12794_v15, %v15223_v37  ;;  %v12957_v1 = vand.u32 4294901760, %v1181_v12  ;;  %v15225_v24 = vand.u32 4294901760, %v12798_v17 }
  0x6e   : > { %v15222_v23 = vand.u32 4294901760, %v12946_v53  ;;  %1283 = vmatmul.mubr.f32.gmra.mrb[4].mxu1 %v12928_v25  ;;  %v11161_v63 = vpack.c.bf16 %v1322_v52, %v1310_v4  ;;  %v602_v27 = vand.u32 4294901760, %v601_v11  ;;  %v15226_v39 = vand.u32 4294901760, %v12801_v18  ;;  %562 = vmatprep.mubr.f32.mxu0 %v12526_v32 }
  0x6f   : > { %11114 = vmatpush1.bf16.msra.mxu0 %v11113_v19  ;;  %v15227_v46 = vand.u32 4294901760, %v12803_v20  ;;  %1288 = vmatprep.mubr.f32.mxu1 %v12526_v32  ;;  %v614_v22 = vand.u32 4294901760, %v613_v6  ;;  %v12969_v3 = vsub.f32 %v1181_v12, %v12957_v1  ;;  %v1327_v52 = vsub.f32 %v12798_v17, %v15225_v24 }
  0x70   : > { %v566_v47 = vsub.f32 %v12946_v53, %v15222_v23  ;;  %11162 = vmatpush1.bf16.msra.mxu1 %v11161_v63  ;;  %v1339_v19 = vsub.f32 %v12801_v18, %v15226_v39  ;;  %v618_v11 = vand.u32 4294901760, %v12818_v29  ;;  %v15229_v6 = vand.u32 4294901760, %v12820_v30 }
  0x71   : > { %v607_v4 = vsub.f32 %v12803_v20, %v15227_v46  ;;  %v11115_v12 = vpack.c.bf16 %v614_v22, %v602_v27  ;;  %v12983_v37 = vand.u32 4294901760, %v12969_v3  ;;  %v1328_v0 = vand.u32 4294901760, %v1327_v52 }
  0x72   : > { %v567_v23 = vand.u32 4294901760, %v566_v47  ;;  %v1340_v24 = vand.u32 4294901760, %v1339_v19  ;;  %v619_v39 = vsub.f32 %v12818_v29, %v618_v11  ;;  %v1333_v46 = vsub.f32 %v12820_v30, %v15229_v6 }
  0x73   : > { %v608_v63 = vand.u32 4294901760, %v607_v4  ;;  %11116 = vmatprep.subr.bf16.mxu0 %v11115_v12  ;;  %v1292_v47 = vsub.f32 %v12969_v3, %v12983_v37  ;;  %v1344_v27 = vand.u32 4294901760, %v12826_v34  ;;  %vm4438_vm1 = vcmask 64512  }
  0x74   : > { %568 = vmatmul.mubr.f32.gmra.mrb[6].mxu0 %v567_v23  ;;  %v11163_v22 = vpack.c.bf16 %v1340_v24, %v1328_v0  ;;  %v620_v41 = vand.u32 4294901760, %v619_v39  ;;  %v1334_v19 = vand.u32 4294901760, %v1333_v46  ;;  %v11119_v23 = vpack.c.bf16 %v12751_v50, %v12749_v49 }
  0x75   : > { %678 = vmatprep.mubr.f32.mxu0 %v12526_v32  ;;  %v12995_v52 = vand.u32 4294901760, %v1292_v47  ;;  %v1345_v4 = vsub.f32 %v12826_v34, %v1344_v27  ;;  %v11167_v0 = vpack.c.bf16 %v12760_v56, %v12753_v51  ;;  %v11121_v39 = vpack.c.bf16 %v12768_v60, %v12764_v58 }
  0x76   : > { %11164 = vmatprep.subr.bf16.mxu1 %v11163_v22  ;;  %v11117_v12 = vpack.c.bf16 %v620_v41, %v608_v63  ;;  %v11123_v46 = vpack.c.bf16 %v12794_v15, %v12781_v10  ;;  %v11169_v41 = vpack.c.bf16 %v12779_v9, %v12777_v8  ;;  %v11125_v63 = vpack.c.bf16 %v12818_v29, %v12803_v20  ;;  %v13040_v22 = vld [vmem:[%s15209_s4] sm:$0xff]  ;;  %v2428_v29 = vld [vmem:[%s12738_s8 + $0x48] sm:$0xff] }
  0x77   : > { %1294 = vmatmul.mubr.f32.gmra.mrb[6].mxu1 %v12995_v52  ;;  %v1346_v6 = vand.u32 4294901760, %v1345_v4  ;;  %v11173_v47 = vpack.c.bf16 %v12826_v34, %v12820_v30  ;;  %v15242_v4 = vand.u32 4294901760, %v12749_v49  ;;  %v15245_v49 = vand.u32 4294901760, %v12760_v56 }
  0x78   : > { %11118 = vmatpush1.bf16.msra.mxu0 %v11117_v12  ;;  %1404 = vmatprep.mubr.f32.mxu1 %v12526_v32  ;;  %v15246_v56 = vand.u32 4294901760, %v12764_v58  ;;  %v15250_v58 = vand.u32 4294901760, %v12837_v38 }
  0x79   : > { %v11165_v24 = vpack.c.bf16 %v1346_v6, %v1334_v19  ;;  %11120 = vmatprep.subr.bf16.mxu0 %v11119_v23  ;;  %v11171_v6 = vpack.c.bf16 %v12801_v18, %v12798_v17  ;;  %v12527_v19 = vmov 0   ;;  %v15243_v23 = vand.u32 4294901760, %v12751_v50 }
  0x7a   : > { %12363 = vset.pattern.permute.xlu0 %v12527_v19 }
  0x7b   : > { %11166 = vmatpush1.bf16.msra.mxu1 %v11165_v24  ;;  %680 = vmatmul.mubr.f32.vlgmr.msra.gmra.mrb[0].mxu0 %v12822_v31  ;;  %v11135_v12 = vpack.c.bf16 %v15243_v23, %v15242_v4  ;;  %v12528_v24 = vmov 1   ;;  %v15253_v4 = vand.u32 4294901760, %v12798_v17  ;;  %v15254_v23 = vand.u32 4294901760, %v12801_v18  ;;  %v13125_v18 = vld [vmem:[%s15209_s4 + $0x18] sm:$0xff] }
  0x7c   : > { %685 = vmatprep.mubr.f32.mxu0 %v12526_v32  ;;  %11168 = vmatprep.subr.bf16.mxu1 %v11167_v0  ;;  %v15244_v0 = vand.u32 4294901760, %v12753_v51  ;;  %v13070_v51 = vld [vmem:[%s15209_s4 + $0x8] sm:$0xff] }
  0x7d   : > { %11122 = vmatpush1.bf16.msra.mxu0 %v11121_v39  ;;  %426 = vperm.xlu0 %12363, %v13040_v22   ;;  %v15247_v39 = vand.u32 4294901760, %v12768_v60  ;;  %v15251_v60 = vand.u32 4294901760, %v12777_v8  ;;  %v15256_v8 = vand.u32 4294901760, %v12847_v43 }
  0x7e   : > { %1406 = vmatmul.mubr.f32.vlgmr.msra.gmra.mrb[0].mxu1 %v12828_v35  ;;  %11124 = vmatprep.subr.bf16.mxu0 %v11123_v46  ;;  %v11183_v50 = vpack.c.bf16 %v15245_v49, %v15244_v0  ;;  %v15255_v0 = vand.u32 4294901760, %v12803_v20  ;;  %v15258_v20 = vand.u32 4294901760, %v12867_v62  ;;  %v2431_v49 = vld [vmem:[%s12738_s8 + $0x60] sm:$0xff] }
  0x7f   : > { %1411 = vmatprep.mubr.f32.mxu1 %v12526_v32  ;;  %687 = vmatmul.mubr.f32.gmra.mrb[2].mxu0 %v12830_v36  ;;  %v11137_v46 = vpack.c.bf16 %v15247_v39, %v15246_v56  ;;  %v2433_v56 = vld [vmem:[%s12738_s8 + $0x70] sm:$0xff] }
  0x80   : > { %692 = vmatprep.mubr.f32.mxu0 %v12526_v32  ;;  %11170 = vmatpush1.bf16.msra.mxu1 %v11169_v41  ;;  %v15248_v41 = vand.u32 4294901760, %v12781_v10  ;;  %v15252_v10 = vand.u32 4294901760, %v12779_v9  ;;  %v15257_v9 = vand.u32 4294901760, %v12820_v30  ;;  %v2430_v30 = vld [vmem:[%s12738_s8 + $0x58] sm:$0xff] }
  0x81   : > { %11172 = vmatprep.subr.bf16.mxu1 %v11171_v6  ;;  %11126 = vmatpush1.bf16.msra.mxu0 %v11125_v63  ;;  %v15249_v6 = vand.u32 4294901760, %v12794_v15  ;;  %v2439_v34 = vand.u32 4294901760, %v2430_v30 }
  0x82   : > { %1413 = vmatmul.mubr.f32.gmra.mrb[2].mxu1 %v12849_v44  ;;  %11128 = vmatprep.subr.bf16.mxu0 %v12747_v48  ;;  %v11185_v15 = vpack.c.bf16 %v15252_v10, %v15251_v60  ;;  %v11189_v17 = vpack.c.bf16 %v1344_v27, %v15257_v9 }
  0x83   : > { %1418 = vmatprep.mubr.f32.mxu1 %v12526_v32  ;;  %694 = vmatmul.mubr.f32.gmra.mrb[4].mxu0 %v12851_v45  ;;  %v11139_v63 = vpack.c.bf16 %v15249_v6, %v15248_v41 }
  0x84   : > { %699 = vmatprep.mubr.f32.mxu0 %v12526_v32  ;;  %11174 = vmatpush1.bf16.msra.mxu1 %v11173_v47  ;;  %v13091_v47 = vld [vmem:[%s15209_s4 + $0x10] sm:$0xff] }
  0x85   : > { %11176 = vmatprep.subr.bf16.mxu1 %v12758_v55  ;;  %12364 = vset.pattern.permute.xlu1 %v12528_v24 }
  0x86   : > { %1420 = vmatmul.mubr.f32.gmra.mrb[4].mxu1 %v12875_v2  ;;  %1156 = vperm.xlu1 %12364, %v13040_v22  }
  0x87   : > { %1425 = vmatprep.mubr.f32.mxu1 %v12526_v32  ;;  %701 = vmatmul.mubr.f32.gmra.mrb[6].mxu0 %v12933_v59 }
  0x88   : > { %787 = vmatprep.mubr.f32.mxu0 %v12526_v32  ;;  %431 = vperm.xlu0 %12363, %v13070_v51  }
  0x8a   : > { %1427 = vmatmul.mubr.f32.gmra.mrb[6].mxu1 %v12957_v1  ;;  %1160 = vperm.xlu1 %12364, %v13070_v51  }
  0x8b   : > { %1513 = vmatprep.mubr.f32.mxu1 %v12526_v32  ;;  %790 = vmatmul.mubr.f32.vlgmr.msra.gmra.mrb[0].mxu0 %v12837_v38  ;;  %v11141_v38 = vpack.c.bf16 %v618_v11, %v15255_v0  ;;  %v2434_v11 = vld [vmem:[%s12738_s8 + $0x78] sm:$0xff] }
  0x8c   : > { %795 = vmatprep.mubr.f32.mxu0 %v12526_v32  ;;  %11130 = vmatpush1.bf16.msra.mxu0 %v12762_v57 }
  0x8d   : > { %11132 = vmatprep.subr.bf16.mxu0 %v12792_v14  ;;  %436 = vperm.xlu0 %12363, %v13091_v47  }
  0x8e   : > { %1516 = vmatmul.mubr.f32.vlgmr.msra.gmra.mrb[0].mxu1 %v12844_v42  ;;  %12365 = vset.pattern.permute.xlu1 %v12527_v19 }
  0x8f   : > { %1521 = vmatprep.mubr.f32.mxu1 %v12526_v32  ;;  %798 = vmatmul.mubr.f32.gmra.mrb[2].mxu0 %v12847_v43  ;;  %v13159_v43 = vsub.f32 %v2430_v30, %v2439_v34 }
  0x90   : > { %803 = vmatprep.mubr.f32.mxu0 %v12526_v32  ;;  %11178 = vmatpush1.bf16.msra.mxu1 %v12775_v7 }
  0x91   : > { %11180 = vmatprep.subr.bf16.mxu1 %v12796_v16  ;;  %11134 = vmatpush1.bf16.msra.mxu0 %v12816_v28 }
  0x92   : > { %1524 = vmatmul.mubr.f32.gmra.mrb[2].mxu1 %v12864_v61  ;;  %11136 = vmatprep.subr.bf16.mxu0 %v11135_v12  ;;  %v11187_v12 = vpack.c.bf16 %v15254_v23, %v15253_v4 }
  0x93   : > { %1529 = vmatprep.mubr.f32.mxu1 %v12526_v32  ;;  %806 = vmatmul.mubr.f32.gmra.mrb[4].mxu0 %v12867_v62  ;;  %v2566_v62 = vand.u32 4294901760, %v13159_v43 }
  0x94   : > { %811 = vmatprep.mubr.f32.mxu0 %v12526_v32  ;;  %11182 = vmatpush1.bf16.msra.mxu1 %v12824_v33 }
  0x95   : > { %11184 = vmatprep.subr.bf16.mxu1 %v11183_v50  ;;  %441 = vperm.xlu1 %12365, %v13125_v18  }
  0x96   : > { %1532 = vmatmul.mubr.f32.gmra.mrb[4].mxu1 %v12887_v13  ;;  %12366 = vset.pattern.permute.xlu0 %v12528_v24 }
  0x97   : > { %1537 = vmatprep.mubr.f32.mxu1 %v12526_v32  ;;  %814 = vmatmul.mubr.f32.gmra.mrb[6].mxu0 %v12946_v53 }
  0x98   : > { %892 = vmatprep.mubr.f32.mxu0 %v12526_v32  ;;  %1164 = vperm.xlu0 %12366, %v13091_v47  }
  0x99   : > { %12367 = vset.pattern.permute.xlu1 %v12528_v24  ;;  %v2447_v24 = vand.u32 4294901760, %v2434_v11 }
  0x9a   : > { %1540 = vmatmul.mubr.f32.gmra.mrb[6].mxu1 %v12969_v3  ;;  %1168 = vperm.xlu1 %12367, %v13125_v18  }
  0x9b   : > { %1618 = vmatprep.mubr.f32.mxu1 %v12526_v32  ;;  %896 = vmatmul.mubr.f32.vlgmr.msra.gmra.mrb[0].mxu0 %v15250_v58  ;;  %v13197_v10 = vsub.f32 %v2434_v11, %v2447_v24 }
  0x9c   : > { %901 = vmatprep.mubr.f32.mxu0 %v12526_v32  ;;  %11138 = vmatpush1.bf16.msra.mxu0 %v11137_v46  ;;  %v2567_v46 = vsub.f32 %v13159_v43, %v2566_v62 }
  0x9d   : > { %11140 = vmatprep.subr.bf16.mxu0 %v11139_v63  ;;  %v2445_v63 = vand.u32 4294901760, %v2431_v49  ;;  %4432 = vrot.lane.b32.xlu0 %v13070_v51, %s12529_s28 }
  0x9e   : > { %1622 = vmatmul.mubr.f32.vlgmr.msra.gmra.mrb[0].mxu1 %v12860_v54  ;;  %4430 = vrot.lane.b32.xlu1 %v13040_v22, %s12529_s28 }
  0x9f   : > { %1627 = vmatprep.mubr.f32.mxu1 %v12526_v32  ;;  %905 = vmatmul.mubr.f32.gmra.mrb[2].mxu0 %v15256_v8 }
  0xa0   : > { %910 = vmatprep.mubr.f32.mxu0 %v12526_v32  ;;  %11186 = vmatpush1.bf16.msra.mxu1 %v11185_v15  ;;  %v2449_v15 = vand.u32 4294901760, %v2433_v56 }
  0xa1   : > { %11188 = vmatprep.subr.bf16.mxu1 %v11187_v12  ;;  %11142 = vmatpush1.bf16.msra.mxu0 %v11141_v38  ;;  %v2568_v12 = vand.u32 4294901760, %v2567_v46 }
  0xa2   : > { %1631 = vmatmul.mubr.f32.gmra.mrb[2].mxu1 %v12883_v5  ;;  %11144 = vmatprep.subr.bf16.mxu0 %v12747_v48  ;;  %v15259_v48 = vand.u32 4294901760, %v12946_v53  ;;  %v2432_v53 = vld [vmem:[%s12738_s8 + $0x68] sm:$0xff]  ;;  %v13206_v0 = vsub.f32 %v2433_v56, %v2449_v15  ;;  %v13212_v9 = vpack.c.bf16 %v2449_v15, %v2445_v63 }
  0xa3   : > { %1636 = vmatprep.mubr.f32.mxu1 %v12526_v32  ;;  %914 = vmatmul.mubr.f32.gmra.mrb[4].mxu0 %v15258_v20  ;;  %v2443_v50 = vand.u32 4294901760, %v2432_v53  ;;  %v2590_v20 = vand.u32 4294901760, %v13197_v10 }
  0xa4   : > { %919 = vmatprep.mubr.f32.mxu0 %v12526_v32  ;;  %11190 = vmatpush1.bf16.msra.mxu1 %v11189_v17 }
  0xa5   : > { %11192 = vmatprep.subr.bf16.mxu1 %v12758_v55  ;;  %v2435_v55 = vand.u32 4294901760, %v2428_v29  ;;  %v13195_v60 = vsub.f32 %v2432_v53, %v2443_v50  ;;  %v13199_v4 = vpack.c.bf16 %v2447_v24, %v2443_v50  ;;  %4434 = vrot.lane.b32.xlu1 %v13091_v47, %s12529_s28  ;;  %v398_v47 = vld [vmem:[%s15208_s3 + $0x58] sm:$0xff] }
  0xa6   : > { %1640 = vmatmul.mubr.f32.gmra.mrb[4].mxu1 %v12898_v26  ;;  %4436 = vrot.lane.b32.xlu0 %v13125_v18, %s12529_s28  ;;  %s15154_s28 = scalar_lea.hbm %s15210_s5, %s11102_s16 }
  0xa7   : > { %1645 = vmatprep.mubr.f32.mxu1 %v12526_v32  ;;  %923 = vmatmul.mubr.f32.gmra.mrb[6].mxu0 %v15259_v48  ;;  %v2578_v17 = vand.u32 4294901760, %v13195_v60  ;;  %v11267_v46 = vpack.c.bf16 %v13197_v10, %v13195_v60 }
  0xa8   : > { %1017 = vmatprep.mubr.f32.mxu0 %v12526_v32 }
  0xaa   : > { %1649 = vmatmul.mubr.f32.gmra.mrb[6].mxu1 %v12983_v37 }
  0xab   : > { %1743 = vmatprep.mubr.f32.mxu1 %v12526_v32  ;;  %1019 = vmatmul.mubr.f32.vlgmr.msra.gmra.mrb[0].mxu0 %v12822_v31 }
  0xac   : > { %1024 = vmatprep.mubr.f32.mxu0 %v12526_v32  ;;  %11146 = vmatpush1.bf16.msra.mxu0 %v12762_v57  ;;  %v13155_v57 = vpack.c.bf16 %v2439_v34, %v2435_v55  ;;  %v2591_v34 = vsub.f32 %v13197_v10, %v2590_v20 }
  0xad   : > { %11148 = vmatprep.subr.bf16.mxu0 %v12792_v14  ;;  %v13157_v14 = vsub.f32 %v2428_v29, %v2435_v55  ;;  %v2596_v55 = vand.u32 4294901760, %v13206_v0 }
  0xae   : > { %1745 = vmatmul.mubr.f32.vlgmr.msra.gmra.mrb[0].mxu1 %v12828_v35 }
  0xaf   : > { %1750 = vmatprep.mubr.f32.mxu1 %v12526_v32  ;;  %1026 = vmatmul.mubr.f32.gmra.mrb[2].mxu0 %v12830_v36  ;;  %v2597_v11 = vsub.f32 %v13206_v0, %v2596_v55 }
  0xb0   : > { %1031 = vmatprep.mubr.f32.mxu0 %v12526_v32  ;;  %11194 = vmatpush1.bf16.msra.mxu1 %v12775_v7  ;;  %v2427_v7 = vld [vmem:[%s12738_s8 + $0x40] sm:$0xff] }
  0xb1   : > { %11196 = vmatprep.subr.bf16.mxu1 %v12796_v16  ;;  %11150 = vmatpush1.bf16.msra.mxu0 %v12816_v28  ;;  %v2429_v16 = vld [vmem:[%s12738_s8 + $0x50] sm:$0xff]  ;;  %v2554_v28 = vand.u32 4294901760, %v13157_v14  ;;  %v2598_v50 = vand.u32 4294901760, %v2597_v11  ;;  %s12460_s8 = scalar_lea.vmem %s12459_s9, 2048 }
  0xb2   : > { %1752 = vmatmul.mubr.f32.gmra.mrb[2].mxu1 %v12849_v44  ;;  %v2441_v27 = vand.u32 4294901760, %v2429_v16  ;;  %p12462_p8 = scmp.lt.s32.totalorder %s12460_s8, %s12454_s26 }
  0xb3   : > { %1757 = vmatprep.mubr.f32.mxu1 %v12526_v32  ;;  %1033 = vmatmul.mubr.f32.gmra.mrb[4].mxu0 %v12851_v45  ;;  %v2555_v39 = vsub.f32 %v13157_v14, %v2554_v28 }
  0xb4   : > { %1038 = vmatprep.mubr.f32.mxu0 %v12526_v32  ;;  %11198 = vmatpush1.bf16.msra.mxu1 %v12824_v33  ;;  %v2437_v33 = vand.u32 4294901760, %v2427_v7  ;;  %v13190_v6 = vsub.f32 %v2429_v16, %v2441_v27  ;;  %p12463_p11 = por %p12462_p8, %p12461_p7 }
  0xb5   : > { %11248 = vmatprep.subr.bf16.mxu1 %v13155_v57  ;;  %v2556_v23 = vand.u32 4294901760, %v2555_v39  ;;  %v11263_v39 = vpack.c.bf16 %v13159_v43, %v13157_v14 }
  0xb6   : > { %1759 = vmatmul.mubr.f32.gmra.mrb[4].mxu1 %v12875_v2  ;;  %v13188_v41 = vsub.f32 %v2427_v7, %v2437_v33  ;;  %v13193_v58 = vpack.c.bf16 %v2441_v27, %v2437_v33  ;;  %v2572_v8 = vand.u32 4294901760, %v13190_v6  ;;  %v2592_v27 = vand.u32 4294901760, %v2591_v34  ;;  %p12464_p12 = pnand %p12463_p11, %p12457_p4 }
  0xb7   : > { %1764 = vmatprep.mubr.f32.mxu1 %v12526_v32  ;;  %1040 = vmatmul.mubr.f32.gmra.mrb[6].mxu0 %v12933_v59 }
  0xb8   : > { %1118 = vmatprep.mubr.f32.mxu0 %v12526_v32  ;;  %v2560_v38 = vand.u32 4294901760, %v13188_v41  ;;  %v2573_v29 = vsub.f32 %v13190_v6, %v2572_v8 }
  0xba   : > { %1766 = vmatmul.mubr.f32.gmra.mrb[6].mxu1 %v12957_v1  ;;  %v2561_v48 = vsub.f32 %v13188_v41, %v2560_v38  ;;  %v2574_v16 = vand.u32 4294901760, %v2573_v29 }
  0xbb   : > { %1844 = vmatprep.mubr.f32.mxu1 %v12526_v32  ;;  %1120 = vmatmul.mubr.f32.vlgmr.msra.gmra.mrb[0].mxu0 %v12822_v31  ;;  %v13204_v31 = vsub.f32 %v2431_v49, %v2445_v63 }
  0xbc   : > { %1125 = vmatprep.mubr.f32.mxu0 %v12526_v32  ;;  %v2562_v7 = vand.u32 4294901760, %v2561_v48 }
  0xbd   : > { %v2584_v30 = vand.u32 4294901760, %v13204_v31 }
  0xbe   : > { %1846 = vmatmul.mubr.f32.vlgmr.msra.gmra.mrb[0].mxu1 %v12828_v35  ;;  %v11257_v49 = vpack.c.bf16 %v2574_v16, %v2562_v7 }
  0xbf   : > { %1851 = vmatprep.mubr.f32.mxu1 %v12526_v32  ;;  %1127 = vmatmul.mubr.f32.gmra.mrb[2].mxu0 %v12830_v36  ;;  %v11255_v36 = vpack.c.bf16 %v2568_v12, %v2556_v23  ;;  %v2585_v53 = vsub.f32 %v13204_v31, %v2584_v30 }
  0xc0   : > { %1132 = vmatprep.mubr.f32.mxu0 %v12526_v32  ;;  %11250 = vmatpush1.bf16.msra.mxu1 %v13193_v58 }
  0xc1   : > { %11252 = vmatprep.subr.bf16.mxu1 %v13199_v4 }
  0xc2   : > { %1853 = vmatmul.mubr.f32.gmra.mrb[2].mxu1 %v12849_v44 }
  0xc3   : > { %1858 = vmatprep.mubr.f32.mxu1 %v12526_v32  ;;  %1134 = vmatmul.mubr.f32.gmra.mrb[4].mxu0 %v12851_v45  ;;  %v2579_v45 = vsub.f32 %v13195_v60, %v2578_v17 }
  0xc4   : > { %1139 = vmatprep.mubr.f32.mxu0 %v12526_v32  ;;  %11254 = vmatpush1.bf16.msra.mxu1 %v13212_v9 }
  0xc5   : > { %11256 = vmatprep.subr.bf16.mxu1 %v11255_v36  ;;  %v2580_v33 = vand.u32 4294901760, %v2579_v45 }
  0xc6   : > { %1860 = vmatmul.mubr.f32.gmra.mrb[4].mxu1 %v12875_v2 }
  0xc7   : > { %1865 = vmatprep.mubr.f32.mxu1 %v12526_v32  ;;  %1141 = vmatmul.mubr.f32.gmra.mrb[6].mxu0 %v12933_v59  ;;  %v2586_v59 = vand.u32 4294901760, %v2585_v53  ;;  %v11259_v24 = vpack.c.bf16 %v2592_v27, %v2580_v33 }
  0xc8   : > { %1956 = vmatprep.mubr.f32.mxu0 %v12526_v32 }
  0xc9   : > { %v11261_v56 = vpack.c.bf16 %v2598_v50, %v2586_v59 }
  0xca   : > { %1867 = vmatmul.mubr.f32.gmra.mrb[6].mxu1 %v12957_v1 }
  0xcb   : > { %2507 = vmatprep.mubr.f32.mxu1 %v12526_v32 }
  0xce   : > { %2513 = vmatmul.mubr.f32.vlgmr.msra.gmra.mrb[8].mxu1 %v12890_v21  ;;  %v11265_v21 = vpack.c.bf16 %v13190_v6, %v13188_v41 }
  0xcf   : > { %2518 = vmatprep.mubr.f32.mxu1 %v12526_v32  ;;  %11258 = vmatpush1.bf16.msra.mxu1 %v11257_v49 }
  0xd0   : > { %11260 = vmatprep.subr.bf16.mxu1 %v11259_v24 }
  0xd2   : > { %2524 = vmatmul.mubr.f32.gmra.mrb[10].mxu1 %v12909_v40  ;;  %v11269_v40 = vpack.c.bf16 %v13206_v0, %v13204_v31 }
  0xd3   : > { %2529 = vmatprep.mubr.f32.mxu1 %v12526_v32  ;;  %11262 = vmatpush1.bf16.msra.mxu1 %v11261_v56 }
  0xd4   : > { %11264 = vmatprep.subr.bf16.mxu1 %v11263_v39 }
  0xd6   : > { %2535 = vmatmul.mubr.f32.gmra.mrb[12].mxu1 %v12928_v25  ;;  %v11279_v25 = vpack.c.bf16 %v2566_v62, %v2554_v28 }
  0xd7   : > { %2540 = vmatprep.mubr.f32.mxu1 %v12526_v32 }
  0xda   : > { %2546 = vmatmul.mubr.f32.gmra.mrb[14].mxu1 %v12995_v52 }
  0xdb   : > { %2656 = vmatprep.mubr.f32.mxu1 %v12526_v32 }
  0xde   : > { %2658 = vmatmul.mubr.f32.vlgmr.msra.gmra.mrb[8].mxu1 %v12828_v35 }
  0xdf   : > { %2663 = vmatprep.mubr.f32.mxu1 %v12526_v32  ;;  %11266 = vmatpush1.bf16.msra.mxu1 %v11265_v21 }
  0xe0   : > { %11268 = vmatprep.subr.bf16.mxu1 %v11267_v46 }
  0xe2   : > { %2665 = vmatmul.mubr.f32.gmra.mrb[10].mxu1 %v12849_v44 }
  0xe3   : > { %2670 = vmatprep.mubr.f32.mxu1 %v12526_v32  ;;  %11270 = vmatpush1.bf16.msra.mxu1 %v11269_v40 }
  0xe4   : > { %11272 = vmatprep.subr.bf16.mxu1 %v13155_v57 }
  0xe6   : > { %2672 = vmatmul.mubr.f32.gmra.mrb[12].mxu1 %v12875_v2 }
  0xe7   : > { %2677 = vmatprep.mubr.f32.mxu1 %v12526_v32 }
  0xea   : > { %2679 = vmatmul.mubr.f32.gmra.mrb[14].mxu1 %v12957_v1 }
  0xeb   : > { %2765 = vmatprep.mubr.f32.mxu1 %v12526_v32 }
  0xee   : > { %2768 = vmatmul.mubr.f32.vlgmr.msra.gmra.mrb[8].mxu1 %v12844_v42  ;;  %v11281_v42 = vpack.c.bf16 %v2572_v8, %v2560_v38 }
  0xef   : > { %2773 = vmatprep.mubr.f32.mxu1 %v12526_v32  ;;  %11274 = vmatpush1.bf16.msra.mxu1 %v13193_v58 }
  0xf0   : > { %11276 = vmatprep.subr.bf16.mxu1 %v13199_v4 }
  0xf2   : > { %2776 = vmatmul.mubr.f32.gmra.mrb[10].mxu1 %v12864_v61  ;;  %v11283_v61 = vpack.c.bf16 %v2590_v20, %v2578_v17 }
  0xf3   : > { %2781 = vmatprep.mubr.f32.mxu1 %v12526_v32  ;;  %11278 = vmatpush1.bf16.msra.mxu1 %v13212_v9 }
  0xf4   : > { %11280 = vmatprep.subr.bf16.mxu1 %v11279_v25 }
  0xf6   : > { %2784 = vmatmul.mubr.f32.gmra.mrb[12].mxu1 %v12887_v13  ;;  %v11285_v13 = vpack.c.bf16 %v2596_v55, %v2584_v30 }
  0xf7   : > { %2789 = vmatprep.mubr.f32.mxu1 %v12526_v32 }
  0xfa   : > { %2792 = vmatmul.mubr.f32.gmra.mrb[14].mxu1 %v12969_v3 }
  0xfb   : > { %2870 = vmatprep.mubr.f32.mxu1 %v12526_v32 }
  0xfe   : > { %2874 = vmatmul.mubr.f32.vlgmr.msra.gmra.mrb[8].mxu1 %v12860_v54  ;;  %v427_v54 = vpop.permute.xlu0 %426 }
  0xff   : > { %2879 = vmatprep.mubr.f32.mxu1 %v12526_v32  ;;  %11282 = vmatpush1.bf16.msra.mxu1 %v11281_v42 }
 0x100   : > { %11284 = vmatprep.subr.bf16.mxu1 %v11283_v61 }
 0x102   : > { %2883 = vmatmul.mubr.f32.gmra.mrb[10].mxu1 %v12883_v5  ;;  %v411_v5 = vld [vmem:[%s15208_s3 + $0xc0] sm:$0xff] }
 0x103   : > { %2888 = vmatprep.mubr.f32.mxu1 %v12526_v32  ;;  %11286 = vmatpush1.bf16.msra.mxu1 %v11285_v13 }
 0x104   : > { %11288 = vmatprep.subr.bf16.mxu1 %v13155_v57 }
 0x106   : > { %2892 = vmatmul.mubr.f32.gmra.mrb[12].mxu1 %v12898_v26 }
 0x107   : > { %2897 = vmatprep.mubr.f32.mxu1 %v12526_v32  ;;  %v432_v26 = vpop.permute.xlu0 %431 }
 0x10a   : > { %2901 = vmatmul.mubr.f32.gmra.mrb[14].mxu1 %v12983_v37 }
 0x10b   : > { %2995 = vmatprep.mubr.f32.mxu1 %v12526_v32 }
 0x10c   : > { %v437_v43 = vpop.permute.xlu0 %436 }
 0x10e   : > { %2997 = vmatmul.mubr.f32.vlgmr.msra.gmra.mrb[8].mxu1 %v12828_v35 }
 0x10f   : > { %3002 = vmatprep.mubr.f32.mxu1 %v12526_v32  ;;  %11290 = vmatpush1.bf16.msra.mxu1 %v13193_v58 }
 0x110   : > { %11292 = vmatprep.subr.bf16.mxu1 %v13199_v4 }
 0x112   : > { %3004 = vmatmul.mubr.f32.gmra.mrb[10].mxu1 %v12849_v44 }
 0x113   : > { %3009 = vmatprep.mubr.f32.mxu1 %v12526_v32  ;;  %11294 = vmatpush1.bf16.msra.mxu1 %v13212_v9 }
 0x116   : > { %3011 = vmatmul.mubr.f32.gmra.mrb[12].mxu1 %v12875_v2 }
 0x117   : > { %3016 = vmatprep.mubr.f32.mxu1 %v12526_v32  ;;  %v13358_v36 = vpop.permute.xlu0 %1164 }
 0x11a   : > { %3018 = vmatmul.mubr.f32.gmra.mrb[14].mxu1 %v12957_v1 }
 0x11b   : > { %3096 = vmatprep.mubr.f32.mxu1 %v12526_v32 }
 0x11e   : > { %3098 = vmatmul.mubr.f32.vlgmr.msra.gmra.mrb[8].mxu1 %v12828_v35  ;;  %v13331_v35 = vpop.permute.xlu1 %1156 }
 0x11f   : > { %3103 = vmatprep.mubr.f32.mxu1 %v12526_v32 }
 0x122   : > { %3105 = vmatmul.mubr.f32.gmra.mrb[10].mxu1 %v12849_v44  ;;  %v1882_v44 = vsel %vm444_vm0, %v411_v5, 0  ;;  %v13336_v52 = vpop.permute.xlu1 %1160 }
 0x123   : > { %3110 = vmatprep.mubr.f32.mxu1 %v12526_v32  ;;  %v13334_v3 = vand.u32 4294901760, %v1882_v44 }
 0x125   : > { %v13344_v6 = vsub.f32 %v1882_v44, %v13334_v3 }
 0x126   : > { %3112 = vmatmul.mubr.f32.gmra.mrb[12].mxu1 %v12875_v2  ;;  %v442_v12 = vpop.permute.xlu1 %441 }
 0x127   : > { %3117 = vmatprep.mubr.f32.mxu1 %v12526_v32  ;;  %v13355_v9 = vand.u32 4294901760, %v13344_v6 }
 0x129   : > { %v1960_v59 = vsub.f32 %v13344_v6, %v13355_v9 }
 0x12a   : > { %3119 = vmatmul.mubr.f32.gmra.mrb[14].mxu1 %v12957_v1  ;;  %v13375_v56 = vpop.permute.xlu1 %1168 }
 0x12b   : > { %4513 = vmatprep.mubr.f32.mxu1 %v12526_v32 }
 0x18e   : > { %v1121_v37 = vpop.f32.mrb[0].mxu0 }
 0x18f   : > { %v1123_v2 = vpop.f32.mrb[1].mxu0  ;;  %v13338_v57 = vadd.f32 %v1121_v37, %v427_v54 }
 0x190   : > { %v13340_v14 = vadd.f32 %v1123_v2, %v427_v54 }
 0x191   : > { %v1847_v1 = vpop.f32.mrb[0].mxu1 }
 0x192   : > { %v11783_v28 = vadd.f32 %v1847_v1, %v13331_v35  ;;  %v1849_v62 = vpop.f32.mrb[1].mxu1  ;;  %v1128_v41 = vpop.f32.mrb[2].mxu0 }
 0x193   : > { %v11784_v63 = vadd.f32 %v1849_v62, %v13331_v35  ;;  %v1130_v58 = vpop.f32.mrb[3].mxu0  ;;  %v13348_v10 = vadd.f32 %v1128_v41, %v432_v26 }
 0x194   : > { %v1873_v60 = vmul.f32 %v11783_v28, %v13338_v57  ;;  %v13351_v23 = vadd.f32 %v1130_v58, %v432_v26 }
 0x195   : > { %v1874_v15 = vmul.f32 %v11784_v63, %v13340_v14  ;;  %v1854_v4 = vpop.f32.mrb[2].mxu1 }
 0x196   : > { %v1886_v31 = vand.u32 4294901760, %v1873_v60  ;;  %v11785_v0 = vadd.f32 %v1854_v4, %v13336_v52  ;;  %v1856_v38 = vpop.f32.mrb[3].mxu1  ;;  %v1135_v8 = vpop.f32.mrb[4].mxu0 }
 0x197   : > { %v1884_v17 = vand.u32 4294901760, %v1874_v15  ;;  %v11786_v20 = vadd.f32 %v1856_v38, %v13336_v52  ;;  %v1137_v48 = vpop.f32.mrb[5].mxu0  ;;  %v13363_v55 = vadd.f32 %v1135_v8, %v437_v43 }
 0x198   : > { %v13360_v29 = vsub.f32 %v1873_v60, %v1886_v31  ;;  %v1875_v30 = vmul.f32 %v11785_v0, %v13348_v10  ;;  %v13368_v16 = vadd.f32 %v1137_v48, %v437_v43 }
 0x199   : > { %v13365_v45 = vsub.f32 %v1874_v15, %v1884_v17  ;;  %v1876_v34 = vmul.f32 %v11786_v20, %v13351_v23  ;;  %v1861_v7 = vpop.f32.mrb[4].mxu1 }
 0x19a   : > { %v1976_v53 = vand.u32 4294901760, %v13360_v29  ;;  %v1890_v11 = vand.u32 4294901760, %v1875_v30  ;;  %v11787_v33 = vadd.f32 %v1861_v7, %v13358_v36  ;;  %v1863_v27 = vpop.f32.mrb[5].mxu1  ;;  %v1142_v49 = vpop.f32.mrb[6].mxu0 }
 0x19b   : > { %v1888_v50 = vand.u32 4294901760, %v1876_v34  ;;  %v11788_v24 = vadd.f32 %v1863_v27, %v13358_v36  ;;  %v13377_v39 = vadd.f32 %v1142_v49, %v442_v12  ;;  %v1144_v21 = vpop.f32.mrb[7].mxu0  ;;  %v1970_v46 = vand.u32 4294901760, %v13365_v45 }
 0x19c   : > { %v1977_v40 = vsub.f32 %v13360_v29, %v1976_v53  ;;  %v13381_v25 = vpack.c.bf16 %v1890_v11, %v1886_v31  ;;  %v13383_v42 = vsub.f32 %v1875_v30, %v1890_v11  ;;  %v1877_v61 = vmul.f32 %v11787_v33, %v13363_v55 }
 0x19d   : > { %v13386_v13 = vsub.f32 %v1876_v34, %v1888_v50  ;;  %v1878_v54 = vmul.f32 %v11788_v24, %v13368_v16  ;;  %v1868_v5 = vpop.f32.mrb[6].mxu1  ;;  %v13389_v26 = vadd.f32 %v1144_v21, %v442_v12  ;;  %v13391_v44 = vpack.c.bf16 %v1888_v50, %v1884_v17 }
 0x19e   : > { %v1988_v37 = vand.u32 4294901760, %v13383_v42  ;;  %v1894_v2 = vand.u32 4294901760, %v1877_v61  ;;  %v11789_v1 = vadd.f32 %v1868_v5, %v13375_v56  ;;  %v1870_v43 = vpop.f32.mrb[7].mxu1  ;;  %v1971_v28 = vsub.f32 %v13365_v45, %v1970_v46 }
 0x19f   : > { %v1892_v62 = vand.u32 4294901760, %v1878_v54  ;;  %v11790_v41 = vadd.f32 %v1870_v43, %v13375_v56  ;;  %11200 = vmatprep.subr.bf16.mxu0 %v13391_v44  ;;  %v1982_v63 = vand.u32 4294901760, %v13386_v13  ;;  %v1978_v58 = vand.u32 4294901760, %v1977_v40 }
 0x1a0   : > { %v1989_v60 = vsub.f32 %v13383_v42, %v1988_v37  ;;  %v1999_v15 = vsub.f32 %v1877_v61, %v1894_v2  ;;  %v1879_v4 = vmul.f32 %v11789_v1, %v13377_v39  ;;  %11202 = vmatpush1.bf16.msra.mxu0 %v13381_v25  ;;  %v1972_v12 = vand.u32 4294901760, %v1971_v28 }
 0x1a1   : > { %v1993_v31 = vsub.f32 %v1878_v54, %v1892_v62  ;;  %v1880_v0 = vmul.f32 %v11790_v41, %v13389_v26  ;;  %v1983_v38 = vsub.f32 %v13386_v13, %v1982_v63  ;;  %v11215_v8 = vpack.c.bf16 %v13386_v13, %v13365_v45 }
 0x1a2   : > { %v2000_v17 = vand.u32 4294901760, %v1999_v15  ;;  %v1898_v20 = vand.u32 4294901760, %v1879_v4  ;;  %v1990_v48 = vand.u32 4294901760, %v1989_v60  ;;  %v11217_v30 = vpack.c.bf16 %v13383_v42, %v13360_v29 }
 0x1a3   : > { %v1896_v34 = vand.u32 4294901760, %v1880_v0  ;;  %v1984_v7 = vand.u32 4294901760, %v1983_v38  ;;  %v1994_v11 = vand.u32 4294901760, %v1993_v31  ;;  %v11231_v33 = vpack.c.bf16 %v1982_v63, %v1970_v46 }
 0x1a4   : > { %v11205_v27 = vpack.c.bf16 %v1898_v20, %v1894_v2  ;;  %v2011_v49 = vsub.f32 %v1879_v4, %v1898_v20  ;;  %v11209_v50 = vpack.c.bf16 %v1990_v48, %v1978_v58  ;;  %v2001_v61 = vsub.f32 %v1999_v15, %v2000_v17 }
 0x1a5   : > { %v2005_v24 = vsub.f32 %v1880_v0, %v1896_v34  ;;  %v11203_v21 = vpack.c.bf16 %v1896_v34, %v1892_v62  ;;  %v11207_v40 = vpack.c.bf16 %v1984_v7, %v1972_v12  ;;  %v11233_v45 = vpack.c.bf16 %v1988_v37, %v1976_v53 }
 0x1a6   : > { %v2012_v54 = vand.u32 4294901760, %v2011_v49  ;;  %v11221_v5 = vpack.c.bf16 %v2011_v49, %v1999_v15  ;;  %v13408_v13 = vand.u32 4294901760, %v1960_v59  ;;  %v1995_v1 = vsub.f32 %v1993_v31, %v1994_v11 }
 0x1a7   : > { %11204 = vmatprep.subr.bf16.mxu0 %v11203_v21  ;;  %v2006_v43 = vand.u32 4294901760, %v2005_v24  ;;  %v11219_v29 = vpack.c.bf16 %v2005_v24, %v1993_v31  ;;  %v2002_v41 = vand.u32 4294901760, %v2001_v61 }
 0x1a8   : > { %v2013_v42 = vsub.f32 %v2011_v49, %v2012_v54  ;;  %11206 = vmatpush1.bf16.msra.mxu0 %v11205_v27  ;;  %v11237_v28 = vpack.c.bf16 %v2012_v54, %v2000_v17  ;;  %v1996_v62 = vand.u32 4294901760, %v1995_v1 }
 0x1a9   : > { %11208 = vmatprep.subr.bf16.mxu0 %v11207_v40  ;;  %v2007_v46 = vsub.f32 %v2005_v24, %v2006_v43  ;;  %v11235_v2 = vpack.c.bf16 %v2006_v43, %v1994_v11 }
 0x1aa   : > { %v2014_v63 = vand.u32 4294901760, %v2013_v42 }
 0x1ab   : > { %1962 = vmatmul.mubr.f32.vlgmr.msra.gmra.mrb[8].mxu0 %v13408_v13  ;;  %v2008_v58 = vand.u32 4294901760, %v2007_v46 }
 0x1ac   : > { %11210 = vmatpush1.bf16.msra.mxu0 %v11209_v50  ;;  %v11213_v53 = vpack.c.bf16 %v2014_v63, %v2002_v41  ;;  %2072 = vmatprep.mubr.f32.mxu0 %v12526_v32 }
 0x1ad   : > { %v11211_v59 = vpack.c.bf16 %v2008_v58, %v1996_v62 }
 0x1af   : > { %11212 = vmatprep.subr.bf16.mxu0 %v11211_v59 }
 0x1b0   : > { %11214 = vmatpush1.bf16.msra.mxu0 %v11213_v53 }
 0x1b1   : > { %11216 = vmatprep.subr.bf16.mxu0 %v11215_v8 }
 0x1b3   : > { %2074 = vmatmul.mubr.f32.vlgmr.msra.gmra.mrb[8].mxu0 %v13334_v3 }
 0x1b4   : > { %11218 = vmatpush1.bf16.msra.mxu0 %v11217_v30  ;;  %2160 = vmatprep.mubr.f32.mxu0 %v12526_v32 }
 0x1b5   : > { %11220 = vmatprep.subr.bf16.mxu0 %v11219_v29 }
 0x1b8   : > { %11222 = vmatpush1.bf16.msra.mxu0 %v11221_v5 }
 0x1b9   : > { %11224 = vmatprep.subr.bf16.mxu0 %v13391_v44 }
 0x1bb   : > { %2163 = vmatmul.mubr.f32.vlgmr.msra.gmra.mrb[8].mxu0 %v13344_v6 }
 0x1bc   : > { %11226 = vmatpush1.bf16.msra.mxu0 %v13381_v25  ;;  %2241 = vmatprep.mubr.f32.mxu0 %v12526_v32 }
 0x1bd   : > { %11228 = vmatprep.subr.bf16.mxu0 %v11203_v21 }
 0x1c0   : > { %11230 = vmatpush1.bf16.msra.mxu0 %v11205_v27 }
 0x1c1   : > { %11232 = vmatprep.subr.bf16.mxu0 %v11231_v33 }
 0x1c3   : > { %2245 = vmatmul.mubr.f32.vlgmr.msra.gmra.mrb[8].mxu0 %v13355_v9 }
 0x1c4   : > { %11234 = vmatpush1.bf16.msra.mxu0 %v11233_v45  ;;  %2339 = vmatprep.mubr.f32.mxu0 %v12526_v32 }
 0x1c5   : > { %11236 = vmatprep.subr.bf16.mxu0 %v11235_v2 }
 0x1c8   : > { %11238 = vmatpush1.bf16.msra.mxu0 %v11237_v28 }
 0x1c9   : > { %11240 = vmatprep.subr.bf16.mxu0 %v13391_v44 }
 0x1cb   : > { %2341 = vmatmul.mubr.f32.vlgmr.msra.gmra.mrb[8].mxu0 %v13334_v3 }
 0x1cc   : > { %11242 = vmatpush1.bf16.msra.mxu0 %v13381_v25  ;;  %2419 = vmatprep.mubr.f32.mxu0 %v12526_v32 }
 0x1cd   : > { %11244 = vmatprep.subr.bf16.mxu0 %v11203_v21 }
 0x1d0   : > { %11246 = vmatpush1.bf16.msra.mxu0 %v11205_v27 }
 0x1d3   : > { %2421 = vmatmul.mubr.f32.vlgmr.msra.gmra.mrb[8].mxu0 %v13334_v3 }
 0x1d4   : > { %3205 = vmatprep.mubr.f32.mxu0 %v12526_v32 }
 0x1f1   : > { %v3099_v37 = vpop.f32.mrb[8].mxu1 }
 0x1f2   : > { %v11791_v60 = vadd.f32 %v3099_v37, %v13331_v35  ;;  %v3101_v15 = vpop.f32.mrb[9].mxu1 }
 0x1f3   : > { %v11792_v4 = vadd.f32 %v3101_v15, %v13331_v35 }
 0x1f4   : > { %v3125_v44 = vmul.f32 %v11791_v60, %v13338_v57 }
 0x1f5   : > { %v3126_v12 = vmul.f32 %v11792_v4, %v13340_v14  ;;  %v3106_v31 = vpop.f32.mrb[10].mxu1 }
 0x1f6   : > { %v3135_v25 = vand.u32 4294901760, %v3125_v44  ;;  %v11793_v0 = vadd.f32 %v3106_v31, %v13336_v52  ;;  %v3108_v38 = vpop.f32.mrb[11].mxu1 }
 0x1f7   : > { %v3133_v8 = vand.u32 4294901760, %v3126_v12  ;;  %v11794_v17 = vadd.f32 %v3108_v38, %v13336_v52 }
 0x1f8   : > { %v13432_v20 = vsub.f32 %v3125_v44, %v3135_v25  ;;  %v3127_v48 = vmul.f32 %v11793_v0, %v13348_v10 }
 0x1f9   : > { %v13435_v30 = vsub.f32 %v3126_v12, %v3133_v8  ;;  %v3128_v35 = vmul.f32 %v11794_v17, %v13351_v23  ;;  %v3113_v34 = vpop.f32.mrb[12].mxu1 }
 0x1fa   : > { %v3225_v57 = vand.u32 4294901760, %v13432_v20  ;;  %v3139_v14 = vand.u32 4294901760, %v3127_v48  ;;  %v11795_v7 = vadd.f32 %v3113_v34, %v13358_v36  ;;  %v3115_v11 = vpop.f32.mrb[13].mxu1 }
 0x1fb   : > { %v3137_v33 = vand.u32 4294901760, %v3128_v35  ;;  %v11796_v27 = vadd.f32 %v3115_v11, %v13358_v36  ;;  %v3219_v52 = vand.u32 4294901760, %v13435_v30 }
 0x1fc   : > { %v3226_v49 = vsub.f32 %v13432_v20, %v3225_v57  ;;  %v13443_v50 = vpack.c.bf16 %v3139_v14, %v3135_v25  ;;  %v13445_v10 = vsub.f32 %v3127_v48, %v3139_v14  ;;  %v3129_v23 = vmul.f32 %v11795_v7, %v13363_v55 }
 0x1fd   : > { %v3230_v24 = vsub.f32 %v3128_v35, %v3137_v33  ;;  %v3130_v21 = vmul.f32 %v11796_v27, %v13368_v16  ;;  %v3120_v40 = vpop.f32.mrb[14].mxu1  ;;  %v13449_v61 = vpack.c.bf16 %v3137_v33, %v3133_v8  ;;  %v3220_v54 = vsub.f32 %v13435_v30, %v3219_v52 }
 0x1fe   : > { %v3237_v36 = vand.u32 4294901760, %v13445_v10  ;;  %v3143_v5 = vand.u32 4294901760, %v3129_v23  ;;  %v11797_v45 = vadd.f32 %v3120_v40, %v13375_v56  ;;  %v3122_v1 = vpop.f32.mrb[15].mxu1  ;;  %v3227_v43 = vand.u32 4294901760, %v3226_v49 }
 0x1ff   : > { %v3141_v29 = vand.u32 4294901760, %v3130_v21  ;;  %v11798_v42 = vadd.f32 %v3122_v1, %v13375_v56  ;;  %11296 = vmatprep.subr.bf16.mxu0 %v13449_v61  ;;  %v3221_v55 = vand.u32 4294901760, %v3220_v54  ;;  %v3231_v28 = vand.u32 4294901760, %v3230_v24  ;;  %v3711_v1 = vld [vmem:[%s13494_s23 + $0x38] sm:$0xff] }
 0x200   : > { %v3238_v16 = vsub.f32 %v13445_v10, %v3237_v36  ;;  %v3248_v46 = vsub.f32 %v3129_v23, %v3143_v5  ;;  %v3131_v2 = vmul.f32 %v11797_v45, %v13377_v39  ;;  %11298 = vmatpush1.bf16.msra.mxu0 %v13443_v50  ;;  %v11311_v41 = vpack.c.bf16 %v3230_v24, %v13435_v30  ;;  %v397_v23 = vld [vmem:[%s15208_s3 + $0x50] sm:$0xff]  ;;  %v3709_v45 = vld [vmem:[%s13494_s23 + $0x28] sm:$0xff] }
 0x201   : > { %v3242_v63 = vsub.f32 %v3130_v21, %v3141_v29  ;;  %v3132_v62 = vmul.f32 %v11798_v42, %v13389_v26  ;;  %v3232_v58 = vsub.f32 %v3230_v24, %v3231_v28  ;;  %v11313_v56 = vpack.c.bf16 %v13445_v10, %v13432_v20  ;;  %v3707_v24 = vld [vmem:[%s13494_s23 + $0x18] sm:$0xff]  ;;  %v3704_v21 = vld [vmem:[%s13494_s23] sm:$0xff] }
 0x202   : > { %v3249_v53 = vand.u32 4294901760, %v3248_v46  ;;  %v3147_v59 = vand.u32 4294901760, %v3131_v2  ;;  %v3239_v37 = vand.u32 4294901760, %v3238_v16  ;;  %v11327_v60 = vpack.c.bf16 %v3231_v28, %v3219_v52 }
 0x203   : > { %v3145_v15 = vand.u32 4294901760, %v3132_v62  ;;  %v3233_v4 = vand.u32 4294901760, %v3232_v58  ;;  %v3243_v44 = vand.u32 4294901760, %v3242_v63  ;;  %v11329_v12 = vpack.c.bf16 %v3237_v36, %v3225_v57  ;;  %v3706_v36 = vld [vmem:[%s13494_s23 + $0x10] sm:$0xff] }
 0x204   : > { %v13463_v39 = vpack.c.bf16 %v3147_v59, %v3143_v5  ;;  %v3260_v31 = vsub.f32 %v3131_v2, %v3147_v59  ;;  %v11305_v25 = vpack.c.bf16 %v3239_v37, %v3227_v43  ;;  %v3250_v8 = vsub.f32 %v3248_v46, %v3249_v53 }
 0x205   : > { %v3254_v0 = vsub.f32 %v3132_v62, %v3145_v15  ;;  %v13465_v38 = vpack.c.bf16 %v3145_v15, %v3141_v29  ;;  %v11303_v26 = vpack.c.bf16 %v3233_v4, %v3221_v55  ;;  %v3244_v20 = vsub.f32 %v3242_v63, %v3243_v44  ;;  %v3708_v55 = vld [vmem:[%s13494_s23 + $0x20] sm:$0xff]  ;;  %v3710_v62 = vld [vmem:[%s13494_s23 + $0x30] sm:$0xff] }
 0x206   : > { %v3261_v17 = vand.u32 4294901760, %v3260_v31  ;;  %v11317_v48 = vpack.c.bf16 %v3260_v31, %v3248_v46  ;;  %v3251_v11 = vand.u32 4294901760, %v3250_v8  ;;  %v3744_v54 = vand.u32 4294901760, %v3707_v24 }
 0x207   : > { %11300 = vmatprep.subr.bf16.mxu0 %v13465_v38  ;;  %v3255_v30 = vand.u32 4294901760, %v3254_v0  ;;  %v11315_v35 = vpack.c.bf16 %v3254_v0, %v3242_v63  ;;  %v3245_v27 = vand.u32 4294901760, %v3244_v20  ;;  %v3742_v5 = vand.u32 4294901760, %v3704_v21 }
 0x208   : > { %v3262_v34 = vsub.f32 %v3260_v31, %v3261_v17  ;;  %11302 = vmatpush1.bf16.msra.mxu0 %v13463_v39  ;;  %v11333_v57 = vpack.c.bf16 %v3261_v17, %v3249_v53  ;;  %v3746_v43 = vand.u32 4294901760, %v3706_v36  ;;  %v3748_v29 = vand.u32 4294901760, %v3709_v45 }
 0x209   : > { %11304 = vmatprep.subr.bf16.mxu0 %v11303_v26  ;;  %v3256_v14 = vsub.f32 %v3254_v0, %v3255_v30  ;;  %v11331_v7 = vpack.c.bf16 %v3255_v30, %v3243_v44  ;;  %v3752_v42 = vand.u32 4294901760, %v3711_v1  ;;  %v3735_v46 = vsel %vm444_vm0, %v397_v23, 0 }
 0x20a   : > { %v3263_v33 = vand.u32 4294901760, %v3262_v34  ;;  %v13522_v63 = vsub.f32 %v3704_v21, %v3742_v5  ;;  %v13528_v58 = vsub.f32 %v3706_v36, %v3746_v43  ;;  %v3750_v53 = vand.u32 4294901760, %v3708_v55 }
 0x20b   : > { %3211 = vmatmul.mubr.f32.vlgmr.msra.gmra.mrb[10].mxu0 %v13408_v13  ;;  %v3257_v52 = vand.u32 4294901760, %v3256_v14  ;;  %v396_v13 = vld [vmem:[%s15208_s3 + $0x48] sm:$0xff]  ;;  %v13537_v59 = vsub.f32 %v3709_v45, %v3748_v29  ;;  %v13547_v4 = vsub.f32 %v3711_v1, %v3752_v42  ;;  %v3754_v44 = vand.u32 4294901760, %v3710_v62 }
 0x20c   : > { %11306 = vmatpush1.bf16.msra.mxu0 %v11305_v25  ;;  %v11309_v49 = vpack.c.bf16 %v3263_v33, %v3251_v11  ;;  %3321 = vmatprep.mubr.f32.mxu0 %v12526_v32  ;;  %v3732_v51 = vsel %vm444_vm0, %v396_v13, 0  ;;  %v13554_v31 = vsub.f32 %v3708_v55, %v3750_v53  ;;  %v3738_v17 = vsel %vm444_vm0, %v398_v47, 0 }
 0x20d   : > { %v11307_v10 = vpack.c.bf16 %v3257_v52, %v3245_v27  ;;  %v13539_v37 = vand.u32 4294901760, %v3732_v51  ;;  %v13564_v26 = vsub.f32 %v3710_v62, %v3754_v44  ;;  %v13589_v11 = vpack.c.bf16 %v3754_v44, %v3750_v53 }
 0x20e   : > { %v3883_v27 = vand.u32 4294901760, %v13537_v59  ;;  %v3889_v23 = vand.u32 4294901760, %v13554_v31 }
 0x20f   : > { %11308 = vmatprep.subr.bf16.mxu0 %v11307_v10  ;;  %v13557_v25 = vsub.f32 %v3732_v51, %v13539_v37 }
 0x210   : > { %11310 = vmatpush1.bf16.msra.mxu0 %v11309_v49  ;;  %v3895_v49 = vand.u32 4294901760, %v13547_v4  ;;  %v3884_v13 = vsub.f32 %v13537_v59, %v3883_v27  ;;  %v3890_v36 = vsub.f32 %v13554_v31, %v3889_v23 }
 0x211   : > { %11312 = vmatprep.subr.bf16.mxu0 %v11311_v41  ;;  %v13520_v41 = vpack.c.bf16 %v3746_v43, %v3742_v5  ;;  %v13581_v34 = vand.u32 4294901760, %v13557_v25 }
 0x212   : > { %v3896_v21 = vsub.f32 %v13547_v4, %v3895_v49  ;;  %v3891_v43 = vand.u32 4294901760, %v3890_v36 }
 0x213   : > { %3323 = vmatmul.mubr.f32.vlgmr.msra.gmra.mrb[10].mxu0 %v13334_v3 }
 0x214   : > { %11314 = vmatpush1.bf16.msra.mxu0 %v11313_v56  ;;  %3409 = vmatprep.mubr.f32.mxu0 %v12526_v32  ;;  %v13530_v56 = vpack.c.bf16 %v3752_v42, %v3748_v29  ;;  %v3897_v5 = vand.u32 4294901760, %v3896_v21 }
 0x215   : > { %11316 = vmatprep.subr.bf16.mxu0 %v11315_v35 }
 0x218   : > { %11318 = vmatpush1.bf16.msra.mxu0 %v11317_v48 }
 0x219   : > { %11320 = vmatprep.subr.bf16.mxu0 %v13449_v61 }
 0x21b   : > { %3412 = vmatmul.mubr.f32.vlgmr.msra.gmra.mrb[10].mxu0 %v13344_v6  ;;  %v395_v6 = vld [vmem:[%s15208_s3 + $0x40] sm:$0xff] }
 0x21c   : > { %11322 = vmatpush1.bf16.msra.mxu0 %v13443_v50  ;;  %3490 = vmatprep.mubr.f32.mxu0 %v12526_v32  ;;  %v3729_v40 = vsel %vm444_vm0, %v395_v6, 0 }
 0x21d   : > { %11324 = vmatprep.subr.bf16.mxu0 %v13465_v38  ;;  %v13507_v28 = vand.u32 4294901760, %v3729_v40 }
 0x220   : > { %11326 = vmatpush1.bf16.msra.mxu0 %v13463_v39 }
 0x221   : > { %11328 = vmatprep.subr.bf16.mxu0 %v11327_v60  ;;  %v13541_v60 = vand.u32 4294901760, %v3735_v46 }
 0x223   : > { %3494 = vmatmul.mubr.f32.vlgmr.msra.gmra.mrb[10].mxu0 %v13355_v9  ;;  %v3705_v9 = vld [vmem:[%s13494_s23 + $0x8] sm:$0xff]  ;;  %v13574_v20 = vsub.f32 %v3735_v46, %v13541_v60 }
 0x224   : > { %11330 = vmatpush1.bf16.msra.mxu0 %v11329_v12  ;;  %3588 = vmatprep.mubr.f32.mxu0 %v12526_v32  ;;  %v3740_v22 = vand.u32 4294901760, %v3705_v9 }
 0x225   : > { %11332 = vmatprep.subr.bf16.mxu0 %v11331_v7  ;;  %v13586_v7 = vand.u32 4294901760, %v3738_v17  ;;  %v13598_v6 = vand.u32 4294901760, %v13574_v20 }
 0x226   : > { %v13510_v16 = vsub.f32 %v3705_v9, %v3740_v22  ;;  %v13518_v2 = vpack.c.bf16 %v3744_v54, %v3740_v22  ;;  %v3827_v9 = vsub.f32 %v13557_v25, %v13581_v34 }
 0x227   : > { %v3838_v1 = vsub.f32 %v13574_v20, %v13598_v6 }
 0x228   : > { %11334 = vmatpush1.bf16.msra.mxu0 %v11333_v57  ;;  %v3859_v15 = vand.u32 4294901760, %v13510_v16  ;;  %v13623_v29 = vand.u32 4294901760, %v3827_v9 }
 0x229   : > { %11336 = vmatprep.subr.bf16.mxu0 %v13449_v61  ;;  %v13512_v61 = vsub.f32 %v3707_v24, %v3744_v54  ;;  %v13607_v24 = vsub.f32 %v3738_v17, %v13586_v7  ;;  %v3885_v54 = vand.u32 4294901760, %v3884_v13  ;;  %v13632_v53 = vand.u32 4294901760, %v3838_v1 }
 0x22a   : > { %v3860_v0 = vsub.f32 %v13510_v16, %v3859_v15  ;;  %v11365_v17 = vpack.c.bf16 %v13564_v26, %v13554_v31 }
 0x22b   : > { %3590 = vmatmul.mubr.f32.vlgmr.msra.gmra.mrb[10].mxu0 %v13334_v3  ;;  %v3871_v18 = vand.u32 4294901760, %v13512_v61  ;;  %v13626_v42 = vand.u32 4294901760, %v13607_v24  ;;  %v11355_v55 = vpack.c.bf16 %v3897_v5, %v3885_v54  ;;  %v11359_v62 = vpack.c.bf16 %v13512_v61, %v13510_v16 }
 0x22c   : > { %11338 = vmatpush1.bf16.msra.mxu0 %v13443_v50  ;;  %3668 = vmatprep.mubr.f32.mxu0 %v12526_v32  ;;  %v13533_v50 = vsub.f32 %v3729_v40, %v13507_v28  ;;  %v3861_v30 = vand.u32 4294901760, %v3860_v0  ;;  %v3901_v40 = vand.u32 4294901760, %v13564_v26  ;;  %v11361_v0 = vpack.c.bf16 %v13528_v58, %v13522_v63 }
 0x22d   : > { %11340 = vmatprep.subr.bf16.mxu0 %v13465_v38  ;;  %v3865_v38 = vand.u32 4294901760, %v13522_v63  ;;  %v3872_v8 = vsub.f32 %v13512_v61, %v3871_v18  ;;  %v3849_v47 = vsub.f32 %v13607_v24, %v13626_v42 }
 0x22e   : > { %v13550_v12 = vand.u32 4294901760, %v13533_v50  ;;  %v3902_v45 = vsub.f32 %v13564_v26, %v3901_v40  ;;  %v11381_v16 = vpack.c.bf16 %v3901_v40, %v3889_v23  ;;  %v5080_v26 = vld [vmem:[%s13494_s23 + $0x68] sm:$0xff] }
 0x22f   : > { %v3866_v35 = vsub.f32 %v13522_v63, %v3865_v38  ;;  %v3873_v57 = vand.u32 4294901760, %v3872_v8  ;;  %v13638_v44 = vand.u32 4294901760, %v3849_v47  ;;  %v11363_v8 = vpack.c.bf16 %v13547_v4, %v13537_v59  ;;  %v5075_v59 = vld [vmem:[%s13494_s23 + $0x40] sm:$0xff] }
 0x230   : > { %11342 = vmatpush1.bf16.msra.mxu0 %v13463_v39  ;;  %v3877_v39 = vand.u32 4294901760, %v13528_v58  ;;  %v3816_v48 = vsub.f32 %v13533_v50, %v13550_v12  ;;  %v3903_v51 = vand.u32 4294901760, %v3902_v45  ;;  %v5085_v4 = vand.u32 4294901760, %v5075_v59 }
 0x231   : > { %11344 = vmatprep.subr.bf16.mxu0 %v13518_v2  ;;  %v3867_v33 = vand.u32 4294901760, %v3866_v35  ;;  %v11379_v35 = vpack.c.bf16 %v3895_v49, %v3883_v27 }
 0x232   : > { %v3878_v14 = vsub.f32 %v13528_v58, %v3877_v39  ;;  %v13595_v10 = vand.u32 4294901760, %v3816_v48  ;;  %v11357_v46 = vpack.c.bf16 %v3903_v51, %v3891_v43  ;;  %v11375_v48 = vpack.c.bf16 %v3871_v18, %v3859_v15  ;;  %v5077_v15 = vld [vmem:[%s13494_s23 + $0x50] sm:$0xff] }
 0x233   : > { %3670 = vmatmul.mubr.f32.vlgmr.msra.gmra.mrb[10].mxu0 %v13334_v3  ;;  %v11351_v3 = vpack.c.bf16 %v3873_v57, %v3861_v30  ;;  %v11377_v30 = vpack.c.bf16 %v3877_v39, %v3865_v38  ;;  %v5089_v18 = vand.u32 4294901760, %v5077_v15  ;;  %v5082_v39 = vld [vmem:[%s13494_s23 + $0x78] sm:$0xff]  ;;  %v5091_v57 = vand.u32 4294901760, %v5080_v26 }
 0x234   : > { %11346 = vmatpush1.bf16.msra.mxu0 %v13520_v41  ;;  %3812 = vmatprep.mubr.f32.mxu0 %v12526_v32  ;;  %v3879_v52 = vand.u32 4294901760, %v3878_v14  ;;  %v5095_v14 = vand.u32 4294901760, %v5082_v39  ;;  %v13739_v9 = vsub.f32 %v5075_v59, %v5085_v4 }
 0x235   : > { %11348 = vmatprep.subr.bf16.mxu0 %v13530_v56  ;;  %v13719_v38 = vpack.c.bf16 %v5089_v18, %v5085_v4  ;;  %v13741_v21 = vsub.f32 %v5077_v15, %v5089_v18  ;;  %v13745_v40 = vsub.f32 %v5080_v26, %v5091_v57 }
 0x236   : > { %v11353_v22 = vpack.c.bf16 %v3879_v52, %v3867_v33  ;;  %v5081_v33 = vld [vmem:[%s13494_s23 + $0x70] sm:$0xff]  ;;  %v13729_v52 = vpack.c.bf16 %v5095_v14, %v5091_v57  ;;  %v5208_v1 = vand.u32 4294901760, %v13739_v9 }
 0x237   : > { %v5220_v43 = vand.u32 4294901760, %v13741_v21  ;;  %v11409_v57 = vpack.c.bf16 %v13741_v21, %v13739_v9 }
 0x238   : > { %11350 = vmatpush1.bf16.msra.mxu0 %v13589_v11  ;;  %v5209_v51 = vsub.f32 %v13739_v9, %v5208_v1  ;;  %v13866_v9 = vld [vmem:[%s15209_s4 + $0x10] sm:$0xff] }
 0x239   : > { %11352 = vmatprep.subr.bf16.mxu0 %v11351_v3  ;;  %v5097_v3 = vand.u32 4294901760, %v5081_v33 }
 0x23b   : > { %3818 = vmatmul.mubr.f32.vlgmr.msra.gmra.mrb[12].mxu0 %v13595_v10  ;;  %v13754_v45 = vsub.f32 %v5081_v33, %v5097_v3 }
 0x23c   : > { %3823 = vmatprep.mubr.f32.mxu0 %v12526_v32  ;;  %11354 = vmatpush1.bf16.msra.mxu0 %v11353_v22  ;;  %v13747_v22 = vsub.f32 %v5082_v39, %v5095_v14 }
 0x23d   : > { %11356 = vmatprep.subr.bf16.mxu0 %v11355_v55 }
 0x23f   : > { %3829 = vmatmul.mubr.f32.gmra.mrb[14].mxu0 %v13623_v29 }
 0x240   : > { %3834 = vmatprep.mubr.f32.mxu0 %v12526_v32  ;;  %11358 = vmatpush1.bf16.msra.mxu0 %v11357_v46  ;;  %v5221_v46 = vsub.f32 %v13741_v21, %v5220_v43 }
 0x241   : > { %11360 = vmatprep.subr.bf16.mxu0 %v11359_v62 }
 0x243   : > { %3840 = vmatmul.mubr.f32.gmra.mrb[16].mxu0 %v13632_v53 }
 0x244   : > { %3845 = vmatprep.mubr.f32.mxu0 %v12526_v32 }
 0x247   : > { %3851 = vmatmul.mubr.f32.gmra.mrb[18].mxu0 %v13638_v44 }
 0x248   : > { %3961 = vmatprep.mubr.f32.mxu0 %v12526_v32 }
 0x24b   : > { %3963 = vmatmul.mubr.f32.vlgmr.msra.gmra.mrb[12].mxu0 %v13507_v28 }
 0x24c   : > { %3968 = vmatprep.mubr.f32.mxu0 %v12526_v32  ;;  %11362 = vmatpush1.bf16.msra.mxu0 %v11361_v0  ;;  %v5226_v0 = vand.u32 4294901760, %v13745_v40 }
 0x24d   : > { %11364 = vmatprep.subr.bf16.mxu0 %v11363_v8  ;;  %v5238_v8 = vand.u32 4294901760, %v13747_v22 }
 0x24f   : > { %3970 = vmatmul.mubr.f32.gmra.mrb[14].mxu0 %v13539_v37 }
 0x250   : > { %3975 = vmatprep.mubr.f32.mxu0 %v12526_v32  ;;  %11366 = vmatpush1.bf16.msra.mxu0 %v11365_v17  ;;  %v5210_v17 = vand.u32 4294901760, %v5209_v51 }
 0x251   : > { %11368 = vmatprep.subr.bf16.mxu0 %v13518_v2 }
 0x253   : > { %3977 = vmatmul.mubr.f32.gmra.mrb[16].mxu0 %v13541_v60 }
 0x254   : > { %3982 = vmatprep.mubr.f32.mxu0 %v12526_v32 }
 0x257   : > { %3984 = vmatmul.mubr.f32.gmra.mrb[18].mxu0 %v13586_v7 }
 0x258   : > { %4070 = vmatprep.mubr.f32.mxu0 %v12526_v32 }
 0x25b   : > { %4073 = vmatmul.mubr.f32.vlgmr.msra.gmra.mrb[12].mxu0 %v13533_v50 }
 0x25c   : > { %4078 = vmatprep.mubr.f32.mxu0 %v12526_v32  ;;  %11370 = vmatpush1.bf16.msra.mxu0 %v13520_v41 }
 0x25d   : > { %11372 = vmatprep.subr.bf16.mxu0 %v13530_v56 }
 0x25f   : > { %4081 = vmatmul.mubr.f32.gmra.mrb[14].mxu0 %v13557_v25 }
 0x260   : > { %4086 = vmatprep.mubr.f32.mxu0 %v12526_v32  ;;  %11374 = vmatpush1.bf16.msra.mxu0 %v13589_v11 }
 0x261   : > { %11376 = vmatprep.subr.bf16.mxu0 %v11375_v48  ;;  %v5222_v48 = vand.u32 4294901760, %v5221_v46 }
 0x263   : > { %4089 = vmatmul.mubr.f32.gmra.mrb[16].mxu0 %v13574_v20 }
 0x264   : > { %4094 = vmatprep.mubr.f32.mxu0 %v12526_v32 }
 0x267   : > { %4097 = vmatmul.mubr.f32.gmra.mrb[18].mxu0 %v13607_v24 }
 0x268   : > { %4175 = vmatprep.mubr.f32.mxu0 %v12526_v32 }
 0x26b   : > { %4179 = vmatmul.mubr.f32.vlgmr.msra.gmra.mrb[12].mxu0 %v13550_v12 }
 0x26c   : > { %4184 = vmatprep.mubr.f32.mxu0 %v12526_v32  ;;  %11378 = vmatpush1.bf16.msra.mxu0 %v11377_v30 }
 0x26d   : > { %11380 = vmatprep.subr.bf16.mxu0 %v11379_v35  ;;  %v5244_v35 = vand.u32 4294901760, %v13754_v45 }
 0x26f   : > { %4188 = vmatmul.mubr.f32.gmra.mrb[14].mxu0 %v13581_v34 }
 0x270   : > { %4193 = vmatprep.mubr.f32.mxu0 %v12526_v32  ;;  %11382 = vmatpush1.bf16.msra.mxu0 %v11381_v16 }
 0x271   : > { %11384 = vmatprep.subr.bf16.mxu0 %v13518_v2  ;;  %v5076_v2 = vld [vmem:[%s13494_s23 + $0x48] sm:$0xff] }
 0x272   : > { %v5083_v58 = vand.u32 4294901760, %v5076_v2 }
 0x273   : > { %4197 = vmatmul.mubr.f32.gmra.mrb[16].mxu0 %v13598_v6 }
 0x274   : > { %4202 = vmatprep.mubr.f32.mxu0 %v12526_v32  ;;  %v13733_v13 = vsub.f32 %v5076_v2, %v5083_v58  ;;  %v5227_v2 = vsub.f32 %v13745_v40, %v5226_v0 }
 0x276   : > { %v5202_v54 = vand.u32 4294901760, %v13733_v13  ;;  %v5228_v59 = vand.u32 4294901760, %v5227_v2 }
 0x277   : > { %4206 = vmatmul.mubr.f32.gmra.mrb[18].mxu0 %v13626_v42 }
 0x278   : > { %4300 = vmatprep.mubr.f32.mxu0 %v12526_v32  ;;  %v5203_v55 = vsub.f32 %v13733_v13, %v5202_v54 }
 0x27a   : > { %v5204_v62 = vand.u32 4294901760, %v5203_v55 }
 0x27b   : > { %4302 = vmatmul.mubr.f32.vlgmr.msra.gmra.mrb[12].mxu0 %v13507_v28 }
 0x27c   : > { %4307 = vmatprep.mubr.f32.mxu0 %v12526_v32  ;;  %11386 = vmatpush1.bf16.msra.mxu0 %v13520_v41  ;;  %v5078_v41 = vld [vmem:[%s13494_s23 + $0x58] sm:$0xff] }
 0x27d   : > { %11388 = vmatprep.subr.bf16.mxu0 %v13530_v56  ;;  %v5087_v56 = vand.u32 4294901760, %v5078_v41 }
 0x27f   : > { %4309 = vmatmul.mubr.f32.gmra.mrb[14].mxu0 %v13539_v37  ;;  %v13717_v31 = vpack.c.bf16 %v5087_v56, %v5083_v58  ;;  %v13735_v23 = vsub.f32 %v5078_v41, %v5087_v56  ;;  %v11401_v41 = vpack.c.bf16 %v5222_v48, %v5210_v17  ;;  %v5245_v56 = vsub.f32 %v13754_v45, %v5244_v35 }
 0x280   : > { %4314 = vmatprep.mubr.f32.mxu0 %v12526_v32  ;;  %11390 = vmatpush1.bf16.msra.mxu0 %v13589_v11  ;;  %v5079_v11 = vld [vmem:[%s13494_s23 + $0x60] sm:$0xff]  ;;  %s10943_s23 = scalar_lea.sflag [#allocation4], %s12719_s7 }
 0x281   : > { %11392 = vmatprep.subr.bf16.mxu0 %v13717_v31  ;;  %v5093_v27 = vand.u32 4294901760, %v5079_v11  ;;  %v5214_v36 = vand.u32 4294901760, %v13735_v23  ;;  %v5246_v18 = vand.u32 4294901760, %v5245_v56 }
 0x283   : > { %4316 = vmatmul.mubr.f32.gmra.mrb[16].mxu0 %v13541_v60  ;;  %v13731_v49 = vpack.c.bf16 %v5097_v3, %v5093_v27  ;;  %v13752_v5 = vsub.f32 %v5079_v11, %v5093_v27  ;;  %v12530_v27 = vmov 2  }
 0x284   : > { %4321 = vmatprep.mubr.f32.mxu0 %v12526_v32  ;;  %12368 = vset.pattern.permute.xlu1 %v12530_v27 }
 0x285   : > { %v5232_v30 = vand.u32 4294901760, %v13752_v5  ;;  %v11413_v14 = vpack.c.bf16 %v13754_v45, %v13752_v5  ;;  %12369 = vset.pattern.permute.xlu0 %v12530_v27  ;;  %v4431_v45 = vpop.permute.xlu1 %4430 }
 0x287   : > { %4323 = vmatmul.mubr.f32.gmra.mrb[18].mxu0 %v13586_v7  ;;  %v5233_v58 = vsub.f32 %v13752_v5, %v5232_v30 }
 0x288   : > { %4401 = vmatprep.mubr.f32.mxu0 %v12526_v32 }
 0x289   : > { %v5234_v4 = vand.u32 4294901760, %v5233_v58  ;;  %v4435_v55 = vpop.permute.xlu1 %4434 }
 0x28b   : > { %4403 = vmatmul.mubr.f32.vlgmr.msra.gmra.mrb[12].mxu0 %v13507_v28  ;;  %v11405_v39 = vpack.c.bf16 %v5246_v18, %v5234_v4 }
 0x28c   : > { %4408 = vmatprep.mubr.f32.mxu0 %v12526_v32  ;;  %11394 = vmatpush1.bf16.msra.mxu0 %v13719_v38 }
 0x28d   : > { %11396 = vmatprep.subr.bf16.mxu0 %v13729_v52 }
 0x28f   : > { %4410 = vmatmul.mubr.f32.gmra.mrb[14].mxu0 %v13539_v37 }
 0x290   : > { %4415 = vmatprep.mubr.f32.mxu0 %v12526_v32  ;;  %11398 = vmatpush1.bf16.msra.mxu0 %v13731_v49 }
 0x293   : > { %4417 = vmatmul.mubr.f32.gmra.mrb[16].mxu0 %v13541_v60 }
 0x294   : > { %4422 = vmatprep.mubr.f32.mxu0 %v12526_v32 }
 0x297   : > { %4424 = vmatmul.mubr.f32.gmra.mrb[18].mxu0 %v13586_v7 }
 0x298   : > { %5155 = vmatprep.mubr.f32.mxu0 %v12526_v32 }
 0x29b   : > { %5161 = vmatmul.mubr.f32.vlgmr.msra.gmra.mrb[20].mxu0 %v13595_v10  ;;  %v5215_v10 = vsub.f32 %v13735_v23, %v5214_v36 }
 0x29c   : > { %5166 = vmatprep.mubr.f32.mxu0 %v12526_v32 }
 0x29d   : > { %v5216_v47 = vand.u32 4294901760, %v5215_v10 }
 0x29f   : > { %5172 = vmatmul.mubr.f32.gmra.mrb[22].mxu0 %v13623_v29  ;;  %v11399_v16 = vpack.c.bf16 %v5216_v47, %v5204_v62  ;;  %v5239_v29 = vsub.f32 %v13747_v22, %v5238_v8 }
 0x2a0   : > { %5177 = vmatprep.mubr.f32.mxu0 %v12526_v32 }
 0x2a1   : > { %11400 = vmatprep.subr.bf16.mxu0 %v11399_v16  ;;  %v5240_v15 = vand.u32 4294901760, %v5239_v29 }
 0x2a2   : > { %11402 = vmatpush1.bf16.msra.mxu0 %v11401_v41 }
 0x2a3   : > { %5183 = vmatmul.mubr.f32.gmra.mrb[24].mxu0 %v13632_v53  ;;  %v11403_v26 = vpack.c.bf16 %v5240_v15, %v5228_v59  ;;  %v11407_v53 = vpack.c.bf16 %v13735_v23, %v13733_v13 }
 0x2a4   : > { %5188 = vmatprep.mubr.f32.mxu0 %v12526_v32 }
 0x2a5   : > { %11404 = vmatprep.subr.bf16.mxu0 %v11403_v26 }
 0x2a6   : > { %v13695_v61 = vpop.f32.mrb[8].mxu0  ;;  %11406 = vmatpush1.bf16.msra.mxu0 %v11405_v39 }
 0x2a7   : > { %v13699_v63 = vpop.f32.mrb[9].mxu0  ;;  %5194 = vmatmul.mubr.f32.gmra.mrb[26].mxu0 %v13638_v44  ;;  %11408 = vmatprep.subr.bf16.mxu0 %v11407_v53  ;;  %v11411_v44 = vpack.c.bf16 %v13747_v22, %v13745_v40 }
 0x2a8   : > { %5304 = vmatprep.mubr.f32.mxu0 %v12526_v32 }
 0x2ab   : > { %5306 = vmatmul.mubr.f32.vlgmr.msra.gmra.mrb[20].mxu0 %v13507_v28 }
 0x2ac   : > { %5311 = vmatprep.mubr.f32.mxu0 %v12526_v32  ;;  %11410 = vmatpush1.bf16.msra.mxu0 %v11409_v57 }
 0x2ad   : > { %11412 = vmatprep.subr.bf16.mxu0 %v11411_v44 }
 0x2af   : > { %5313 = vmatmul.mubr.f32.gmra.mrb[22].mxu0 %v13539_v37 }
 0x2b0   : > { %5318 = vmatprep.mubr.f32.mxu0 %v12526_v32  ;;  %11414 = vmatpush1.bf16.msra.mxu0 %v11413_v14 }
 0x2b1   : > { %11416 = vmatprep.subr.bf16.mxu0 %v13717_v31 }
 0x2b3   : > { %5320 = vmatmul.mubr.f32.gmra.mrb[24].mxu0 %v13541_v60 }
 0x2b4   : > { %5325 = vmatprep.mubr.f32.mxu0 %v12526_v32 }
 0x2b7   : > { %5327 = vmatmul.mubr.f32.gmra.mrb[26].mxu0 %v13586_v7 }
 0x2b8   : > { %5413 = vmatprep.mubr.f32.mxu0 %v12526_v32 }
 0x2bb   : > { %5416 = vmatmul.mubr.f32.vlgmr.msra.gmra.mrb[20].mxu0 %v13533_v50  ;;  %v11423_v50 = vpack.c.bf16 %v5214_v36, %v5202_v54 }
 0x2bc   : > { %5421 = vmatprep.mubr.f32.mxu0 %v12526_v32  ;;  %11418 = vmatpush1.bf16.msra.mxu0 %v13719_v38 }
 0x2bd   : > { %11420 = vmatprep.subr.bf16.mxu0 %v13729_v52 }
 0x2bf   : > { %5424 = vmatmul.mubr.f32.gmra.mrb[22].mxu0 %v13557_v25  ;;  %v11425_v25 = vpack.c.bf16 %v5220_v43, %v5208_v1  ;;  %v4433_v1 = vpop.permute.xlu0 %4432 }
 0x2c0   : > { %5429 = vmatprep.mubr.f32.mxu0 %v12526_v32  ;;  %11422 = vmatpush1.bf16.msra.mxu0 %v13731_v49 }
 0x2c1   : > { %11424 = vmatprep.subr.bf16.mxu0 %v11423_v50 }
 0x2c3   : > { %5432 = vmatmul.mubr.f32.gmra.mrb[24].mxu0 %v13574_v20  ;;  %v11429_v20 = vpack.c.bf16 %v5244_v35, %v5232_v30  ;;  %v4437_v17 = vpop.permute.xlu0 %4436 }
 0x2c4   : > { %5437 = vmatprep.mubr.f32.mxu0 %v12526_v32  ;;  %v4445_v2 = vsel %vm4438_vm1, %v4437_v17, 0 }
 0x2c5   : > { %v13916_v26 = vand.u32 4294901760, %v4445_v2 }
 0x2c7   : > { %5440 = vmatmul.mubr.f32.gmra.mrb[26].mxu0 %v13607_v24  ;;  %v13926_v50 = vsub.f32 %v4445_v2, %v13916_v26 }
 0x2c8   : > { %5518 = vmatprep.mubr.f32.mxu0 %v12526_v32 }
 0x2cb   : > { %5522 = vmatmul.mubr.f32.vlgmr.msra.gmra.mrb[20].mxu0 %v13550_v12  ;;  %v11427_v12 = vpack.c.bf16 %v5238_v8, %v5226_v0 }
 0x2cc   : > { %5527 = vmatprep.mubr.f32.mxu0 %v12526_v32  ;;  %11426 = vmatpush1.bf16.msra.mxu0 %v11425_v25 }
 0x2cd   : > { %11428 = vmatprep.subr.bf16.mxu0 %v11427_v12 }
 0x2cf   : > { %5531 = vmatmul.mubr.f32.gmra.mrb[22].mxu0 %v13581_v34 }
 0x2d0   : > { %5536 = vmatprep.mubr.f32.mxu0 %v12526_v32  ;;  %11430 = vmatpush1.bf16.msra.mxu0 %v11429_v20 }
 0x2d1   : > { %11432 = vmatprep.subr.bf16.mxu0 %v13717_v31 }
 0x2d3   : > { %5540 = vmatmul.mubr.f32.gmra.mrb[24].mxu0 %v13598_v6 }
 0x2d4   : > { %5545 = vmatprep.mubr.f32.mxu0 %v12526_v32 }
 0x2d7   : > { %5549 = vmatmul.mubr.f32.gmra.mrb[26].mxu0 %v13626_v42 }
 0x2d8   : > { %5643 = vmatprep.mubr.f32.mxu0 %v12526_v32 }
 0x2db   : > { %5645 = vmatmul.mubr.f32.vlgmr.msra.gmra.mrb[20].mxu0 %v13507_v28 }
 0x2dc   : > { %5650 = vmatprep.mubr.f32.mxu0 %v12526_v32  ;;  %11434 = vmatpush1.bf16.msra.mxu0 %v13719_v38  ;;  %v13850_v38 = vld [vmem:[%s15209_s4] sm:$0xff] }
 0x2dd   : > { %11436 = vmatprep.subr.bf16.mxu0 %v13729_v52  ;;  %3713 = vperm.xlu1 %12368, %v13850_v38  }
 0x2df   : > { %5652 = vmatmul.mubr.f32.gmra.mrb[22].mxu0 %v13539_v37 }
 0x2e0   : > { %5657 = vmatprep.mubr.f32.mxu0 %v12526_v32  ;;  %11438 = vmatpush1.bf16.msra.mxu0 %v13731_v49  ;;  %v13874_v49 = vld [vmem:[%s15209_s4 + $0x18] sm:$0xff] }
 0x2e1   : > { %3721 = vperm.xlu1 %12368, %v13866_v9  }
 0x2e3   : > { %5659 = vmatmul.mubr.f32.gmra.mrb[24].mxu0 %v13541_v60 }
 0x2e4   : > { %5664 = vmatprep.mubr.f32.mxu0 %v12526_v32 }
 0x2e5   : > { %3725 = vperm.xlu1 %12368, %v13874_v49  }
 0x2e7   : > { %5666 = vmatmul.mubr.f32.gmra.mrb[26].mxu0 %v13586_v7 }
 0x2e8   : > { %5744 = vmatprep.mubr.f32.mxu0 %v12526_v32 }
 0x2eb   : > { %5746 = vmatmul.mubr.f32.vlgmr.msra.gmra.mrb[20].mxu0 %v13507_v28  ;;  %v4439_v28 = vsel %vm4438_vm1, %v4431_v45, 0 }
 0x2ec   : > { %5751 = vmatprep.mubr.f32.mxu0 %v12526_v32  ;;  %v13884_v43 = vand.u32 4294901760, %v4439_v28 }
 0x2ee   : > { %v13890_v51 = vsub.f32 %v4439_v28, %v13884_v43 }
 0x2ef   : > { %5753 = vmatmul.mubr.f32.gmra.mrb[22].mxu0 %v13539_v37  ;;  %v4441_v37 = vsel %vm4438_vm1, %v4433_v1, 0 }
 0x2f0   : > { %5758 = vmatprep.mubr.f32.mxu0 %v12526_v32  ;;  %v13892_v46 = vand.u32 4294901760, %v4441_v37 }
 0x2f2   : > { %v13899_v48 = vsub.f32 %v4441_v37, %v13892_v46 }
 0x2f3   : > { %5760 = vmatmul.mubr.f32.gmra.mrb[24].mxu0 %v13541_v60  ;;  %v4443_v60 = vsel %vm4438_vm1, %v4435_v55, 0 }
 0x2f4   : > { %5765 = vmatprep.mubr.f32.mxu0 %v12526_v32  ;;  %v13901_v30 = vand.u32 4294901760, %v4443_v60  ;;  %v13912_v15 = vand.u32 4294901760, %v13899_v48 }
 0x2f6   : > { %v13909_v59 = vsub.f32 %v4443_v60, %v13901_v30  ;;  %v4528_v14 = vsub.f32 %v13899_v48, %v13912_v15 }
 0x2f7   : > { %5767 = vmatmul.mubr.f32.gmra.mrb[26].mxu0 %v13586_v7  ;;  %v13896_v7 = vand.u32 4294901760, %v13890_v51 }
 0x2f8   : > { %6501 = vmatprep.mubr.f32.mxu0 %v12526_v32  ;;  %v13929_v20 = vand.u32 4294901760, %v13909_v59 }
 0x2f9   : > { %v4517_v56 = vsub.f32 %v13890_v51, %v13896_v7 }
 0x2fb   : > { %v13921_v44 = vand.u32 4294901760, %v4517_v56 }
 0x306   : > { %v3671_v34 = vpop.f32.mrb[10].mxu0 }
 0x307   : > { %v3676_v6 = vmax.f32 %v13695_v61, %v3671_v34  ;;  %v3673_v24 = vpop.f32.mrb[11].mxu0 }
 0x308   : > { %v3677_v42 = vmax.f32 %v13699_v63, %v3673_v24 }
 0x309   : > { %v3678_v11 = vsub.f32 %v13695_v61, %v3676_v6  ;;  %v3684_v33 = vsub.f32 %v3671_v34, %v3676_v6 }
 0x30a   : > { %v3679_v31 = vsub.f32 %v13699_v63, %v3677_v42  ;;  %v3685_v3 = vsub.f32 %v3673_v24, %v3677_v42  ;;  %v13858_v63 = vld [vmem:[%s15209_s4 + $0x8] sm:$0xff]  ;;  %v13934_v24 = vand.u32 4294901760, %v4528_v14 }
 0x30b   : > { %v3680_v52 = vmul.f32 1.442695, %v3678_v11  ;;  %v3686_v13 = vmul.f32 1.442695, %v3684_v33  ;;  %3717 = vperm.xlu0 %12369, %v13858_v63   ;;  %v4539_v11 = vsub.f32 %v13909_v59, %v13929_v20  ;;  %v13939_v33 = vand.u32 4294901760, %v13926_v50 }
 0x30c   : > { %v3682_v61 = vmul.f32 1.442695, %v3679_v31  ;;  %v3688_v23 = vmul.f32 1.442695, %v3685_v3 }
 0x30d   : > { %12386 = vpow2.f32 %v3680_v52  ;;  %v13943_v3 = vand.u32 4294901760, %v4539_v11  ;;  %v4550_v52 = vsub.f32 %v13926_v50, %v13939_v33 }
 0x30e   : > { %12388 = vpow2.f32 %v3686_v13 }
 0x30f   : > { %12390 = vpow2.f32 %v3682_v61  ;;  %v13949_v13 = vand.u32 4294901760, %v4550_v52 }
 0x310   : > { %12392 = vpow2.f32 %v3688_v23 }
 0x317   : > { %v12387_v21 = vpop.eup %12386 }
 0x318   : > { %v12389_v40 = vpop.eup %12388 }
 0x319   : > { %v12391_v22 = vpop.eup %12390  ;;  %v3690_v54 = vadd.f32 %v12389_v40, %v12387_v21 }
 0x31a   : > { %v12393_v36 = vpop.eup %12392 }
 0x31b   : > { %12394 = vrcp.f32 %v3690_v54  ;;  %v3691_v5 = vadd.f32 %v12393_v36, %v12391_v22 }
 0x31d   : > { %12396 = vrcp.f32 %v3691_v5 }
 0x325   : > { %v12395_v10 = vpop.eup %12394 }
 0x326   : > { %v3694_v62 = vmul.f32 %v12395_v10, %v3690_v54 }
 0x327   : > { %v12397_v47 = vpop.eup %12396 }
 0x328   : > { %v3695_v0 = vmul.f32 %v12397_v47, %v3691_v5  ;;  %v3696_v8 = vsub.f32 2.0, %v3694_v62 }
 0x32a   : > { %v3697_v35 = vsub.f32 2.0, %v3695_v0  ;;  %v3698_v16 = vmul.f32 %v12395_v10, %v3696_v8 }
 0x32c   : > { %v3699_v29 = vmul.f32 %v12397_v47, %v3697_v35  ;;  %v3700_v41 = vmul.f32 %v12387_v21, %v3698_v16  ;;  %v13904_v58 = vmul.f32 %v12389_v40, %v3698_v16 }
 0x32e   : > { %v3701_v4 = vmul.f32 %v12391_v22, %v3699_v29  ;;  %v13914_v18 = vand.u32 4294901760, %v3700_v41  ;;  %v13918_v39 = vmul.f32 %v12393_v36, %v3699_v29  ;;  %v13994_v22 = vand.u32 4294901760, %v13904_v58 }
 0x330   : > { %v4447_v53 = vand.u32 4294901760, %v3701_v4  ;;  %v4565_v57 = vsub.f32 %v3700_v41, %v13914_v18  ;;  %v13980_v61 = vand.u32 4294901760, %v13918_v39  ;;  %v5891_v36 = vsub.f32 %v13904_v58, %v13994_v22 }
 0x332   : > { %4448 = vmatprep.subr.mxu1 %v4447_v53  ;;  %v4559_v25 = vsub.f32 %v3701_v4, %v4447_v53  ;;  %v4566_v12 = vand.u32 4294901760, %v4565_v57  ;;  %v5885_v23 = vsub.f32 %v13918_v39, %v13980_v61  ;;  %v5892_v28 = vand.u32 4294901760, %v5891_v36 }
 0x333   : > { %4450 = vmatpush1.msra.mxu1 %v13914_v18 }
 0x334   : > { %4519 = vmatmul.mubr.f32.vlgmr.msra.gmra.mrb[16].mxu1 %v13921_v44  ;;  %v4560_v34 = vand.u32 4294901760, %v4559_v25  ;;  %v4567_v6 = vsub.f32 %v4565_v57, %v4566_v12  ;;  %v5886_v21 = vand.u32 4294901760, %v5885_v23  ;;  %v5893_v55 = vsub.f32 %v5891_v36, %v5892_v28 }
 0x335   : > { %4524 = vmatprep.mubr.f32.mxu1 %v12526_v32 }
 0x336   : > { %v4561_v42 = vsub.f32 %v4559_v25, %v4560_v34  ;;  %v4568_v31 = vand.u32 4294901760, %v4567_v6  ;;  %v5887_v40 = vsub.f32 %v5885_v23, %v5886_v21  ;;  %v5894_v62 = vand.u32 4294901760, %v5893_v55 }
 0x338   : > { %4530 = vmatmul.mubr.f32.gmra.mrb[18].mxu1 %v13934_v24  ;;  %v4562_v27 = vand.u32 4294901760, %v4561_v42  ;;  %v5888_v54 = vand.u32 4294901760, %v5887_v40 }
 0x339   : > { %4535 = vmatprep.mubr.f32.mxu1 %v12526_v32 }
 0x33a   : > { %4563 = vmatprep.subr.mxu1 %v4562_v27 }
 0x33b   : > { %4569 = vmatpush1.msra.mxu1 %v4568_v31  ;;  %v399_v31 = vld [vmem:[%s15208_s3 + $0x60] sm:$0xff] }
 0x33c   : > { %4541 = vmatmul.mubr.f32.gmra.mrb[20].mxu1 %v13943_v3  ;;  %4663 = vmatprep.subr.mxu1 %v4559_v25  ;;  %v6418_v52 = vsel %vm444_vm0, %v399_v31, 0 }
 0x33d   : > { %4546 = vmatprep.mubr.f32.mxu1 %v12526_v32 }
 0x340   : > { %4552 = vmatmul.mubr.f32.gmra.mrb[22].mxu1 %v13949_v13 }
 0x341   : > { %4632 = vmatprep.mubr.f32.mxu1 %v12526_v32 }
 0x344   : > { %4634 = vmatmul.mubr.f32.vlgmr.msra.gmra.mrb[16].mxu1 %v13884_v43 }
 0x345   : > { %4666 = vmatpush1.msra.mxu1 %v4565_v57  ;;  %4639 = vmatprep.mubr.f32.mxu1 %v12526_v32 }
 0x346   : > { %4763 = vmatprep.subr.mxu1 %v4447_v53 }
 0x348   : > { %4641 = vmatmul.mubr.f32.gmra.mrb[18].mxu1 %v13892_v46 }
 0x349   : > { %4646 = vmatprep.mubr.f32.mxu1 %v12526_v32 }
 0x34c   : > { %4648 = vmatmul.mubr.f32.gmra.mrb[20].mxu1 %v13901_v30 }
 0x34d   : > { %4653 = vmatprep.mubr.f32.mxu1 %v12526_v32 }
 0x350   : > { %4655 = vmatmul.mubr.f32.gmra.mrb[22].mxu1 %v13916_v26 }
 0x351   : > { %4729 = vmatprep.mubr.f32.mxu1 %v12526_v32 }
 0x354   : > { %4732 = vmatmul.mubr.f32.vlgmr.msra.gmra.mrb[16].mxu1 %v13890_v51 }
 0x355   : > { %4765 = vmatpush1.msra.mxu1 %v13914_v18  ;;  %4737 = vmatprep.mubr.f32.mxu1 %v12526_v32 }
 0x356   : > { %4868 = vmatprep.subr.mxu1 %v4560_v34 }
 0x358   : > { %4740 = vmatmul.mubr.f32.gmra.mrb[18].mxu1 %v13899_v48 }
 0x359   : > { %4745 = vmatprep.mubr.f32.mxu1 %v12526_v32 }
 0x35c   : > { %4748 = vmatmul.mubr.f32.gmra.mrb[20].mxu1 %v13909_v59  ;;  %v3714_v16 = vpop.permute.xlu1 %3713 }
 0x35d   : > { %4753 = vmatprep.mubr.f32.mxu1 %v12526_v32 }
 0x35e   : > { %v14002_v5 = vpop.f32.mrb[12].mxu0 }
 0x35f   : > { %v14005_v45 = vpop.f32.mrb[13].mxu0  ;;  %v11799_v2 = vadd.f32 %v14002_v5, %v3714_v16 }
 0x360   : > { %4756 = vmatmul.mubr.f32.gmra.mrb[22].mxu1 %v13926_v50 }
 0x361   : > { %4828 = vmatprep.mubr.f32.mxu1 %v12526_v32 }
 0x362   : > { %v14008_v1 = vpop.f32.mrb[14].mxu0 }
 0x363   : > { %v14011_v37 = vpop.f32.mrb[15].mxu0 }
 0x364   : > { %4832 = vmatmul.mubr.f32.vlgmr.msra.gmra.mrb[16].mxu1 %v13896_v7 }
 0x365   : > { %4872 = vmatpush1.msra.mxu1 %v4566_v12  ;;  %4837 = vmatprep.mubr.f32.mxu1 %v12526_v32 }
 0x366   : > { %4965 = vmatprep.subr.mxu1 %v4447_v53  ;;  %v14014_v10 = vpop.f32.mrb[16].mxu0 }
 0x367   : > { %v14017_v60 = vpop.f32.mrb[17].mxu0 }
 0x368   : > { %4841 = vmatmul.mubr.f32.gmra.mrb[18].mxu1 %v13912_v15 }
 0x369   : > { %4846 = vmatprep.mubr.f32.mxu1 %v12526_v32 }
 0x36a   : > { %v14020_v47 = vpop.f32.mrb[18].mxu0 }
 0x36b   : > { %v14023_v0 = vpop.f32.mrb[19].mxu0 }
 0x36c   : > { %4850 = vmatmul.mubr.f32.gmra.mrb[20].mxu1 %v13929_v20 }
 0x36d   : > { %4855 = vmatprep.mubr.f32.mxu1 %v12526_v32 }
 0x370   : > { %4859 = vmatmul.mubr.f32.gmra.mrb[22].mxu1 %v13939_v33 }
 0x371   : > { %4935 = vmatprep.mubr.f32.mxu1 %v12526_v32 }
 0x374   : > { %4937 = vmatmul.mubr.f32.vlgmr.msra.gmra.mrb[16].mxu1 %v13884_v43 }
 0x375   : > { %4967 = vmatpush1.msra.mxu1 %v13914_v18  ;;  %4942 = vmatprep.mubr.f32.mxu1 %v12526_v32 }
 0x376   : > { %5774 = vmatprep.subr.mxu1 %v13980_v61 }
 0x378   : > { %4944 = vmatmul.mubr.f32.gmra.mrb[18].mxu1 %v13892_v46 }
 0x379   : > { %4949 = vmatprep.mubr.f32.mxu1 %v12526_v32 }
 0x37c   : > { %4951 = vmatmul.mubr.f32.gmra.mrb[20].mxu1 %v13901_v30 }
 0x37d   : > { %4956 = vmatprep.mubr.f32.mxu1 %v12526_v32 }
 0x380   : > { %4958 = vmatmul.mubr.f32.gmra.mrb[22].mxu1 %v13916_v26 }
 0x381   : > { %5030 = vmatprep.mubr.f32.mxu1 %v12526_v32 }
 0x384   : > { %5032 = vmatmul.mubr.f32.vlgmr.msra.gmra.mrb[16].mxu1 %v13884_v43 }
 0x385   : > { %5776 = vmatpush1.msra.mxu1 %v13994_v22  ;;  %5037 = vmatprep.mubr.f32.mxu1 %v12526_v32 }
 0x386   : > { %5889 = vmatprep.subr.mxu1 %v5888_v54 }
 0x388   : > { %5039 = vmatmul.mubr.f32.gmra.mrb[18].mxu1 %v13892_v46 }
 0x389   : > { %5044 = vmatprep.mubr.f32.mxu1 %v12526_v32 }
 0x38a   : > { %v3718_v29 = vpop.permute.xlu0 %3717 }
 0x38b   : > { %v11801_v4 = vadd.f32 %v14008_v1, %v3718_v29  ;;  %v11802_v18 = vadd.f32 %v14011_v37, %v3718_v29 }
 0x38c   : > { %5046 = vmatmul.mubr.f32.gmra.mrb[20].mxu1 %v13901_v30 }
 0x38d   : > { %5051 = vmatprep.mubr.f32.mxu1 %v12526_v32 }
 0x390   : > { %5053 = vmatmul.mubr.f32.gmra.mrb[22].mxu1 %v13916_v26 }
 0x391   : > { %5839 = vmatprep.mubr.f32.mxu1 %v12526_v32 }
 0x394   : > { %5845 = vmatmul.mubr.f32.vlgmr.msra.gmra.mrb[24].mxu1 %v13921_v44 }
 0x395   : > { %5895 = vmatpush1.msra.mxu1 %v5894_v62  ;;  %5850 = vmatprep.mubr.f32.mxu1 %v12526_v32  ;;  %v402_v62 = vld [vmem:[%s15208_s3 + $0x78] sm:$0xff] }
 0x396   : > { %5989 = vmatprep.subr.mxu1 %v5885_v23 }
 0x398   : > { %5856 = vmatmul.mubr.f32.gmra.mrb[26].mxu1 %v13934_v24 }
 0x399   : > { %5861 = vmatprep.mubr.f32.mxu1 %v12526_v32 }
 0x39c   : > { %5867 = vmatmul.mubr.f32.gmra.mrb[28].mxu1 %v13943_v3  ;;  %v12531_v3 = vmov 3  }
 0x39d   : > { %5872 = vmatprep.mubr.f32.mxu1 %v12526_v32  ;;  %12370 = vset.pattern.permute.xlu0 %v12531_v3 }
 0x39e   : > { %12371 = vset.pattern.permute.xlu1 %v12531_v3  ;;  %6402 = vperm.xlu0 %12370, %v13850_v38   ;;  %v401_v38 = vld [vmem:[%s15208_s3 + $0x70] sm:$0xff] }
 0x39f   : > { %6406 = vperm.xlu1 %12371, %v13858_v63  }
 0x3a0   : > { %5878 = vmatmul.mubr.f32.gmra.mrb[30].mxu1 %v13949_v13  ;;  %v400_v13 = vld [vmem:[%s15208_s3 + $0x68] sm:$0xff] }
 0x3a1   : > { %5958 = vmatprep.mubr.f32.mxu1 %v12526_v32  ;;  %v6421_v23 = vsel %vm444_vm0, %v400_v13, 0 }
 0x3a2   : > { %6414 = vperm.xlu0 %12370, %v13874_v49   ;;  %v14119_v54 = vand.u32 4294901760, %v6421_v23 }
 0x3a3   : > { %6410 = vperm.xlu1 %12371, %v13866_v9   ;;  %v6424_v9 = vsel %vm444_vm0, %v401_v38, 0 }
 0x3a4   : > { %5960 = vmatmul.mubr.f32.vlgmr.msra.gmra.mrb[24].mxu1 %v13884_v43 }
 0x3a5   : > { %5992 = vmatpush1.msra.mxu1 %v5891_v36  ;;  %5965 = vmatprep.mubr.f32.mxu1 %v12526_v32 }
 0x3a6   : > { %6089 = vmatprep.subr.mxu1 %v13980_v61 }
 0x3a8   : > { %5967 = vmatmul.mubr.f32.gmra.mrb[26].mxu1 %v13892_v46 }
 0x3a9   : > { %5972 = vmatprep.mubr.f32.mxu1 %v12526_v32 }
 0x3ac   : > { %5974 = vmatmul.mubr.f32.gmra.mrb[28].mxu1 %v13901_v30 }
 0x3ad   : > { %5979 = vmatprep.mubr.f32.mxu1 %v12526_v32 }
 0x3b0   : > { %5981 = vmatmul.mubr.f32.gmra.mrb[30].mxu1 %v13916_v26 }
 0x3b1   : > { %6055 = vmatprep.mubr.f32.mxu1 %v12526_v32 }
 0x3b4   : > { %6058 = vmatmul.mubr.f32.vlgmr.msra.gmra.mrb[24].mxu1 %v13890_v51 }
 0x3b5   : > { %6091 = vmatpush1.msra.mxu1 %v13994_v22  ;;  %6063 = vmatprep.mubr.f32.mxu1 %v12526_v32 }
 0x3b6   : > { %6194 = vmatprep.subr.mxu1 %v5886_v21 }
 0x3b8   : > { %6066 = vmatmul.mubr.f32.gmra.mrb[26].mxu1 %v13899_v48 }
 0x3b9   : > { %6071 = vmatprep.mubr.f32.mxu1 %v12526_v32 }
 0x3bc   : > { %6074 = vmatmul.mubr.f32.gmra.mrb[28].mxu1 %v13909_v59  ;;  %v3722_v59 = vpop.permute.xlu1 %3721 }
 0x3bd   : > { %6079 = vmatprep.mubr.f32.mxu1 %v12526_v32  ;;  %v11803_v44 = vadd.f32 %v14014_v10, %v3722_v59  ;;  %v11804_v14 = vadd.f32 %v14017_v60, %v3722_v59  ;;  %v14124_v60 = vsub.f32 %v6421_v23, %v14119_v54 }
 0x3be   : > { %v5747_v51 = vpop.f32.mrb[20].mxu0 }
 0x3bf   : > { %v5749_v8 = vpop.f32.mrb[21].mxu0  ;;  %v11807_v21 = vadd.f32 %v5747_v51, %v3714_v16 }
 0x3c0   : > { %6082 = vmatmul.mubr.f32.gmra.mrb[30].mxu1 %v13926_v50  ;;  %v3726_v50 = vpop.permute.xlu1 %3725  ;;  %v11808_v63 = vadd.f32 %v5749_v8, %v3714_v16 }
 0x3c1   : > { %6154 = vmatprep.mubr.f32.mxu1 %v12526_v32  ;;  %v11805_v6 = vadd.f32 %v14020_v47, %v3726_v50  ;;  %v11806_v24 = vadd.f32 %v14023_v0, %v3726_v50 }
 0x3c2   : > { %v5754_v17 = vpop.f32.mrb[22].mxu0 }
 0x3c3   : > { %v11809_v49 = vadd.f32 %v5754_v17, %v3718_v29 }
 0x3c4   : > { %6158 = vmatmul.mubr.f32.vlgmr.msra.gmra.mrb[24].mxu1 %v13896_v7  ;;  %v5756_v7 = vpop.f32.mrb[23].mxu0 }
 0x3c5   : > { %6198 = vmatpush1.msra.mxu1 %v5892_v28  ;;  %6163 = vmatprep.mubr.f32.mxu1 %v12526_v32  ;;  %v11810_v1 = vadd.f32 %v5756_v7, %v3718_v29 }
 0x3c6   : > { %6291 = vmatprep.subr.mxu1 %v13980_v61  ;;  %v14074_v48 = vpop.f32.mrb[24].mxu0  ;;  %v14108_v61 = vand.u32 4294901760, %v6418_v52 }
 0x3c7   : > { %v14076_v35 = vpop.f32.mrb[25].mxu0  ;;  %v11811_v47 = vadd.f32 %v14074_v48, %v3722_v59 }
 0x3c8   : > { %6167 = vmatmul.mubr.f32.gmra.mrb[26].mxu1 %v13912_v15  ;;  %v11812_v17 = vadd.f32 %v14076_v35, %v3722_v59 }
 0x3c9   : > { %6172 = vmatprep.mubr.f32.mxu1 %v12526_v32 }
 0x3cc   : > { %6176 = vmatmul.mubr.f32.gmra.mrb[28].mxu1 %v13929_v20 }
 0x3cd   : > { %6181 = vmatprep.mubr.f32.mxu1 %v12526_v32 }
 0x3d0   : > { %6185 = vmatmul.mubr.f32.gmra.mrb[30].mxu1 %v13939_v33 }
 0x3d1   : > { %6261 = vmatprep.mubr.f32.mxu1 %v12526_v32 }
 0x3d4   : > { %6263 = vmatmul.mubr.f32.vlgmr.msra.gmra.mrb[24].mxu1 %v13884_v43 }
 0x3d5   : > { %6293 = vmatpush1.msra.mxu1 %v13994_v22  ;;  %6268 = vmatprep.mubr.f32.mxu1 %v12526_v32  ;;  %v14117_v22 = vsub.f32 %v6418_v52, %v14108_v61 }
 0x3d7   : > { %v6504_v10 = vand.u32 4294901760, %v14117_v22 }
 0x3d8   : > { %6270 = vmatmul.mubr.f32.gmra.mrb[26].mxu1 %v13892_v46 }
 0x3d9   : > { %6275 = vmatprep.mubr.f32.mxu1 %v12526_v32  ;;  %v14145_v35 = vsub.f32 %v14117_v22, %v6504_v10 }
 0x3dc   : > { %6277 = vmatmul.mubr.f32.gmra.mrb[28].mxu1 %v13901_v30 }
 0x3dd   : > { %6282 = vmatprep.mubr.f32.mxu1 %v12526_v32 }
 0x3e0   : > { %6284 = vmatmul.mubr.f32.gmra.mrb[30].mxu1 %v13916_v26 }
 0x3e1   : > { %6356 = vmatprep.mubr.f32.mxu1 %v12526_v32 }
 0x3e4   : > { %6358 = vmatmul.mubr.f32.vlgmr.msra.gmra.mrb[24].mxu1 %v13884_v43  ;;  %v14079_v43 = vpop.f32.mrb[26].mxu0 }
 0x3e5   : > { %6363 = vmatprep.mubr.f32.mxu1 %v12526_v32  ;;  %v11813_v7 = vadd.f32 %v14079_v43, %v3726_v50  ;;  %v6515_v43 = vand.u32 4294901760, %v14124_v60 }
 0x3e8   : > { %6365 = vmatmul.mubr.f32.gmra.mrb[26].mxu1 %v13892_v46  ;;  %v14081_v46 = vpop.f32.mrb[27].mxu0 }
 0x3e9   : > { %6370 = vmatprep.mubr.f32.mxu1 %v12526_v32  ;;  %v11814_v29 = vadd.f32 %v14081_v46, %v3726_v50 }
 0x3ec   : > { %6372 = vmatmul.mubr.f32.gmra.mrb[28].mxu1 %v13901_v30  ;;  %v11800_v30 = vadd.f32 %v14005_v45, %v3714_v16  ;;  %v14130_v16 = vand.u32 4294901760, %v6424_v9 }
 0x3ed   : > { %6377 = vmatprep.mubr.f32.mxu1 %v12526_v32 }
 0x3f0   : > { %6379 = vmatmul.mubr.f32.gmra.mrb[30].mxu1 %v13916_v26 }
 0x3f1   : > { %7202 = vmatprep.mubr.f32.mxu1 %v12526_v32 }
 0x457   : > { %v5033_v41 = vpop.f32.mrb[16].mxu1 }
 0x458   : > { %v5059_v58 = vmul.f32 %v11799_v2, %v5033_v41  ;;  %v5035_v56 = vpop.f32.mrb[17].mxu1 }
 0x459   : > { %v5060_v15 = vmul.f32 %v11800_v30, %v5035_v56  ;;  %v14138_v56 = vsel %vm444_vm0, %v402_v62, 0 }
 0x45b   : > { %v5040_v26 = vpop.f32.mrb[18].mxu1 }
 0x45c   : > { %v5061_v39 = vmul.f32 %v11801_v4, %v5040_v26  ;;  %v5042_v53 = vpop.f32.mrb[19].mxu1 }
 0x45d   : > { %v5062_v57 = vmul.f32 %v11802_v18, %v5042_v53 }
 0x45f   : > { %v5047_v25 = vpop.f32.mrb[20].mxu1 }
 0x460   : > { %v14089_v12 = vmul.f32 %v11803_v44, %v5047_v25  ;;  %v5049_v20 = vpop.f32.mrb[21].mxu1 }
 0x461   : > { %v14091_v34 = vmul.f32 %v11804_v14, %v5049_v20  ;;  %v14154_v14 = vand.u32 4294901760, %v14138_v56 }
 0x463   : > { %v5054_v42 = vpop.f32.mrb[22].mxu1 }
 0x464   : > { %v14095_v11 = vmul.f32 %v11805_v6, %v5054_v42  ;;  %v5056_v33 = vpop.f32.mrb[23].mxu1 }
 0x465   : > { %v14097_v27 = vmul.f32 %v11806_v24, %v5056_v33 }
 0x4b7   : > { %v6359_v40 = vpop.f32.mrb[24].mxu1 }
 0x4b8   : > { %v6385_v36 = vmul.f32 %v11807_v21, %v6359_v40  ;;  %v6361_v5 = vpop.f32.mrb[25].mxu1 }
 0x4b9   : > { %v6386_v45 = vmul.f32 %v11808_v63, %v6361_v5 }
 0x4ba   : > { %v6393_v28 = vadd.f32 %v6385_v36, %v5059_v58 }
 0x4bb   : > { %v6394_v37 = vadd.f32 %v6386_v45, %v5060_v15  ;;  %v6366_v55 = vpop.f32.mrb[26].mxu1 }
 0x4bc   : > { %v6431_v0 = vand.u32 4294901760, %v6393_v28  ;;  %v6387_v51 = vmul.f32 %v11809_v49, %v6366_v55  ;;  %v6368_v8 = vpop.f32.mrb[27].mxu1 }
 0x4bd   : > { %v6429_v2 = vand.u32 4294901760, %v6394_v37  ;;  %v6388_v30 = vmul.f32 %v11810_v1, %v6368_v8 }
 0x4be   : > { %v14135_v41 = vsub.f32 %v6393_v28, %v6431_v0  ;;  %v6395_v58 = vadd.f32 %v6387_v51, %v5061_v39  ;;  %v14150_v39 = vsub.f32 %v6424_v9, %v14130_v16 }
 0x4bf   : > { %v14140_v48 = vsub.f32 %v6394_v37, %v6429_v2  ;;  %v6396_v15 = vadd.f32 %v6388_v30, %v5062_v57  ;;  %v6373_v4 = vpop.f32.mrb[28].mxu1 }
 0x4c0   : > { %v6554_v59 = vand.u32 4294901760, %v14135_v41  ;;  %v6435_v46 = vand.u32 4294901760, %v6395_v58  ;;  %v6389_v18 = vmul.f32 %v11811_v47, %v6373_v4  ;;  %v6375_v26 = vpop.f32.mrb[29].mxu1 }
 0x4c1   : > { %v6433_v53 = vand.u32 4294901760, %v6396_v15  ;;  %v6390_v44 = vmul.f32 %v11812_v17, %v6375_v26  ;;  %v6548_v57 = vand.u32 4294901760, %v14140_v48  ;;  %v14201_v26 = vsub.f32 %v14138_v56, %v14154_v14 }
 0x4c2   : > { %v6555_v50 = vsub.f32 %v14135_v41, %v6554_v59  ;;  %v14157_v25 = vpack.c.bf16 %v6435_v46, %v6431_v0  ;;  %v14159_v20 = vsub.f32 %v6395_v58, %v6435_v46  ;;  %v6397_v6 = vadd.f32 %v6389_v18, %v14089_v12 }
 0x4c3   : > { %v14162_v24 = vsub.f32 %v6396_v15, %v6433_v53  ;;  %v6398_v42 = vadd.f32 %v6390_v44, %v14091_v34  ;;  %v6380_v33 = vpop.f32.mrb[30].mxu1  ;;  %v14165_v31 = vpack.c.bf16 %v6433_v53, %v6429_v2  ;;  %v6549_v3 = vsub.f32 %v14140_v48, %v6548_v57 }
 0x4c4   : > { %v6566_v52 = vand.u32 4294901760, %v14159_v20  ;;  %v6439_v13 = vand.u32 4294901760, %v6397_v6  ;;  %v6391_v23 = vmul.f32 %v11813_v7, %v6380_v33  ;;  %v6382_v21 = vpop.f32.mrb[31].mxu1  ;;  %v6556_v38 = vand.u32 4294901760, %v6555_v50 }
 0x4c5   : > { %v6437_v63 = vand.u32 4294901760, %v6398_v42  ;;  %v6392_v40 = vmul.f32 %v11814_v29, %v6382_v21  ;;  %11440 = vmatprep.subr.bf16.mxu0 %v14165_v31  ;;  %v6550_v12 = vand.u32 4294901760, %v6549_v3  ;;  %v6560_v36 = vand.u32 4294901760, %v14162_v24 }
 0x4c6   : > { %v6567_v34 = vsub.f32 %v14159_v20, %v6566_v52  ;;  %v14172_v5 = vsub.f32 %v6397_v6, %v6439_v13  ;;  %v6399_v45 = vadd.f32 %v6391_v23, %v14095_v11  ;;  %11442 = vmatpush1.bf16.msra.mxu0 %v14157_v25  ;;  %v11455_v9 = vpack.c.bf16 %v14162_v24, %v14140_v48 }
 0x4c7   : > { %v6571_v49 = vsub.f32 %v6398_v42, %v6437_v63  ;;  %v6400_v28 = vadd.f32 %v6392_v40, %v14097_v27  ;;  %v6561_v1 = vsub.f32 %v14162_v24, %v6560_v36  ;;  %v11457_v37 = vpack.c.bf16 %v14159_v20, %v14135_v41 }
 0x4c8   : > { %v6578_v55 = vand.u32 4294901760, %v14172_v5  ;;  %v6443_v62 = vand.u32 4294901760, %v6399_v45  ;;  %v6568_v47 = vand.u32 4294901760, %v6567_v34  ;;  %v14183_v0 = vpack.c.bf16 %v6560_v36, %v6548_v57 }
 0x4c9   : > { %v6441_v11 = vand.u32 4294901760, %v6400_v28  ;;  %v6562_v51 = vand.u32 4294901760, %v6561_v1  ;;  %v6572_v8 = vand.u32 4294901760, %v6571_v49  ;;  %v14185_v17 = vpack.c.bf16 %v6566_v52, %v6554_v59  ;;  %v12413_v1 = vld [vmem:[%s12725_s25 + $0x18] sm:$0xff] }
 0x4ca   : > { %v14187_v7 = vpack.c.bf16 %v6443_v62, %v6439_v13  ;;  %v6589_v2 = vsub.f32 %v6399_v45, %v6443_v62  ;;  %v6506_v27 = vand.u32 4294901760, %v14145_v35  ;;  %v11449_v30 = vpack.c.bf16 %v6568_v47, %v6556_v38 }
 0x4cb   : > { %v6583_v29 = vsub.f32 %v6400_v28, %v6441_v11  ;;  %v14190_v58 = vpack.c.bf16 %v6441_v11, %v6437_v63  ;;  %v11447_v41 = vpack.c.bf16 %v6562_v51, %v6550_v12  ;;  %v6516_v48 = vsub.f32 %v14124_v60, %v6515_v43 }
 0x4cc   : > { %v6579_v15 = vsub.f32 %v14172_v5, %v6578_v55  ;;  %v6590_v4 = vand.u32 4294901760, %v6589_v2  ;;  %v6526_v59 = vand.u32 4294901760, %v14150_v39  ;;  %v11461_v46 = vpack.c.bf16 %v6589_v2, %v14172_v5 }
 0x4cd   : > { %11444 = vmatprep.subr.bf16.mxu0 %v14190_v58  ;;  %v6573_v18 = vsub.f32 %v6571_v49, %v6572_v8  ;;  %v6584_v35 = vand.u32 4294901760, %v6583_v29  ;;  %v11459_v53 = vpack.c.bf16 %v6583_v29, %v6571_v49  ;;  %v6517_v6 = vand.u32 4294901760, %v6516_v48  ;;  %v12412_v49 = vld [vmem:[%s12725_s25 + $0x10] sm:$0xff] }
 0x4ce   : > { %v6591_v44 = vsub.f32 %v6589_v2, %v6590_v4  ;;  %11446 = vmatpush1.bf16.msra.mxu0 %v14187_v7  ;;  %v11477_v57 = vpack.c.bf16 %v6590_v4, %v6578_v55  ;;  %v6580_v24 = vand.u32 4294901760, %v6579_v15  ;;  %v6527_v52 = vsub.f32 %v14150_v39, %v6526_v59  ;;  %v12414_v2 = vld [vmem:[%s12725_s25 + $0x20] sm:$0xff] }
 0x4cf   : > { %11448 = vmatprep.subr.bf16.mxu0 %v11447_v41  ;;  %v6585_v50 = vsub.f32 %v6583_v29, %v6584_v35  ;;  %v11475_v20 = vpack.c.bf16 %v6584_v35, %v6572_v8  ;;  %v6574_v33 = vand.u32 4294901760, %v6573_v18  ;;  %v6537_v56 = vand.u32 4294901760, %v14201_v26 }
 0x4d0   : > { %v6592_v42 = vand.u32 4294901760, %v6591_v44  ;;  %v6528_v21 = vand.u32 4294901760, %v6527_v52  ;;  %v7128_v45 = vsel %vm444_vm0, 0.03125, %v12527_v19 }
 0x4d1   : > { %6507 = vmatmul.mubr.f32.vlgmr.msra.gmra.mrb[28].mxu0 %v6506_v27  ;;  %v6586_v3 = vand.u32 4294901760, %v6585_v50  ;;  %v6538_v38 = vsub.f32 %v14201_v26, %v6537_v56  ;;  %v14285_v51 = vsub.f32 %v7128_v45, %v7128_v45 }
 0x4d2   : > { %11450 = vmatpush1.bf16.msra.mxu0 %v11449_v30  ;;  %6512 = vmatprep.mubr.f32.mxu0 %v12526_v32  ;;  %v11453_v13 = vpack.c.bf16 %v6592_v42, %v6580_v24  ;;  %v12415_v30 = vld [vmem:[%s12725_s25 + $0x28] sm:$0xff]  ;;  %v12416_v24 = vld [vmem:[%s12725_s25 + $0x30] sm:$0xff] }
 0x4d3   : > { %v11451_v23 = vpack.c.bf16 %v6586_v3, %v6574_v33  ;;  %v6539_v63 = vand.u32 4294901760, %v6538_v38  ;;  %v12417_v33 = vld [vmem:[%s12725_s25 + $0x38] sm:$0xff] }
 0x4d5   : > { %6518 = vmatmul.mubr.f32.gmra.mrb[30].mxu0 %v6517_v6  ;;  %11452 = vmatprep.subr.bf16.mxu0 %v11451_v23 }
 0x4d6   : > { %11454 = vmatpush1.bf16.msra.mxu0 %v11453_v13  ;;  %6523 = vmatprep.mubr.f32.mxu0 %v12526_v32 }
 0x4d7   : > { %11456 = vmatprep.subr.bf16.mxu0 %v11455_v9 }
 0x4d9   : > { %6529 = vmatmul.mubr.f32.gmra.mrb[32].mxu0 %v6528_v21 }
 0x4da   : > { %6534 = vmatprep.mubr.f32.mxu0 %v12526_v32 }
 0x4dd   : > { %6540 = vmatmul.mubr.f32.gmra.mrb[34].mxu0 %v6539_v63 }
 0x4de   : > { %6650 = vmatprep.mubr.f32.mxu0 %v12526_v32 }
 0x4e1   : > { %6652 = vmatmul.mubr.f32.vlgmr.msra.gmra.mrb[28].mxu0 %v14108_v61 }
 0x4e2   : > { %11458 = vmatpush1.bf16.msra.mxu0 %v11457_v37  ;;  %6657 = vmatprep.mubr.f32.mxu0 %v12526_v32 }
 0x4e3   : > { %11460 = vmatprep.subr.bf16.mxu0 %v11459_v53  ;;  %v14311_v53 = vand.u32 4294901760, %v14285_v51 }
 0x4e5   : > { %6659 = vmatmul.mubr.f32.gmra.mrb[30].mxu0 %v14119_v54 }
 0x4e6   : > { %11462 = vmatpush1.bf16.msra.mxu0 %v11461_v46  ;;  %6664 = vmatprep.mubr.f32.mxu0 %v12526_v32 }
 0x4e7   : > { %11464 = vmatprep.subr.bf16.mxu0 %v14165_v31 }
 0x4e9   : > { %6666 = vmatmul.mubr.f32.gmra.mrb[32].mxu0 %v14130_v16 }
 0x4ea   : > { %6671 = vmatprep.mubr.f32.mxu0 %v12526_v32 }
 0x4ed   : > { %6673 = vmatmul.mubr.f32.gmra.mrb[34].mxu0 %v14154_v14 }
 0x4ee   : > { %6759 = vmatprep.mubr.f32.mxu0 %v12526_v32 }
 0x4f1   : > { %6762 = vmatmul.mubr.f32.vlgmr.msra.gmra.mrb[28].mxu0 %v14117_v22  ;;  %v6403_v22 = vpop.permute.xlu0 %6402 }
 0x4f2   : > { %11466 = vmatpush1.bf16.msra.mxu0 %v14157_v25  ;;  %6767 = vmatprep.mubr.f32.mxu0 %v12526_v32 }
 0x4f3   : > { %11468 = vmatprep.subr.bf16.mxu0 %v14190_v58 }
 0x4f5   : > { %6770 = vmatmul.mubr.f32.gmra.mrb[30].mxu0 %v14124_v60  ;;  %v6407_v60 = vpop.permute.xlu1 %6406 }
 0x4f6   : > { %11470 = vmatpush1.bf16.msra.mxu0 %v14187_v7  ;;  %6775 = vmatprep.mubr.f32.mxu0 %v12526_v32 }
 0x4f7   : > { %11472 = vmatprep.subr.bf16.mxu0 %v14183_v0 }
 0x4f9   : > { %6778 = vmatmul.mubr.f32.gmra.mrb[32].mxu0 %v14150_v39  ;;  %v6411_v34 = vpop.permute.xlu1 %6410 }
 0x4fa   : > { %6783 = vmatprep.mubr.f32.mxu0 %v12526_v32 }
 0x4fd   : > { %6786 = vmatmul.mubr.f32.gmra.mrb[34].mxu0 %v14201_v26 }
 0x4fe   : > { %6864 = vmatprep.mubr.f32.mxu0 %v12526_v32 }
 0x501   : > { %6868 = vmatmul.mubr.f32.vlgmr.msra.gmra.mrb[28].mxu0 %v6504_v10 }
 0x502   : > { %11474 = vmatpush1.bf16.msra.mxu0 %v14185_v17  ;;  %6873 = vmatprep.mubr.f32.mxu0 %v12526_v32 }
 0x503   : > { %11476 = vmatprep.subr.bf16.mxu0 %v11475_v20 }
 0x505   : > { %6877 = vmatmul.mubr.f32.gmra.mrb[30].mxu0 %v6515_v43 }
 0x506   : > { %11478 = vmatpush1.bf16.msra.mxu0 %v11477_v57  ;;  %6882 = vmatprep.mubr.f32.mxu0 %v12526_v32 }
 0x507   : > { %11480 = vmatprep.subr.bf16.mxu0 %v14165_v31  ;;  %v12411_v31 = vld [vmem:[%s12725_s25 + $0x8] sm:$0xff] }
 0x509   : > { %6886 = vmatmul.mubr.f32.gmra.mrb[32].mxu0 %v6526_v59 }
 0x50a   : > { %6891 = vmatprep.mubr.f32.mxu0 %v12526_v32 }
 0x50d   : > { %6895 = vmatmul.mubr.f32.gmra.mrb[34].mxu0 %v6537_v56 }
 0x50e   : > { %6989 = vmatprep.mubr.f32.mxu0 %v12526_v32 }
 0x511   : > { %6991 = vmatmul.mubr.f32.vlgmr.msra.gmra.mrb[28].mxu0 %v14108_v61 }
 0x512   : > { %11482 = vmatpush1.bf16.msra.mxu0 %v14157_v25  ;;  %6996 = vmatprep.mubr.f32.mxu0 %v12526_v32  ;;  %v12410_v25 = vld [vmem:[%s12725_s25] sm:$0xff] }
 0x513   : > { %11484 = vmatprep.subr.bf16.mxu0 %v14190_v58  ;;  %v6415_v58 = vpop.permute.xlu0 %6414 }
 0x515   : > { %6998 = vmatmul.mubr.f32.gmra.mrb[30].mxu0 %v14119_v54 }
 0x516   : > { %11486 = vmatpush1.bf16.msra.mxu0 %v14187_v7  ;;  %7003 = vmatprep.mubr.f32.mxu0 %v12526_v32 }
 0x519   : > { %7005 = vmatmul.mubr.f32.gmra.mrb[32].mxu0 %v14130_v16 }
 0x51a   : > { %7010 = vmatprep.mubr.f32.mxu0 %v12526_v32 }
 0x51d   : > { %7012 = vmatmul.mubr.f32.gmra.mrb[34].mxu0 %v14154_v14 }
 0x51e   : > { %7090 = vmatprep.mubr.f32.mxu0 %v12526_v32 }
 0x521   : > { %7092 = vmatmul.mubr.f32.vlgmr.msra.gmra.mrb[28].mxu0 %v14108_v61 }
 0x522   : > { %7097 = vmatprep.mubr.f32.mxu0 %v12526_v32 }
 0x525   : > { %7099 = vmatmul.mubr.f32.gmra.mrb[30].mxu0 %v14119_v54 }
 0x526   : > { %7104 = vmatprep.mubr.f32.mxu0 %v12526_v32 }
 0x529   : > { %7106 = vmatmul.mubr.f32.gmra.mrb[32].mxu0 %v14130_v16 }
 0x52a   : > { %7111 = vmatprep.mubr.f32.mxu0 %v12526_v32 }
 0x52d   : > { %7113 = vmatmul.mubr.f32.gmra.mrb[34].mxu0 %v14154_v14 }
 0x52e   : > { %8406 = vmatprep.mubr.f32.mxu0 %v12526_v32 }
 0x5f4   : > { %v7093_v10 = vpop.f32.mrb[28].mxu0 }
 0x5f5   : > { %v11815_v61 = vadd.f32 %v7093_v10, %v6403_v22  ;;  %v7095_v43 = vpop.f32.mrb[29].mxu0 }
 0x5f6   : > { %v11816_v39 = vadd.f32 %v7095_v43, %v6403_v22  ;;  %v7206_v22 = vsub.f32 %v14285_v51, %v14311_v53 }
 0x5f7   : > { %v14266_v54 = vadd.f32 %v12410_v25, %v11815_v61 }
 0x5f8   : > { %v14269_v40 = vadd.f32 %v12411_v31, %v11816_v39  ;;  %v7100_v16 = vpop.f32.mrb[30].mxu0 }
 0x5f9   : > { %v11817_v12 = vadd.f32 %v7100_v16, %v6407_v60  ;;  %v7102_v36 = vpop.f32.mrb[31].mxu0  ;;  %v7132_v9 = vand.u32 4294901760, %v14266_v54 }
 0x5fa   : > { %v11818_v14 = vadd.f32 %v7102_v36, %v6407_v60  ;;  %v7130_v5 = vand.u32 4294901760, %v14269_v40 }
 0x5fb   : > { %v14276_v28 = vadd.f32 %v12412_v49, %v11817_v12  ;;  %v14289_v17 = vsub.f32 %v14266_v54, %v7132_v9 }
 0x5fc   : > { %v14279_v37 = vadd.f32 %v12413_v1, %v11818_v14  ;;  %v7107_v55 = vpop.f32.mrb[32].mxu0  ;;  %v14282_v62 = vsub.f32 %v14269_v40, %v7130_v5 }
 0x5fd   : > { %v7136_v47 = vand.u32 4294901760, %v14276_v28  ;;  %v11819_v0 = vadd.f32 %v7107_v55, %v6411_v34  ;;  %v7109_v11 = vpop.f32.mrb[33].mxu0  ;;  %v7222_v20 = vand.u32 4294901760, %v14289_v17 }
 0x5fe   : > { %v11820_v19 = vadd.f32 %v7109_v11, %v6411_v34  ;;  %v7134_v8 = vand.u32 4294901760, %v14279_v37  ;;  %v7216_v4 = vand.u32 4294901760, %v14282_v62  ;;  %v14350_v34 = vand.u32 4294901760, %v7206_v22 }
 0x5ff   : > { %v14292_v7 = vsub.f32 %v14276_v28, %v7136_v47  ;;  %v14295_v27 = vadd.f32 %v12414_v2, %v11819_v0  ;;  %v14308_v26 = vpack.c.bf16 %v7136_v47, %v7132_v9  ;;  %v7223_v43 = vsub.f32 %v14289_v17, %v7222_v20 }
 0x600   : > { %v14298_v29 = vadd.f32 %v12415_v30, %v11820_v19  ;;  %v7114_v41 = vpop.f32.mrb[34].mxu0  ;;  %v14300_v48 = vpack.c.bf16 %v7134_v8, %v7130_v5  ;;  %v14303_v15 = vsub.f32 %v14279_v37, %v7134_v8  ;;  %v7217_v56 = vsub.f32 %v14282_v62, %v7216_v4 }
 0x601   : > { %v7234_v59 = vand.u32 4294901760, %v14292_v7  ;;  %v7140_v46 = vand.u32 4294901760, %v14295_v27  ;;  %v11821_v18 = vadd.f32 %v7114_v41, %v6415_v58  ;;  %v7116_v35 = vpop.f32.mrb[35].mxu0  ;;  %v7224_v9 = vand.u32 4294901760, %v7223_v43 }
 0x602   : > { %v11822_v44 = vadd.f32 %v7116_v35, %v6415_v58  ;;  %11488 = vmatprep.subr.bf16.mxu1 %v14300_v48  ;;  %v7138_v57 = vand.u32 4294901760, %v14298_v29  ;;  %v7228_v50 = vand.u32 4294901760, %v14303_v15  ;;  %v7218_v31 = vand.u32 4294901760, %v7217_v56 }
 0x603   : > { %v14318_v6 = vsub.f32 %v14295_v27, %v7140_v46  ;;  %v14321_v42 = vadd.f32 %v12416_v24, %v11821_v18  ;;  %11490 = vmatpush1.bf16.msra.mxu1 %v14308_v26  ;;  %v7235_v21 = vsub.f32 %v14292_v7, %v7234_v59  ;;  %v11503_v58 = vpack.c.bf16 %v14303_v15, %v14282_v62 }
 0x604   : > { %v14325_v3 = vadd.f32 %v12417_v33, %v11822_v44  ;;  %v14328_v52 = vsub.f32 %v14298_v29, %v7138_v57  ;;  %v7229_v13 = vsub.f32 %v14303_v15, %v7228_v50  ;;  %v11505_v41 = vpack.c.bf16 %v14292_v7, %v14289_v17  ;;  %v14390_v17 = vld [vmem:[%s15209_s4] sm:$0xff]  ;;  %v14396_v7 = vld [vmem:[%s15209_s4 + $0x8] sm:$0xff]  ;;  %v14402_v15 = vld [vmem:[%s15209_s4 + $0x10] sm:$0xff] }
 0x605   : > { %v7144_v23 = vand.u32 4294901760, %v14321_v42  ;;  %v7246_v60 = vand.u32 4294901760, %v14318_v6  ;;  %v7236_v36 = vand.u32 4294901760, %v7235_v21  ;;  %v11519_v44 = vpack.c.bf16 %v7228_v50, %v7216_v4  ;;  %v14411_v4 = vld [vmem:[%s15209_s4 + $0x18] sm:$0xff] }
 0x606   : > { %v7142_v38 = vand.u32 4294901760, %v14325_v3  ;;  %v7230_v63 = vand.u32 4294901760, %v7229_v13  ;;  %v7240_v10 = vand.u32 4294901760, %v14328_v52  ;;  %v12533_v62 = vmov 6  }
 0x607   : > { %v7257_v61 = vsub.f32 %v14321_v42, %v7144_v23  ;;  %v11493_v12 = vpack.c.bf16 %v7144_v23, %v7140_v46  ;;  %v7247_v49 = vsub.f32 %v14318_v6, %v7246_v60  ;;  %v11497_v47 = vpack.c.bf16 %v7236_v36, %v7224_v9  ;;  %12372 = vset.pattern.permute.xlu1 %v12533_v62 }
 0x608   : > { %v11491_v39 = vpack.c.bf16 %v7142_v38, %v7138_v57  ;;  %v7251_v25 = vsub.f32 %v14325_v3, %v7142_v38  ;;  %v11495_v14 = vpack.c.bf16 %v7230_v63, %v7218_v31  ;;  %v7241_v5 = vsub.f32 %v14328_v52, %v7240_v10  ;;  %12373 = vset.pattern.permute.xlu0 %v12533_v62 }
 0x609   : > { %v7258_v16 = vand.u32 4294901760, %v7257_v61  ;;  %v7248_v8 = vand.u32 4294901760, %v7247_v49  ;;  %v15230_v46 = vmov 0.03125   ;;  %v11509_v35 = vpack.c.bf16 %v7257_v61, %v14318_v6  ;;  %8259 = vperm.xlu1 %12372, %v14390_v17   ;;  %8263 = vperm.xlu0 %12373, %v14396_v7  }
 0x60a   : > { %11492 = vmatprep.subr.bf16.mxu1 %v11491_v39  ;;  %v7252_v45 = vand.u32 4294901760, %v7251_v25  ;;  %v7242_v11 = vand.u32 4294901760, %v7241_v5  ;;  %v11507_v18 = vpack.c.bf16 %v7251_v25, %v14328_v52  ;;  %v11521_v57 = vpack.c.bf16 %v7234_v59, %v7222_v20 }
 0x60b   : > { %11494 = vmatpush1.bf16.msra.mxu1 %v11493_v12  ;;  %v7259_v1 = vsub.f32 %v7257_v61, %v7258_v16  ;;  %v11525_v24 = vpack.c.bf16 %v7258_v16, %v7246_v60  ;;  %v7673_v59 = vlaneseq }
 0x60c   : > { %11496 = vmatprep.subr.bf16.mxu1 %v11495_v14  ;;  %v7253_v55 = vsub.f32 %v7251_v25, %v7252_v45  ;;  %v11523_v6 = vpack.c.bf16 %v7252_v45, %v7240_v10 }
 0x60d   : > { %v7260_v0 = vand.u32 4294901760, %v7259_v1  ;;  %8267 = vperm.xlu0 %12373, %v14402_v15  }
 0x60e   : > { %7208 = vmatmul.mubr.f32.vlgmr.msra.gmra.mrb[32].mxu1 %v14350_v34  ;;  %v7254_v19 = vand.u32 4294901760, %v7253_v55 }
 0x60f   : > { %11498 = vmatpush1.bf16.msra.mxu1 %v11497_v47  ;;  %7318 = vmatprep.mubr.f32.mxu1 %v12526_v32  ;;  %v11501_v30 = vpack.c.bf16 %v7260_v0, %v7248_v8 }
 0x610   : > { %v11499_v2 = vpack.c.bf16 %v7254_v19, %v7242_v11 }
 0x612   : > { %11500 = vmatprep.subr.bf16.mxu1 %v11499_v2 }
 0x613   : > { %11502 = vmatpush1.bf16.msra.mxu1 %v11501_v30 }
 0x614   : > { %11504 = vmatprep.subr.bf16.mxu1 %v11503_v58 }
 0x616   : > { %11082 = vmatmul.mubr.msk.f32.vlgmr.msra.gmra.mrb[32].mxu1 %vm444_vm0, %v15230_v46 }
 0x617   : > { %11506 = vmatpush1.bf16.msra.mxu1 %v11505_v41  ;;  %7406 = vmatprep.mubr.f32.mxu1 %v12526_v32 }
 0x618   : > { %11508 = vmatprep.subr.bf16.mxu1 %v11507_v18 }
 0x61b   : > { %11510 = vmatpush1.bf16.msra.mxu1 %v11509_v35 }
 0x61c   : > { %11512 = vmatprep.subr.bf16.mxu1 %v14300_v48 }
 0x61e   : > { %7409 = vmatmul.mubr.f32.vlgmr.msra.gmra.mrb[32].mxu1 %v14285_v51 }
 0x61f   : > { %11514 = vmatpush1.bf16.msra.mxu1 %v14308_v26  ;;  %7487 = vmatprep.mubr.f32.mxu1 %v12526_v32 }
 0x620   : > { %11516 = vmatprep.subr.bf16.mxu1 %v11491_v39 }
 0x623   : > { %11518 = vmatpush1.bf16.msra.mxu1 %v11493_v12 }
 0x624   : > { %11520 = vmatprep.subr.bf16.mxu1 %v11519_v44 }
 0x626   : > { %7491 = vmatmul.mubr.f32.vlgmr.msra.gmra.mrb[32].mxu1 %v14311_v53 }
 0x627   : > { %11522 = vmatpush1.bf16.msra.mxu1 %v11521_v57  ;;  %7585 = vmatprep.mubr.f32.mxu1 %v12526_v32 }
 0x628   : > { %11524 = vmatprep.subr.bf16.mxu1 %v11523_v6 }
 0x62b   : > { %11526 = vmatpush1.bf16.msra.mxu1 %v11525_v24 }
 0x62c   : > { %11528 = vmatprep.subr.bf16.mxu1 %v14300_v48  ;;  %v12534_v48 = vmov 7  }
 0x62d   : > { %12374 = vset.pattern.permute.xlu1 %v12534_v48  ;;  %12376 = vset.pattern.permute.xlu0 %v12534_v48 }
 0x62e   : > { %11083 = vmatmul.mubr.msk.f32.vlgmr.msra.gmra.mrb[32].mxu1 %vm444_vm0, %v15230_v46  ;;  %8283 = vperm.xlu1 %12374, %v14390_v17  }
 0x62f   : > { %11530 = vmatpush1.bf16.msra.mxu1 %v14308_v26  ;;  %7665 = vmatprep.mubr.f32.mxu1 %v12526_v32  ;;  %v7674_v26 = vshrl.u32 %v7673_v59, 7 }
 0x630   : > { %11532 = vmatprep.subr.bf16.mxu1 %v11491_v39  ;;  %8291 = vperm.xlu0 %12376, %v14402_v15  }
 0x631   : > { %v14415_v50 = vsub.s32 0, %v7674_v26 }
 0x632   : > { %8287 = vperm.xlu1 %12374, %v14396_v7  }
 0x633   : > { %11534 = vmatpush1.bf16.msra.mxu1 %v11493_v12 }
 0x636   : > { %11084 = vmatmul.mubr.msk.f32.vlgmr.msra.gmra.mrb[32].mxu1 %vm444_vm0, %v15230_v46  ;;  %12375 = vset.pattern.permute.xlu1 %v12533_v62 }
 0x637   : > { %7769 = vmatprep.mubr.f32.mxu1 %v12526_v32  ;;  %8271 = vperm.xlu1 %12375, %v14411_v4  }
 0x63b   : > { %12377 = vset.pattern.permute.xlu1 %v12534_v48 }
 0x63c   : > { %8295 = vperm.xlu1 %12377, %v14411_v4  }
 0x709   : > { %v7668_v20 = vpop.f32.mrb[32].mxu1 }
 0x70a   : > { %v7676_v33 = vrot.slane %v7668_v20, %v14415_v50  ;;  %v7670_v52 = vpop.f32.mrb[33].mxu1 }
 0x70b   : > { %v7680_v56 = vrot.slane %v7670_v52, %v14415_v50 }
 0x70c   : > { %v14420_v13 = vsub.f32 %v14266_v54, %v7676_v33  ;;  %v14423_v23 = vsub.f32 %v14276_v28, %v7676_v33  ;;  %v14426_v21 = vsub.f32 %v14295_v27, %v7676_v33  ;;  %v14429_v38 = vsub.f32 %v14321_v42, %v7676_v33 }
 0x70d   : > { %v14432_v63 = vsub.f32 %v14269_v40, %v7680_v56  ;;  %v14435_v22 = vsub.f32 %v14279_v37, %v7680_v56  ;;  %v14438_v10 = vsub.f32 %v14298_v29, %v7680_v56  ;;  %v14441_v54 = vsub.f32 %v14325_v3, %v7680_v56 }
 0x70e   : > { %v7689_v28 = vmul.f32 %v14420_v13, %v14420_v13  ;;  %v7691_v27 = vmul.f32 %v14423_v23, %v14423_v23  ;;  %v7693_v42 = vmul.f32 %v14426_v21, %v14426_v21  ;;  %v7695_v40 = vmul.f32 %v14429_v38, %v14429_v38 }
 0x70f   : > { %v7690_v37 = vmul.f32 %v14432_v63, %v14432_v63  ;;  %v7692_v29 = vmul.f32 %v14435_v22, %v14435_v22  ;;  %v7694_v3 = vmul.f32 %v14438_v10, %v14438_v10  ;;  %v7696_v60 = vmul.f32 %v14441_v54, %v14441_v54 }
 0x710   : > { %v7699_v61 = vand.u32 4294901760, %v7689_v28  ;;  %v7703_v43 = vand.u32 4294901760, %v7691_v27  ;;  %v7707_v39 = vand.u32 4294901760, %v7693_v42  ;;  %v7711_v25 = vand.u32 4294901760, %v7695_v40 }
 0x711   : > { %v7697_v31 = vand.u32 4294901760, %v7690_v37  ;;  %v7701_v16 = vand.u32 4294901760, %v7692_v29  ;;  %v7705_v12 = vand.u32 4294901760, %v7694_v3  ;;  %v7709_v36 = vand.u32 4294901760, %v7696_v60 }
 0x712   : > { %v14459_v14 = vpack.c.bf16 %v7703_v43, %v7699_v61  ;;  %v14461_v5 = vsub.f32 %v7689_v28, %v7699_v61  ;;  %v14463_v45 = vsub.f32 %v7691_v27, %v7703_v43  ;;  %v14465_v9 = vpack.c.bf16 %v7711_v25, %v7707_v39 }
 0x713   : > { %v14467_v49 = vpack.c.bf16 %v7701_v16, %v7697_v31  ;;  %v7782_v1 = vsub.f32 %v7690_v37, %v7697_v31  ;;  %v7794_v55 = vsub.f32 %v7692_v29, %v7701_v16  ;;  %v14469_v47 = vpack.c.bf16 %v7709_v36, %v7705_v12 }
 0x714   : > { %v14471_v0 = vsub.f32 %v7694_v3, %v7705_v12  ;;  %v7818_v11 = vsub.f32 %v7696_v60, %v7709_v36  ;;  %v14473_v19 = vsub.f32 %v7693_v42, %v7707_v39  ;;  %v14475_v8 = vsub.f32 %v7695_v40, %v7711_v25 }
 0x715   : > { %11536 = vmatprep.subr.bf16.mxu1 %v14467_v49  ;;  %v7783_v2 = vand.u32 4294901760, %v7782_v1  ;;  %v7795_v30 = vand.u32 4294901760, %v7794_v55  ;;  %v7789_v58 = vand.u32 4294901760, %v14461_v5  ;;  %v7801_v41 = vand.u32 4294901760, %v14463_v45 }
 0x716   : > { %11538 = vmatpush1.bf16.msra.mxu1 %v14459_v14  ;;  %v7807_v18 = vand.u32 4294901760, %v14471_v0  ;;  %v7819_v35 = vand.u32 4294901760, %v7818_v11  ;;  %v7813_v44 = vand.u32 4294901760, %v14473_v19  ;;  %v7825_v57 = vand.u32 4294901760, %v14475_v8 }
 0x717   : > { %11540 = vmatprep.subr.bf16.mxu1 %v14469_v47  ;;  %v7784_v6 = vsub.f32 %v7782_v1, %v7783_v2  ;;  %v7796_v24 = vsub.f32 %v7794_v55, %v7795_v30  ;;  %v7790_v62 = vsub.f32 %v14461_v5, %v7789_v58  ;;  %v7802_v48 = vsub.f32 %v14463_v45, %v7801_v41 }
 0x718   : > { %v7808_v59 = vsub.f32 %v14471_v0, %v7807_v18  ;;  %v7820_v26 = vsub.f32 %v7818_v11, %v7819_v35  ;;  %v7814_v20 = vsub.f32 %v14473_v19, %v7813_v44  ;;  %v7826_v33 = vsub.f32 %v14475_v8, %v7825_v57 }
 0x719   : > { %v7785_v52 = vand.u32 4294901760, %v7784_v6  ;;  %v7797_v56 = vand.u32 4294901760, %v7796_v24  ;;  %v7791_v28 = vand.u32 4294901760, %v7790_v62  ;;  %v7803_v27 = vand.u32 4294901760, %v7802_v48  ;;  %v406_v62 = vld [vmem:[%s15208_s3 + $0x98] sm:$0xff] }
 0x71a   : > { %11542 = vmatpush1.bf16.msra.mxu1 %v14465_v9  ;;  %v7809_v42 = vand.u32 4294901760, %v7808_v59  ;;  %v7821_v40 = vand.u32 4294901760, %v7820_v26  ;;  %v7815_v3 = vand.u32 4294901760, %v7814_v20  ;;  %v7827_v60 = vand.u32 4294901760, %v7826_v33 }
 0x71b   : > { %v11543_v37 = vpack.c.bf16 %v7797_v56, %v7785_v52  ;;  %v11545_v29 = vpack.c.bf16 %v7803_v27, %v7791_v28  ;;  %v11551_v39 = vpack.c.bf16 %v7794_v55, %v7782_v1  ;;  %v11553_v25 = vpack.c.bf16 %v14463_v45, %v14461_v5  ;;  %v8260_v1 = vpop.permute.xlu1 %8259 }
 0x71c   : > { %v11547_v61 = vpack.c.bf16 %v7821_v40, %v7809_v42  ;;  %v11549_v43 = vpack.c.bf16 %v7827_v60, %v7815_v3  ;;  %v11555_v31 = vpack.c.bf16 %v7818_v11, %v14471_v0  ;;  %v11557_v16 = vpack.c.bf16 %v14475_v8, %v14473_v19 }
 0x71d   : > { %7775 = vmatmul.mubr.f32.vlgmr.msra.gmra.mrb[34].mxu1 %v14350_v34  ;;  %11544 = vmatprep.subr.bf16.mxu1 %v11543_v37  ;;  %v11567_v12 = vpack.c.bf16 %v7795_v30, %v7783_v2  ;;  %v11569_v36 = vpack.c.bf16 %v7801_v41, %v7789_v58  ;;  %v11571_v5 = vpack.c.bf16 %v7819_v35, %v7807_v18  ;;  %v12535_v19 = vmov 4   ;;  %v8264_v35 = vpop.permute.xlu0 %8263 }
 0x71e   : > { %11546 = vmatpush1.bf16.msra.mxu1 %v11545_v29  ;;  %7885 = vmatprep.mubr.f32.mxu1 %v12526_v32  ;;  %v11573_v45 = vpack.c.bf16 %v7825_v57, %v7813_v44  ;;  %v405_v44 = vld [vmem:[%s15208_s3 + $0x90] sm:$0xff]  ;;  %v14558_v52 = vsel %vm444_vm0, %v406_v62, 0 }
 0x71f   : > { %11548 = vmatprep.subr.bf16.mxu1 %v11547_v61  ;;  %12378 = vset.pattern.permute.xlu1 %v12535_v19  ;;  %v8329_v24 = vsel %vm444_vm0, %v405_v44, 0  ;;  %v14572_v3 = vand.u32 4294901760, %v14558_v52 }
 0x720   : > { %12379 = vset.pattern.permute.xlu0 %v12535_v19  ;;  %8307 = vperm.xlu1 %12378, %v14390_v17   ;;  %v14555_v33 = vand.u32 4294901760, %v8329_v24 }
 0x721   : > { %8311 = vperm.xlu0 %12379, %v14396_v7   ;;  %v8268_v26 = vpop.permute.xlu0 %8267 }
 0x722   : > { %11550 = vmatpush1.bf16.msra.mxu1 %v11549_v43  ;;  %v14569_v29 = vsub.f32 %v8329_v24, %v14555_v33 }
 0x723   : > { %11552 = vmatprep.subr.bf16.mxu1 %v11551_v39 }
 0x724   : > { %8315 = vperm.xlu1 %12378, %v14402_v15  }
 0x725   : > { %11085 = vmatmul.mubr.msk.f32.vlgmr.msra.gmra.mrb[34].mxu1 %vm444_vm0, %v15230_v46 }
 0x726   : > { %11554 = vmatpush1.bf16.msra.mxu1 %v11553_v25  ;;  %7973 = vmatprep.mubr.f32.mxu1 %v12526_v32 }
 0x727   : > { %11556 = vmatprep.subr.bf16.mxu1 %v11555_v31 }
 0x728   : > { %8319 = vperm.xlu1 %12378, %v14411_v4  }
 0x72a   : > { %11558 = vmatpush1.bf16.msra.mxu1 %v11557_v16 }
 0x72b   : > { %11560 = vmatprep.subr.bf16.mxu1 %v14467_v49 }
 0x72d   : > { %7976 = vmatmul.mubr.f32.vlgmr.msra.gmra.mrb[34].mxu1 %v14285_v51 }
 0x72e   : > { %11562 = vmatpush1.bf16.msra.mxu1 %v14459_v14  ;;  %8054 = vmatprep.mubr.f32.mxu1 %v12526_v32 }
 0x72f   : > { %11564 = vmatprep.subr.bf16.mxu1 %v14469_v47 }
 0x732   : > { %11566 = vmatpush1.bf16.msra.mxu1 %v14465_v9 }
 0x733   : > { %11568 = vmatprep.subr.bf16.mxu1 %v11567_v12 }
 0x735   : > { %8058 = vmatmul.mubr.f32.vlgmr.msra.gmra.mrb[34].mxu1 %v14311_v53 }
 0x736   : > { %11570 = vmatpush1.bf16.msra.mxu1 %v11569_v36  ;;  %8152 = vmatprep.mubr.f32.mxu1 %v12526_v32 }
 0x737   : > { %11572 = vmatprep.subr.bf16.mxu1 %v11571_v5  ;;  %v8292_v5 = vpop.permute.xlu0 %8291 }
 0x73a   : > { %11574 = vmatpush1.bf16.msra.mxu1 %v11573_v45 }
 0x73b   : > { %11576 = vmatprep.subr.bf16.mxu1 %v14467_v49  ;;  %v403_v49 = vld [vmem:[%s15208_s3 + $0x80] sm:$0xff] }
 0x73c   : > { %v8323_v55 = vsel %vm444_vm0, %v403_v49, 0 }
 0x73d   : > { %11086 = vmatmul.mubr.msk.f32.vlgmr.msra.gmra.mrb[34].mxu1 %vm444_vm0, %v15230_v46  ;;  %v14526_v0 = vand.u32 4294901760, %v8323_v55 }
 0x73e   : > { %11578 = vmatpush1.bf16.msra.mxu1 %v14459_v14  ;;  %8232 = vmatprep.mubr.f32.mxu1 %v12526_v32  ;;  %v404_v14 = vld [vmem:[%s15208_s3 + $0x88] sm:$0xff] }
 0x73f   : > { %11580 = vmatprep.subr.bf16.mxu1 %v14469_v47  ;;  %v8284_v47 = vpop.permute.xlu1 %8283  ;;  %v8326_v11 = vsel %vm444_vm0, %v404_v14, 0  ;;  %v14532_v58 = vsub.f32 %v8323_v55, %v14526_v0 }
 0x740   : > { %v14534_v41 = vand.u32 4294901760, %v8326_v11 }
 0x741   : > { %v15234_v57 = vand.u32 4294901760, %v14532_v58 }
 0x742   : > { %11582 = vmatpush1.bf16.msra.mxu1 %v14465_v9  ;;  %v14542_v6 = vsub.f32 %v8326_v11, %v14534_v41 }
 0x743   : > { %v8288_v18 = vpop.permute.xlu1 %8287  ;;  %v14552_v48 = vsub.f32 %v14532_v58, %v15234_v57 }
 0x744   : > { %v15232_v20 = vand.u32 4294901760, %v14542_v6 }
 0x745   : > { %11087 = vmatmul.mubr.msk.f32.vlgmr.msra.gmra.mrb[34].mxu1 %vm444_vm0, %v15230_v46  ;;  %v8411_v42 = vand.u32 4294901760, %v14552_v48 }
 0x746   : > { %9132 = vmatprep.mubr.f32.mxu1 %v12526_v32  ;;  %v14566_v37 = vsub.f32 %v14542_v6, %v15232_v20 }
 0x747   : > { %v8272_v59 = vpop.permute.xlu1 %8271 }
 0x748   : > { %v8422_v57 = vand.u32 4294901760, %v14566_v37 }
 0x74b   : > { %v8296_v36 = vpop.permute.xlu1 %8295 }
 0x818   : > { %v8235_v9 = vpop.f32.mrb[34].mxu1 }
 0x819   : > { %v11823_v8 = vadd.f32 1e-05, %v8235_v9  ;;  %v8237_v2 = vpop.f32.mrb[35].mxu1 }
 0x81a   : > { %v11824_v30 = vadd.f32 1e-05, %v8237_v2 }
 0x81b   : > { %12398 = vrsqrt.f32 %v11823_v8 }
 0x81c   : > { %12400 = vrsqrt.f32 %v11824_v30 }
 0x825   : > { %v12399_v56 = vpop.eup %12398 }
 0x826   : > { %v12401_v28 = vpop.eup %12400  ;;  %v8245_v27 = vrot.slane %v12399_v56, %v14415_v50 }
 0x827   : > { %v8249_v40 = vrot.slane %v12401_v28, %v14415_v50 }
 0x828   : > { %v8250_v60 = vmul.f32 %v8245_v27, %v14420_v13  ;;  %v8252_v61 = vmul.f32 %v8245_v27, %v14423_v23  ;;  %v8256_v43 = vmul.f32 %v8245_v27, %v14429_v38  ;;  %v8254_v39 = vmul.f32 %v8245_v27, %v14426_v21 }
 0x829   : > { %v8251_v25 = vmul.f32 %v8249_v40, %v14432_v63  ;;  %v8253_v31 = vmul.f32 %v8249_v40, %v14435_v22  ;;  %v8257_v16 = vmul.f32 %v8249_v40, %v14441_v54  ;;  %v8255_v12 = vmul.f32 %v8249_v40, %v14438_v10 }
 0x82a   : > { %v8274_v45 = vmul.f32 %v8260_v1, %v8250_v60  ;;  %v8276_v49 = vmul.f32 %v8264_v35, %v8252_v61  ;;  %v8280_v55 = vmul.f32 %v8272_v59, %v8256_v43  ;;  %v8278_v13 = vmul.f32 %v8268_v26, %v8254_v39 }
 0x82b   : > { %v8275_v14 = vmul.f32 %v8260_v1, %v8251_v25  ;;  %v8277_v23 = vmul.f32 %v8264_v35, %v8253_v31  ;;  %v8281_v9 = vmul.f32 %v8272_v59, %v8257_v16  ;;  %v8279_v38 = vmul.f32 %v8268_v26, %v8255_v12 }
 0x82c   : > { %v14582_v11 = vadd.f32 %v8284_v47, %v8274_v45  ;;  %v14584_v21 = vadd.f32 %v8288_v18, %v8276_v49  ;;  %v14586_v63 = vadd.f32 %v8296_v36, %v8280_v55  ;;  %v14588_v22 = vadd.f32 %v8292_v5, %v8278_v13 }
 0x82d   : > { %v14590_v54 = vadd.f32 %v8284_v47, %v8275_v14  ;;  %v14592_v10 = vadd.f32 %v8288_v18, %v8277_v23  ;;  %v14594_v19 = vadd.f32 %v8296_v36, %v8281_v9  ;;  %v14596_v8 = vadd.f32 %v8292_v5, %v8279_v38 }
 0x82e   : > { %v8336_v1 = vand.u32 4294901760, %v14582_v11  ;;  %v8340_v2 = vand.u32 4294901760, %v14584_v21  ;;  %v8348_v30 = vand.u32 4294901760, %v14586_v63  ;;  %v8344_v35 = vand.u32 4294901760, %v14588_v22 }
 0x82f   : > { %v8334_v44 = vand.u32 4294901760, %v14590_v54  ;;  %v8338_v24 = vand.u32 4294901760, %v14592_v10  ;;  %v8342_v47 = vand.u32 4294901760, %v14596_v8  ;;  %v8346_v18 = vand.u32 4294901760, %v14594_v19 }
 0x830   : > { %v14607_v62 = vsub.f32 %v14582_v11, %v8336_v1  ;;  %v14610_v59 = vsub.f32 %v14584_v21, %v8340_v2  ;;  %v14613_v26 = vsub.f32 %v14586_v63, %v8348_v30  ;;  %v14616_v56 = vsub.f32 %v14588_v22, %v8344_v35 }
 0x831   : > { %v14618_v28 = vpack.c.bf16 %v8338_v24, %v8334_v44  ;;  %v14621_v27 = vsub.f32 %v14590_v54, %v8334_v44  ;;  %v14624_v40 = vsub.f32 %v14592_v10, %v8338_v24  ;;  %v8431_v60 = vand.u32 4294901760, %v14569_v29 }
 0x832   : > { %v8459_v61 = vand.u32 4294901760, %v14607_v62  ;;  %v15235_v43 = vand.u32 4294901760, %v14613_v26  ;;  %v15233_v39 = vand.u32 4294901760, %v14616_v56  ;;  %v14630_v25 = vpack.c.bf16 %v8340_v2, %v8336_v1 }
 0x833   : > { %11584 = vmatprep.subr.bf16.mxu0 %v14618_v28  ;;  %v14633_v31 = vpack.c.bf16 %v8346_v18, %v8342_v47  ;;  %v14636_v16 = vsub.f32 %v14596_v8, %v8342_v47  ;;  %v14639_v12 = vsub.f32 %v14594_v19, %v8346_v18  ;;  %v8453_v36 = vand.u32 4294901760, %v14621_v27 }
 0x834   : > { %11586 = vmatpush1.bf16.msra.mxu0 %v14630_v25  ;;  %v8465_v5 = vand.u32 4294901760, %v14624_v40  ;;  %v8460_v45 = vsub.f32 %v14607_v62, %v8459_v61  ;;  %v8471_v49 = vand.u32 4294901760, %v14610_v59  ;;  %v14650_v55 = vsub.f32 %v14558_v52, %v14572_v3 }
 0x835   : > { %11588 = vmatprep.subr.bf16.mxu0 %v14633_v31  ;;  %v14653_v13 = vpack.c.bf16 %v8348_v30, %v8344_v35  ;;  %v8454_v14 = vsub.f32 %v14621_v27, %v8453_v36  ;;  %v15236_v23 = vand.u32 4294901760, %v14636_v16  ;;  %v15237_v9 = vand.u32 4294901760, %v14639_v12 }
 0x836   : > { %v8466_v38 = vsub.f32 %v14624_v40, %v8465_v5  ;;  %v8472_v52 = vsub.f32 %v14610_v59, %v8471_v49  ;;  %v8484_v1 = vsub.f32 %v14616_v56, %v15233_v39  ;;  %v8496_v2 = vsub.f32 %v14613_v26, %v15235_v43 }
 0x837   : > { %v8455_v30 = vand.u32 4294901760, %v8454_v14  ;;  %v8461_v35 = vand.u32 4294901760, %v8460_v45  ;;  %v8478_v44 = vsub.f32 %v14636_v16, %v15236_v23  ;;  %v8490_v24 = vsub.f32 %v14639_v12, %v15237_v9 }
 0x838   : > { %11590 = vmatpush1.bf16.msra.mxu0 %v14653_v13  ;;  %v8467_v47 = vand.u32 4294901760, %v8466_v38  ;;  %v8473_v18 = vand.u32 4294901760, %v8472_v52  ;;  %v8432_v45 = vsub.f32 %v14569_v29, %v8431_v60  ;;  %v8485_v43 = vand.u32 4294901760, %v8484_v1 }
 0x839   : > { %v8479_v46 = vand.u32 4294901760, %v8478_v44  ;;  %v8491_v20 = vand.u32 4294901760, %v8490_v24  ;;  %v8497_v23 = vand.u32 4294901760, %v8496_v2  ;;  %v8442_v9 = vand.u32 4294901760, %v14650_v55 }
 0x83a   : > { %v11591_v39 = vpack.c.bf16 %v8467_v47, %v8455_v30  ;;  %v11593_v14 = vpack.c.bf16 %v8473_v18, %v8461_v35  ;;  %v8433_v52 = vand.u32 4294901760, %v8432_v45  ;;  %v11599_v48 = vpack.c.bf16 %v14624_v40, %v14621_v27 }
 0x83b   : > { %8412 = vmatmul.mubr.f32.vlgmr.msra.gmra.mrb[36].mxu0 %v8411_v42  ;;  %v11595_v38 = vpack.c.bf16 %v8491_v20, %v8479_v46  ;;  %v11597_v37 = vpack.c.bf16 %v8497_v23, %v8485_v43  ;;  %v8443_v30 = vsub.f32 %v14650_v55, %v8442_v9  ;;  %v11601_v46 = vpack.c.bf16 %v14610_v59, %v14607_v62 }
 0x83c   : > { %11592 = vmatprep.subr.bf16.mxu0 %v11591_v39  ;;  %8417 = vmatprep.mubr.f32.mxu0 %v12526_v32  ;;  %v11605_v20 = vpack.c.bf16 %v14613_v26, %v14616_v56  ;;  %v11615_v43 = vpack.c.bf16 %v8465_v5, %v8453_v36  ;;  %v11617_v27 = vpack.c.bf16 %v8471_v49, %v8459_v61  ;;  %v15260_v40 = vand.u32 4294901760, %v14532_v58 }
 0x83d   : > { %11594 = vmatpush1.bf16.msra.mxu0 %v11593_v14  ;;  %v8444_v42 = vand.u32 4294901760, %v8443_v30  ;;  %v15261_v39 = vand.u32 4294901760, %v14636_v16  ;;  %v15262_v36 = vand.u32 4294901760, %v14639_v12  ;;  %v15264_v23 = vand.u32 4294901760, %v14613_v26 }
 0x83e   : > { %11596 = vmatprep.subr.bf16.mxu0 %v11595_v38  ;;  %v15265_v59 = vand.u32 4294901760, %v14542_v6 }
 0x83f   : > { %8423 = vmatmul.mubr.f32.gmra.mrb[38].mxu0 %v8422_v57  ;;  %v11603_v57 = vpack.c.bf16 %v14639_v12, %v14636_v16  ;;  %v11619_v5 = vpack.c.bf16 %v15262_v36, %v15261_v39 }
 0x840   : > { %8428 = vmatprep.mubr.f32.mxu0 %v12526_v32 }
 0x841   : > { %11598 = vmatpush1.bf16.msra.mxu0 %v11597_v37 }
 0x842   : > { %11600 = vmatprep.subr.bf16.mxu0 %v11599_v48 }
 0x843   : > { %8434 = vmatmul.mubr.f32.gmra.mrb[40].mxu0 %v8433_v52 }
 0x844   : > { %8439 = vmatprep.mubr.f32.mxu0 %v12526_v32 }
 0x847   : > { %8445 = vmatmul.mubr.f32.gmra.mrb[42].mxu0 %v8444_v42 }
 0x848   : > { %8555 = vmatprep.mubr.f32.mxu0 %v12526_v32 }
 0x84b   : > { %8557 = vmatmul.mubr.f32.vlgmr.msra.gmra.mrb[36].mxu0 %v14526_v0 }
 0x84c   : > { %11602 = vmatpush1.bf16.msra.mxu0 %v11601_v46  ;;  %8562 = vmatprep.mubr.f32.mxu0 %v12526_v32 }
 0x84d   : > { %11604 = vmatprep.subr.bf16.mxu0 %v11603_v57 }
 0x84f   : > { %8564 = vmatmul.mubr.f32.gmra.mrb[38].mxu0 %v14534_v41 }
 0x850   : > { %11606 = vmatpush1.bf16.msra.mxu0 %v11605_v20  ;;  %8569 = vmatprep.mubr.f32.mxu0 %v12526_v32 }
 0x851   : > { %11608 = vmatprep.subr.bf16.mxu0 %v14618_v28 }
 0x853   : > { %8571 = vmatmul.mubr.f32.gmra.mrb[40].mxu0 %v14555_v33 }
 0x854   : > { %8576 = vmatprep.mubr.f32.mxu0 %v12526_v32 }
 0x857   : > { %8578 = vmatmul.mubr.f32.gmra.mrb[42].mxu0 %v14572_v3 }
 0x858   : > { %8664 = vmatprep.mubr.f32.mxu0 %v12526_v32 }
 0x85b   : > { %8667 = vmatmul.mubr.f32.vlgmr.msra.gmra.mrb[36].mxu0 %v14532_v58  ;;  %v407_v58 = vld [vmem:[%s15208_s3 + $0xa0] sm:$0xff] }
 0x85c   : > { %11610 = vmatpush1.bf16.msra.mxu0 %v14630_v25  ;;  %8672 = vmatprep.mubr.f32.mxu0 %v12526_v32 }
 0x85d   : > { %11612 = vmatprep.subr.bf16.mxu0 %v14633_v31 }
 0x85f   : > { %8675 = vmatmul.mubr.f32.gmra.mrb[38].mxu0 %v14542_v6  ;;  %v12536_v6 = vmov 5  }
 0x860   : > { %11614 = vmatpush1.bf16.msra.mxu0 %v14653_v13  ;;  %8680 = vmatprep.mubr.f32.mxu0 %v12526_v32 }
 0x861   : > { %11616 = vmatprep.subr.bf16.mxu0 %v11615_v43  ;;  %12380 = vset.pattern.permute.xlu0 %v12536_v6 }
 0x862   : > { %12381 = vset.pattern.permute.xlu1 %v12536_v6  ;;  %9033 = vperm.xlu0 %12380, %v14390_v17   ;;  %v409_v17 = vld [vmem:[%s15208_s3 + $0xb0] sm:$0xff] }
 0x863   : > { %8683 = vmatmul.mubr.f32.gmra.mrb[40].mxu0 %v14569_v29  ;;  %9037 = vperm.xlu1 %12381, %v14396_v7  }
 0x864   : > { %8688 = vmatprep.mubr.f32.mxu0 %v12526_v32 }
 0x866   : > { %9045 = vperm.xlu0 %12380, %v14411_v4  }
 0x867   : > { %8691 = vmatmul.mubr.f32.gmra.mrb[42].mxu0 %v14650_v55  ;;  %v15263_v55 = vand.u32 4294901760, %v14616_v56  ;;  %9041 = vperm.xlu1 %12381, %v14402_v15   ;;  %v9055_v15 = vsel %vm444_vm0, %v409_v17, 0 }
 0x868   : > { %8769 = vmatprep.mubr.f32.mxu0 %v12526_v32  ;;  %v14795_v35 = vand.u32 4294901760, %v9055_v15 }
 0x869   : > { %v11621_v62 = vpack.c.bf16 %v15264_v23, %v15263_v55 }
 0x86a   : > { %v14812_v43 = vsub.f32 %v9055_v15, %v14795_v35 }
 0x86b   : > { %8773 = vmatmul.mubr.f32.vlgmr.msra.gmra.mrb[36].mxu0 %v15260_v40 }
 0x86c   : > { %11618 = vmatpush1.bf16.msra.mxu0 %v11617_v27  ;;  %8778 = vmatprep.mubr.f32.mxu0 %v12526_v32 }
 0x86d   : > { %11620 = vmatprep.subr.bf16.mxu0 %v11619_v5 }
 0x86f   : > { %8782 = vmatmul.mubr.f32.gmra.mrb[38].mxu0 %v15265_v59 }
 0x870   : > { %11622 = vmatpush1.bf16.msra.mxu0 %v11621_v62  ;;  %8787 = vmatprep.mubr.f32.mxu0 %v12526_v32 }
 0x871   : > { %11624 = vmatprep.subr.bf16.mxu0 %v14618_v28 }
 0x873   : > { %8791 = vmatmul.mubr.f32.gmra.mrb[40].mxu0 %v8431_v60 }
 0x874   : > { %8796 = vmatprep.mubr.f32.mxu0 %v12526_v32 }
 0x877   : > { %8800 = vmatmul.mubr.f32.gmra.mrb[42].mxu0 %v8442_v9 }
 0x878   : > { %8894 = vmatprep.mubr.f32.mxu0 %v12526_v32 }
 0x87b   : > { %8896 = vmatmul.mubr.f32.vlgmr.msra.gmra.mrb[36].mxu0 %v14526_v0 }
 0x87c   : > { %11626 = vmatpush1.bf16.msra.mxu0 %v14630_v25  ;;  %8901 = vmatprep.mubr.f32.mxu0 %v12526_v32  ;;  %v8312_v25 = vpop.permute.xlu0 %8311 }
 0x87d   : > { %11628 = vmatprep.subr.bf16.mxu0 %v14633_v31 }
 0x87f   : > { %8903 = vmatmul.mubr.f32.gmra.mrb[38].mxu0 %v14534_v41 }
 0x880   : > { %11630 = vmatpush1.bf16.msra.mxu0 %v14653_v13  ;;  %8908 = vmatprep.mubr.f32.mxu0 %v12526_v32  ;;  %v410_v13 = vld [vmem:[%s15208_s3 + $0xb8] sm:$0xff] }
 0x881   : > { %v14800_v14 = vsel %vm444_vm0, %v410_v13, 0 }
 0x882   : > { %v14816_v36 = vand.u32 4294901760, %v14800_v14 }
 0x883   : > { %8910 = vmatmul.mubr.f32.gmra.mrb[40].mxu0 %v14555_v33 }
 0x884   : > { %8915 = vmatprep.mubr.f32.mxu0 %v12526_v32 }
 0x887   : > { %8917 = vmatmul.mubr.f32.gmra.mrb[42].mxu0 %v14572_v3 }
 0x888   : > { %8995 = vmatprep.mubr.f32.mxu0 %v12526_v32 }
 0x88b   : > { %8997 = vmatmul.mubr.f32.vlgmr.msra.gmra.mrb[36].mxu0 %v14526_v0  ;;  %v9049_v0 = vsel %vm444_vm0, %v407_v58, 0 }
 0x88c   : > { %9002 = vmatprep.mubr.f32.mxu0 %v12526_v32 }
 0x88f   : > { %9004 = vmatmul.mubr.f32.gmra.mrb[38].mxu0 %v14534_v41  ;;  %v408_v41 = vld [vmem:[%s15208_s3 + $0xa8] sm:$0xff] }
 0x890   : > { %9009 = vmatprep.mubr.f32.mxu0 %v12526_v32  ;;  %v9052_v29 = vsel %vm444_vm0, %v408_v41, 0 }
 0x891   : > { %v14785_v56 = vand.u32 4294901760, %v9052_v29 }
 0x893   : > { %9011 = vmatmul.mubr.f32.gmra.mrb[40].mxu0 %v14555_v33  ;;  %v14774_v33 = vand.u32 4294901760, %v9049_v0  ;;  %v14790_v49 = vsub.f32 %v9052_v29, %v14785_v56 }
 0x894   : > { %9016 = vmatprep.mubr.f32.mxu0 %v12526_v32 }
 0x895   : > { %v14783_v26 = vsub.f32 %v9049_v0, %v14774_v33  ;;  %v9146_v48 = vand.u32 4294901760, %v14790_v49 }
 0x897   : > { %9018 = vmatmul.mubr.f32.gmra.mrb[42].mxu0 %v14572_v3  ;;  %v8308_v3 = vpop.permute.xlu1 %8307  ;;  %v9135_v12 = vand.u32 4294901760, %v14783_v26 }
 0x898   : > { %9830 = vmatprep.mubr.f32.mxu0 %v12526_v32 }
 0x899   : > { %v14807_v30 = vsub.f32 %v14783_v26, %v9135_v12 }
 0x89b   : > { %v8316_v47 = vpop.permute.xlu1 %8315 }
 0x89f   : > { %v8320_v6 = vpop.permute.xlu1 %8319 }
 0x95e   : > { %v8998_v7 = vpop.f32.mrb[36].mxu0 }
 0x95f   : > { %v11825_v28 = vadd.f32 %v8998_v7, %v8308_v3  ;;  %v9000_v60 = vpop.f32.mrb[37].mxu0 }
 0x960   : > { %v11826_v61 = vadd.f32 %v9000_v60, %v8308_v3 }
 0x961   : > { %v9024_v4 = vmax.f32 %v11825_v28, 0.0 }
 0x962   : > { %v9025_v31 = vmax.f32 %v11826_v61, 0.0  ;;  %v9005_v16 = vpop.f32.mrb[38].mxu0 }
 0x963   : > { %v9062_v9 = vand.u32 4294901760, %v9024_v4  ;;  %v11827_v1 = vadd.f32 %v9005_v16, %v8312_v25  ;;  %v9007_v2 = vpop.f32.mrb[39].mxu0 }
 0x964   : > { %v9060_v44 = vand.u32 4294901760, %v9025_v31  ;;  %v11828_v24 = vadd.f32 %v9007_v2, %v8312_v25 }
 0x965   : > { %v14797_v18 = vsub.f32 %v9024_v4, %v9062_v9  ;;  %v9026_v45 = vmax.f32 %v11827_v1, 0.0 }
 0x966   : > { %v14802_v38 = vsub.f32 %v9025_v31, %v9060_v44  ;;  %v9027_v37 = vmax.f32 %v11828_v24, 0.0  ;;  %v9012_v52 = vpop.f32.mrb[40].mxu0 }
 0x967   : > { %v9185_v42 = vand.u32 4294901760, %v14797_v18  ;;  %v9066_v46 = vand.u32 4294901760, %v9026_v45  ;;  %v11829_v57 = vadd.f32 %v9012_v52, %v8316_v47  ;;  %v9014_v20 = vpop.f32.mrb[41].mxu0 }
 0x968   : > { %v9179_v27 = vand.u32 4294901760, %v14802_v38  ;;  %v9064_v40 = vand.u32 4294901760, %v9027_v37  ;;  %v11830_v39 = vadd.f32 %v9014_v20, %v8316_v47 }
 0x969   : > { %v9186_v5 = vsub.f32 %v14797_v18, %v9185_v42  ;;  %v14819_v55 = vpack.c.bf16 %v9066_v46, %v9062_v9  ;;  %v14821_v23 = vsub.f32 %v9026_v45, %v9066_v46  ;;  %v9028_v62 = vmax.f32 %v11829_v57, 0.0 }
 0x96a   : > { %v14823_v59 = vsub.f32 %v9027_v37, %v9064_v40  ;;  %v9029_v58 = vmax.f32 %v11830_v39, 0.0  ;;  %v9019_v0 = vpop.f32.mrb[42].mxu0  ;;  %v14825_v41 = vpack.c.bf16 %v9064_v40, %v9060_v44  ;;  %v9180_v29 = vsub.f32 %v14802_v38, %v9179_v27 }
 0x96b   : > { %v9187_v17 = vand.u32 4294901760, %v9186_v5  ;;  %v9197_v3 = vand.u32 4294901760, %v14821_v23  ;;  %v9070_v7 = vand.u32 4294901760, %v9028_v62  ;;  %v11831_v28 = vadd.f32 %v9019_v0, %v8320_v6  ;;  %v9021_v60 = vpop.f32.mrb[43].mxu0 }
 0x96c   : > { %v9191_v61 = vand.u32 4294901760, %v14823_v59  ;;  %v9068_v25 = vand.u32 4294901760, %v9029_v58  ;;  %v11832_v15 = vadd.f32 %v9021_v60, %v8320_v6  ;;  %11632 = vmatprep.subr.bf16.mxu1 %v14825_v41  ;;  %v9181_v4 = vand.u32 4294901760, %v9180_v29 }
 0x96d   : > { %v9198_v31 = vsub.f32 %v14821_v23, %v9197_v3  ;;  %v14832_v16 = vsub.f32 %v9028_v62, %v9070_v7  ;;  %v9030_v13 = vmax.f32 %v11831_v28, 0.0  ;;  %11634 = vmatpush1.bf16.msra.mxu1 %v14819_v55  ;;  %v11647_v9 = vpack.c.bf16 %v14823_v59, %v14802_v38 }
 0x96e   : > { %v9202_v1 = vsub.f32 %v9029_v58, %v9068_v25  ;;  %v9031_v2 = vmax.f32 %v11832_v15, 0.0  ;;  %v9192_v44 = vsub.f32 %v14823_v59, %v9191_v61  ;;  %v11649_v24 = vpack.c.bf16 %v14821_v23, %v14797_v18 }
 0x96f   : > { %v9199_v47 = vand.u32 4294901760, %v9198_v31  ;;  %v9209_v45 = vand.u32 4294901760, %v14832_v16  ;;  %v9074_v37 = vand.u32 4294901760, %v9030_v13  ;;  %v14841_v52 = vpack.c.bf16 %v9191_v61, %v9179_v27 }
 0x970   : > { %v9203_v46 = vand.u32 4294901760, %v9202_v1  ;;  %v9072_v57 = vand.u32 4294901760, %v9031_v2  ;;  %v9193_v20 = vand.u32 4294901760, %v9192_v44  ;;  %v14843_v40 = vpack.c.bf16 %v9197_v3, %v9185_v42 }
 0x971   : > { %v14845_v39 = vpack.c.bf16 %v9074_v37, %v9070_v7  ;;  %v9220_v38 = vsub.f32 %v9030_v13, %v9074_v37  ;;  %v9137_v5 = vand.u32 4294901760, %v14807_v30  ;;  %v11641_v62 = vpack.c.bf16 %v9199_v47, %v9187_v17 }
 0x972   : > { %v9214_v59 = vsub.f32 %v9031_v2, %v9072_v57  ;;  %v14848_v58 = vpack.c.bf16 %v9072_v57, %v9068_v25  ;;  %v11639_v18 = vpack.c.bf16 %v9193_v20, %v9181_v4  ;;  %v9147_v27 = vsub.f32 %v14790_v49, %v9146_v48 }
 0x973   : > { %v9210_v23 = vsub.f32 %v14832_v16, %v9209_v45  ;;  %v9221_v6 = vand.u32 4294901760, %v9220_v38  ;;  %v9157_v42 = vand.u32 4294901760, %v14812_v43  ;;  %v11653_v0 = vpack.c.bf16 %v9220_v38, %v14832_v16 }
 0x974   : > { %v9215_v29 = vand.u32 4294901760, %v9214_v59  ;;  %11636 = vmatprep.subr.bf16.mxu1 %v14848_v58  ;;  %v9204_v30 = vsub.f32 %v9202_v1, %v9203_v46  ;;  %v14859_v17 = vsub.f32 %v14800_v14, %v14816_v36  ;;  %v11651_v3 = vpack.c.bf16 %v9214_v59, %v9202_v1 }
 0x975   : > { %v9222_v7 = vsub.f32 %v9220_v38, %v9221_v6  ;;  %11638 = vmatpush1.bf16.msra.mxu1 %v14845_v39  ;;  %v11669_v28 = vpack.c.bf16 %v9221_v6, %v9209_v45  ;;  %v9211_v25 = vand.u32 4294901760, %v9210_v23  ;;  %v9148_v4 = vand.u32 4294901760, %v9147_v27 }
 0x976   : > { %11640 = vmatprep.subr.bf16.mxu1 %v11639_v18  ;;  %v9216_v60 = vsub.f32 %v9214_v59, %v9215_v29  ;;  %v11667_v61 = vpack.c.bf16 %v9215_v29, %v9203_v46  ;;  %v9205_v31 = vand.u32 4294901760, %v9204_v30  ;;  %v9158_v13 = vsub.f32 %v14812_v43, %v9157_v42 }
 0x977   : > { %v9223_v15 = vand.u32 4294901760, %v9222_v7  ;;  %v9168_v14 = vand.u32 4294901760, %v14859_v17 }
 0x978   : > { %9138 = vmatmul.mubr.f32.vlgmr.msra.gmra.mrb[36].mxu1 %v9137_v5  ;;  %v9217_v16 = vand.u32 4294901760, %v9216_v60  ;;  %v9159_v44 = vand.u32 4294901760, %v9158_v13 }
 0x979   : > { %11642 = vmatpush1.bf16.msra.mxu1 %v11641_v62  ;;  %9143 = vmatprep.mubr.f32.mxu1 %v12526_v32  ;;  %v11645_v1 = vpack.c.bf16 %v9223_v15, %v9211_v25  ;;  %v9169_v47 = vsub.f32 %v14859_v17, %v9168_v14 }
 0x97a   : > { %v11643_v2 = vpack.c.bf16 %v9217_v16, %v9205_v31 }
 0x97b   : > { %v9170_v45 = vand.u32 4294901760, %v9169_v47 }
 0x97c   : > { %9149 = vmatmul.mubr.f32.gmra.mrb[38].mxu1 %v9148_v4  ;;  %11644 = vmatprep.subr.bf16.mxu1 %v11643_v2 }
 0x97d   : > { %11646 = vmatpush1.bf16.msra.mxu1 %v11645_v1  ;;  %9154 = vmatprep.mubr.f32.mxu1 %v12526_v32 }
 0x97e   : > { %11648 = vmatprep.subr.bf16.mxu1 %v11647_v9 }
 0x980   : > { %9160 = vmatmul.mubr.f32.gmra.mrb[40].mxu1 %v9159_v44 }
 0x981   : > { %9165 = vmatprep.mubr.f32.mxu1 %v12526_v32 }
 0x984   : > { %9171 = vmatmul.mubr.f32.gmra.mrb[42].mxu1 %v9170_v45 }
 0x985   : > { %9281 = vmatprep.mubr.f32.mxu1 %v12526_v32 }
 0x988   : > { %9283 = vmatmul.mubr.f32.vlgmr.msra.gmra.mrb[36].mxu1 %v14774_v33 }
 0x989   : > { %11650 = vmatpush1.bf16.msra.mxu1 %v11649_v24  ;;  %9288 = vmatprep.mubr.f32.mxu1 %v12526_v32 }
 0x98a   : > { %11652 = vmatprep.subr.bf16.mxu1 %v11651_v3 }
 0x98c   : > { %9290 = vmatmul.mubr.f32.gmra.mrb[38].mxu1 %v14785_v56 }
 0x98d   : > { %11654 = vmatpush1.bf16.msra.mxu1 %v11653_v0  ;;  %9295 = vmatprep.mubr.f32.mxu1 %v12526_v32 }
 0x98e   : > { %11656 = vmatprep.subr.bf16.mxu1 %v14825_v41 }
 0x990   : > { %9297 = vmatmul.mubr.f32.gmra.mrb[40].mxu1 %v14795_v35 }
 0x991   : > { %9302 = vmatprep.mubr.f32.mxu1 %v12526_v32 }
 0x994   : > { %9304 = vmatmul.mubr.f32.gmra.mrb[42].mxu1 %v14816_v36 }
 0x995   : > { %9390 = vmatprep.mubr.f32.mxu1 %v12526_v32 }
 0x998   : > { %9393 = vmatmul.mubr.f32.vlgmr.msra.gmra.mrb[36].mxu1 %v14783_v26  ;;  %v9034_v26 = vpop.permute.xlu0 %9033 }
 0x999   : > { %11658 = vmatpush1.bf16.msra.mxu1 %v14819_v55  ;;  %9398 = vmatprep.mubr.f32.mxu1 %v12526_v32 }
 0x99a   : > { %11660 = vmatprep.subr.bf16.mxu1 %v14848_v58 }
 0x99c   : > { %9401 = vmatmul.mubr.f32.gmra.mrb[38].mxu1 %v14790_v49  ;;  %v9038_v49 = vpop.permute.xlu1 %9037 }
 0x99d   : > { %11662 = vmatpush1.bf16.msra.mxu1 %v14845_v39  ;;  %9406 = vmatprep.mubr.f32.mxu1 %v12526_v32 }
 0x99e   : > { %11664 = vmatprep.subr.bf16.mxu1 %v14841_v52 }
 0x9a0   : > { %9409 = vmatmul.mubr.f32.gmra.mrb[40].mxu1 %v14812_v43  ;;  %v9042_v37 = vpop.permute.xlu1 %9041 }
 0x9a1   : > { %9414 = vmatprep.mubr.f32.mxu1 %v12526_v32 }
 0x9a4   : > { %9417 = vmatmul.mubr.f32.gmra.mrb[42].mxu1 %v14859_v17 }
 0x9a5   : > { %9495 = vmatprep.mubr.f32.mxu1 %v12526_v32 }
 0x9a8   : > { %9499 = vmatmul.mubr.f32.vlgmr.msra.gmra.mrb[36].mxu1 %v9135_v12 }
 0x9a9   : > { %11666 = vmatpush1.bf16.msra.mxu1 %v14843_v40  ;;  %9504 = vmatprep.mubr.f32.mxu1 %v12526_v32 }
 0x9aa   : > { %11668 = vmatprep.subr.bf16.mxu1 %v11667_v61 }
 0x9ac   : > { %9508 = vmatmul.mubr.f32.gmra.mrb[38].mxu1 %v9146_v48 }
 0x9ad   : > { %11670 = vmatpush1.bf16.msra.mxu1 %v11669_v28  ;;  %9513 = vmatprep.mubr.f32.mxu1 %v12526_v32 }
 0x9ae   : > { %11672 = vmatprep.subr.bf16.mxu1 %v14825_v41 }
 0x9b0   : > { %9517 = vmatmul.mubr.f32.gmra.mrb[40].mxu1 %v9157_v42 }
 0x9b1   : > { %9522 = vmatprep.mubr.f32.mxu1 %v12526_v32 }
 0x9b4   : > { %9526 = vmatmul.mubr.f32.gmra.mrb[42].mxu1 %v9168_v14 }
 0x9b5   : > { %9620 = vmatprep.mubr.f32.mxu1 %v12526_v32 }
 0x9b8   : > { %9622 = vmatmul.mubr.f32.vlgmr.msra.gmra.mrb[36].mxu1 %v14774_v33 }
 0x9b9   : > { %11674 = vmatpush1.bf16.msra.mxu1 %v14819_v55  ;;  %9627 = vmatprep.mubr.f32.mxu1 %v12526_v32 }
 0x9ba   : > { %11676 = vmatprep.subr.bf16.mxu1 %v14848_v58  ;;  %v9046_v58 = vpop.permute.xlu0 %9045 }
 0x9bc   : > { %9629 = vmatmul.mubr.f32.gmra.mrb[38].mxu1 %v14785_v56 }
 0x9bd   : > { %11678 = vmatpush1.bf16.msra.mxu1 %v14845_v39  ;;  %9634 = vmatprep.mubr.f32.mxu1 %v12526_v32 }
 0x9c0   : > { %9636 = vmatmul.mubr.f32.gmra.mrb[40].mxu1 %v14795_v35 }
 0x9c1   : > { %9641 = vmatprep.mubr.f32.mxu1 %v12526_v32 }
 0x9c4   : > { %9643 = vmatmul.mubr.f32.gmra.mrb[42].mxu1 %v14816_v36 }
 0x9c5   : > { %9721 = vmatprep.mubr.f32.mxu1 %v12526_v32 }
 0x9c8   : > { %9723 = vmatmul.mubr.f32.vlgmr.msra.gmra.mrb[36].mxu1 %v14774_v33 }
 0x9c9   : > { %9728 = vmatprep.mubr.f32.mxu1 %v12526_v32 }
 0x9cc   : > { %9730 = vmatmul.mubr.f32.gmra.mrb[38].mxu1 %v14785_v56 }
 0x9cd   : > { %9735 = vmatprep.mubr.f32.mxu1 %v12526_v32 }
 0x9d0   : > { %9737 = vmatmul.mubr.f32.gmra.mrb[40].mxu1 %v14795_v35 }
 0x9d1   : > { %9742 = vmatprep.mubr.f32.mxu1 %v12526_v32 }
 0x9d4   : > { %9744 = vmatmul.mubr.f32.gmra.mrb[42].mxu1 %v14816_v36 }
 0x9d5   : > { %10397 = vmatprep.mubr.f32.mxu1 %v12526_v32 }
 0xa9b   : > { %v9724_v12 = vpop.f32.mrb[36].mxu1 }
 0xa9c   : > { %v11833_v48 = vadd.f32 %v9724_v12, %v9034_v26  ;;  %v9726_v43 = vpop.f32.mrb[37].mxu1 }
 0xa9d   : > { %v11834_v33 = vadd.f32 %v9726_v43, %v9034_v26 }
 0xa9e   : > { %v14924_v55 = vadd.f32 %v11833_v48, %v14582_v11 }
 0xa9f   : > { %v14927_v56 = vadd.f32 %v11834_v33, %v14590_v54  ;;  %v9731_v41 = vpop.f32.mrb[38].mxu1 }
 0xaa0   : > { %v11835_v35 = vadd.f32 %v9731_v41, %v9038_v49  ;;  %v9733_v9 = vpop.f32.mrb[39].mxu1  ;;  %v9760_v52 = vand.u32 4294901760, %v14924_v55 }
 0xaa1   : > { %v11836_v24 = vadd.f32 %v9733_v9, %v9038_v49  ;;  %v9758_v36 = vand.u32 4294901760, %v14927_v56 }
 0xaa2   : > { %v14932_v46 = vadd.f32 %v11835_v35, %v14584_v21  ;;  %v14943_v62 = vsub.f32 %v14924_v55, %v9760_v52 }
 0xaa3   : > { %v14935_v57 = vadd.f32 %v11836_v24, %v14592_v10  ;;  %v9738_v11 = vpop.f32.mrb[40].mxu1  ;;  %v14938_v20 = vsub.f32 %v14927_v56, %v9758_v36 }
 0xaa4   : > { %v9764_v54 = vand.u32 4294901760, %v14932_v46  ;;  %v11837_v40 = vadd.f32 %v9738_v11, %v9042_v37  ;;  %v9740_v39 = vpop.f32.mrb[41].mxu1  ;;  %v9850_v7 = vand.u32 4294901760, %v14943_v62 }
 0xaa5   : > { %v11838_v38 = vadd.f32 %v9740_v39, %v9042_v37  ;;  %v9762_v5 = vand.u32 4294901760, %v14935_v57  ;;  %v9844_v6 = vand.u32 4294901760, %v14938_v20 }
 0xaa6   : > { %v14946_v21 = vsub.f32 %v14932_v46, %v9764_v54  ;;  %v14949_v10 = vadd.f32 %v11837_v40, %v14588_v22  ;;  %v14962_v22 = vpack.c.bf16 %v9764_v54, %v9760_v52  ;;  %v9851_v2 = vsub.f32 %v14943_v62, %v9850_v7 }
 0xaa7   : > { %v14952_v59 = vadd.f32 %v11838_v38, %v14596_v8  ;;  %v9745_v18 = vpop.f32.mrb[42].mxu1  ;;  %v14954_v27 = vpack.c.bf16 %v9762_v5, %v9758_v36  ;;  %v14957_v23 = vsub.f32 %v14935_v57, %v9762_v5  ;;  %v9845_v15 = vsub.f32 %v14938_v20, %v9844_v6 }
 0xaa8   : > { %v9862_v42 = vand.u32 4294901760, %v14946_v21  ;;  %v9768_v0 = vand.u32 4294901760, %v14949_v10  ;;  %v11839_v29 = vadd.f32 %v9745_v18, %v9046_v58  ;;  %v9747_v30 = vpop.f32.mrb[43].mxu1  ;;  %v9852_v41 = vand.u32 4294901760, %v9851_v2 }
 0xaa9   : > { %v11840_v17 = vadd.f32 %v9747_v30, %v9046_v58  ;;  %11680 = vmatprep.subr.bf16.mxu0 %v14954_v27  ;;  %v9766_v8 = vand.u32 4294901760, %v14952_v59  ;;  %v9856_v3 = vand.u32 4294901760, %v14957_v23  ;;  %v9846_v45 = vand.u32 4294901760, %v9845_v15 }
 0xaaa   : > { %v14969_v28 = vsub.f32 %v14949_v10, %v9768_v0  ;;  %v14972_v60 = vadd.f32 %v11839_v29, %v14586_v63  ;;  %11682 = vmatpush1.bf16.msra.mxu0 %v14962_v22  ;;  %v9863_v63 = vsub.f32 %v14946_v21, %v9862_v42  ;;  %v11695_v38 = vpack.c.bf16 %v14957_v23, %v14938_v20 }
 0xaab   : > { %v14976_v61 = vadd.f32 %v11840_v17, %v14594_v19  ;;  %v9867_v25 = vsub.f32 %v14952_v59, %v9766_v8  ;;  %v9857_v4 = vsub.f32 %v14957_v23, %v9856_v3  ;;  %v11697_v5 = vpack.c.bf16 %v14946_v21, %v14943_v62  ;;  %v12422_v21 = vld [vmem:[%s15209_s4] sm:$0xff] }
 0xaac   : > { %v9772_v31 = vand.u32 4294901760, %v14972_v60  ;;  %v9874_v19 = vand.u32 4294901760, %v14969_v28  ;;  %v9864_v49 = vand.u32 4294901760, %v9863_v63  ;;  %v15266_v58 = vmov 0.03125  }
 0xaad   : > { %v9770_v16 = vand.u32 4294901760, %v14976_v61  ;;  %v9858_v13 = vand.u32 4294901760, %v9857_v4  ;;  %v9868_v14 = vand.u32 4294901760, %v9867_v25  ;;  %v11711_v62 = vpack.c.bf16 %v9856_v3, %v9844_v6  ;;  %v12424_v6 = vld [vmem:[%s15209_s4 + $0x10] sm:$0xff] }
 0xaae   : > { %v9885_v1 = vsub.f32 %v14972_v60, %v9772_v31  ;;  %v11685_v12 = vpack.c.bf16 %v9772_v31, %v9768_v0  ;;  %v9875_v35 = vsub.f32 %v14969_v28, %v9874_v19  ;;  %v11689_v37 = vpack.c.bf16 %v9864_v49, %v9852_v41 }
 0xaaf   : > { %v11683_v44 = vpack.c.bf16 %v9770_v16, %v9766_v8  ;;  %v9879_v47 = vsub.f32 %v14976_v61, %v9770_v16  ;;  %v11687_v48 = vpack.c.bf16 %v9858_v13, %v9846_v45  ;;  %v9869_v43 = vsub.f32 %v9867_v25, %v9868_v14 }
 0xab0   : > { %v9886_v26 = vand.u32 4294901760, %v9885_v1  ;;  %v9876_v54 = vand.u32 4294901760, %v9875_v35  ;;  %v11701_v0 = vpack.c.bf16 %v9885_v1, %v14969_v28  ;;  %v11713_v23 = vpack.c.bf16 %v9862_v42, %v9850_v7 }
 0xab1   : > { %11684 = vmatprep.subr.bf16.mxu0 %v11683_v44  ;;  %v9880_v33 = vand.u32 4294901760, %v9879_v47  ;;  %v9870_v52 = vand.u32 4294901760, %v9869_v43  ;;  %v11699_v18 = vpack.c.bf16 %v9879_v47, %v9867_v25  ;;  %v12537_v20 = vmov 8  }
 0xab2   : > { %11686 = vmatpush1.bf16.msra.mxu0 %v11685_v12  ;;  %v9887_v9 = vsub.f32 %v9885_v1, %v9886_v26  ;;  %v11717_v30 = vpack.c.bf16 %v9886_v26, %v9874_v19  ;;  %12382 = vset.pattern.permute.xlu1 %v12537_v20  ;;  %v12538_v42 = vmov 9  }
 0xab3   : > { %11688 = vmatprep.subr.bf16.mxu0 %v11687_v48  ;;  %v9881_v24 = vsub.f32 %v9879_v47, %v9880_v33  ;;  %v11715_v29 = vpack.c.bf16 %v9880_v33, %v9868_v14  ;;  %12383 = vset.pattern.permute.xlu0 %v12537_v20 }
 0xab4   : > { %v9888_v36 = vand.u32 4294901760, %v9887_v9  ;;  %10887 = vperm.xlu1 %12382, %v12422_v21  }
 0xab5   : > { %9836 = vmatmul.mubr.f32.vlgmr.msra.gmra.mrb[44].mxu0 %v14350_v34  ;;  %v9882_v11 = vand.u32 4294901760, %v9881_v24 }
 0xab6   : > { %11690 = vmatpush1.bf16.msra.mxu0 %v11689_v37  ;;  %9946 = vmatprep.mubr.f32.mxu0 %v12526_v32  ;;  %v11693_v39 = vpack.c.bf16 %v9888_v36, %v9876_v54 }
 0xab7   : > { %v11691_v40 = vpack.c.bf16 %v9882_v11, %v9870_v52 }
 0xab8   : > { %10895 = vperm.xlu1 %12382, %v12424_v6  }
 0xab9   : > { %11692 = vmatprep.subr.bf16.mxu0 %v11691_v40 }
 0xaba   : > { %11694 = vmatpush1.bf16.msra.mxu0 %v11693_v39 }
 0xabb   : > { %11696 = vmatprep.subr.bf16.mxu0 %v11695_v38 }
 0xabd   : > { %11088 = vmatmul.mubr.msk.f32.vlgmr.msra.gmra.mrb[44].mxu0 %vm444_vm0, %v15266_v58 }
 0xabe   : > { %11698 = vmatpush1.bf16.msra.mxu0 %v11697_v5  ;;  %10034 = vmatprep.mubr.f32.mxu0 %v12526_v32 }
 0xabf   : > { %11700 = vmatprep.subr.bf16.mxu0 %v11699_v18 }
 0xac2   : > { %11702 = vmatpush1.bf16.msra.mxu0 %v11701_v0 }
 0xac3   : > { %11704 = vmatprep.subr.bf16.mxu0 %v14954_v27 }
 0xac5   : > { %10037 = vmatmul.mubr.f32.vlgmr.msra.gmra.mrb[44].mxu0 %v14285_v51 }
 0xac6   : > { %11706 = vmatpush1.bf16.msra.mxu0 %v14962_v22  ;;  %10115 = vmatprep.mubr.f32.mxu0 %v12526_v32 }
 0xac7   : > { %11708 = vmatprep.subr.bf16.mxu0 %v11683_v44 }
 0xaca   : > { %11710 = vmatpush1.bf16.msra.mxu0 %v11685_v12 }
 0xacb   : > { %11712 = vmatprep.subr.bf16.mxu0 %v11711_v62 }
 0xacd   : > { %10119 = vmatmul.mubr.f32.vlgmr.msra.gmra.mrb[44].mxu0 %v14311_v53 }
 0xace   : > { %11714 = vmatpush1.bf16.msra.mxu0 %v11713_v23  ;;  %10213 = vmatprep.mubr.f32.mxu0 %v12526_v32 }
 0xacf   : > { %11716 = vmatprep.subr.bf16.mxu0 %v11715_v29 }
 0xad2   : > { %11718 = vmatpush1.bf16.msra.mxu0 %v11717_v30 }
 0xad3   : > { %11720 = vmatprep.subr.bf16.mxu0 %v14954_v27  ;;  %v12423_v27 = vld [vmem:[%s15209_s4 + $0x8] sm:$0xff] }
 0xad4   : > { %10891 = vperm.xlu0 %12383, %v12423_v27  }
 0xad5   : > { %11089 = vmatmul.mubr.msk.f32.vlgmr.msra.gmra.mrb[44].mxu0 %vm444_vm0, %v15266_v58 }
 0xad6   : > { %11722 = vmatpush1.bf16.msra.mxu0 %v14962_v22  ;;  %10293 = vmatprep.mubr.f32.mxu0 %v12526_v32  ;;  %v12425_v22 = vld [vmem:[%s15209_s4 + $0x18] sm:$0xff] }
 0xad7   : > { %11724 = vmatprep.subr.bf16.mxu0 %v11683_v44  ;;  %10899 = vperm.xlu1 %12382, %v12425_v22  }
 0xad8   : > { %12384 = vset.pattern.permute.xlu0 %v12538_v42 }
 0xad9   : > { %10911 = vperm.xlu0 %12384, %v12422_v21  }
 0xada   : > { %11726 = vmatpush1.bf16.msra.mxu0 %v11685_v12 }
 0xadb   : > { %12385 = vset.pattern.permute.xlu1 %v12538_v42 }
 0xadc   : > { %10915 = vperm.xlu1 %12385, %v12423_v27  }
 0xadd   : > { %11090 = vmatmul.mubr.msk.f32.vlgmr.msra.gmra.mrb[44].mxu0 %vm444_vm0, %v15266_v58  ;;  %10923 = vperm.xlu0 %12384, %v12425_v22  }
 0xae0   : > { %10919 = vperm.xlu1 %12385, %v12424_v6  }
 0xbb0   : > { %v10296_v17 = vpop.f32.mrb[44].mxu0 }
 0xbb1   : > { %v10304_v8 = vrot.slane %v10296_v17, %v14415_v50  ;;  %v10298_v3 = vpop.f32.mrb[45].mxu0 }
 0xbb2   : > { %v10308_v7 = vrot.slane %v10298_v3, %v14415_v50 }
 0xbb3   : > { %v15035_v28 = vsub.f32 %v14924_v55, %v10304_v8  ;;  %v15038_v25 = vsub.f32 %v14932_v46, %v10304_v8  ;;  %v15041_v15 = vsub.f32 %v14949_v10, %v10304_v8  ;;  %v15044_v4 = vsub.f32 %v14972_v60, %v10304_v8 }
 0xbb4   : > { %v15047_v31 = vsub.f32 %v14927_v56, %v10308_v7  ;;  %v15050_v63 = vsub.f32 %v14935_v57, %v10308_v7  ;;  %v15053_v16 = vsub.f32 %v14952_v59, %v10308_v7  ;;  %v15056_v55 = vsub.f32 %v14976_v61, %v10308_v7 }
 0xbb5   : > { %v10317_v46 = vmul.f32 %v15035_v28, %v15035_v28  ;;  %v10319_v10 = vmul.f32 %v15038_v25, %v15038_v25  ;;  %v10321_v60 = vmul.f32 %v15041_v15, %v15041_v15  ;;  %v10323_v56 = vmul.f32 %v15044_v4, %v15044_v4 }
 0xbb6   : > { %v10318_v57 = vmul.f32 %v15047_v31, %v15047_v31  ;;  %v10320_v59 = vmul.f32 %v15050_v63, %v15050_v63  ;;  %v10322_v61 = vmul.f32 %v15053_v16, %v15053_v16  ;;  %v10324_v13 = vmul.f32 %v15056_v55, %v15056_v55 }
 0xbb7   : > { %v10327_v14 = vand.u32 4294901760, %v10317_v46  ;;  %v10331_v19 = vand.u32 4294901760, %v10319_v10  ;;  %v10335_v1 = vand.u32 4294901760, %v10321_v60  ;;  %v10339_v2 = vand.u32 4294901760, %v10323_v56 }
 0xbb8   : > { %v10325_v44 = vand.u32 4294901760, %v10318_v57  ;;  %v10329_v47 = vand.u32 4294901760, %v10320_v59  ;;  %v10333_v45 = vand.u32 4294901760, %v10322_v61  ;;  %v10337_v26 = vand.u32 4294901760, %v10324_v13 }
 0xbb9   : > { %v15074_v12 = vpack.c.bf16 %v10331_v19, %v10327_v14  ;;  %v15076_v49 = vsub.f32 %v10317_v46, %v10327_v14  ;;  %v15078_v48 = vsub.f32 %v10319_v10, %v10331_v19  ;;  %v15080_v43 = vpack.c.bf16 %v10339_v2, %v10335_v1 }
 0xbba   : > { %v15082_v33 = vpack.c.bf16 %v10329_v47, %v10325_v44  ;;  %v10410_v41 = vsub.f32 %v10318_v57, %v10325_v44  ;;  %v10422_v35 = vsub.f32 %v10320_v59, %v10329_v47  ;;  %v15084_v9 = vpack.c.bf16 %v10337_v26, %v10333_v45 }
 0xbbb   : > { %v15086_v24 = vsub.f32 %v10322_v61, %v10333_v45  ;;  %v10446_v37 = vsub.f32 %v10324_v13, %v10337_v26  ;;  %v15088_v36 = vsub.f32 %v10321_v60, %v10335_v1  ;;  %v15090_v52 = vsub.f32 %v10323_v56, %v10339_v2 }
 0xbbc   : > { %11728 = vmatprep.subr.bf16.mxu1 %v15082_v33  ;;  %v10411_v11 = vand.u32 4294901760, %v10410_v41  ;;  %v10423_v54 = vand.u32 4294901760, %v10422_v35  ;;  %v10417_v40 = vand.u32 4294901760, %v15076_v49  ;;  %v10429_v39 = vand.u32 4294901760, %v15078_v48 }
 0xbbd   : > { %11730 = vmatpush1.bf16.msra.mxu1 %v15074_v12  ;;  %v10435_v38 = vand.u32 4294901760, %v15086_v24  ;;  %v10447_v5 = vand.u32 4294901760, %v10446_v37  ;;  %v10441_v18 = vand.u32 4294901760, %v15088_v36  ;;  %v10453_v0 = vand.u32 4294901760, %v15090_v52 }
 0xbbe   : > { %11732 = vmatprep.subr.bf16.mxu1 %v15084_v9  ;;  %v10412_v62 = vsub.f32 %v10410_v41, %v10411_v11  ;;  %v10424_v23 = vsub.f32 %v10422_v35, %v10423_v54  ;;  %v10418_v29 = vsub.f32 %v15076_v49, %v10417_v40  ;;  %v10430_v30 = vsub.f32 %v15078_v48, %v10429_v39 }
 0xbbf   : > { %v10436_v20 = vsub.f32 %v15086_v24, %v10435_v38  ;;  %v10448_v21 = vsub.f32 %v10446_v37, %v10447_v5  ;;  %v10442_v27 = vsub.f32 %v15088_v36, %v10441_v18  ;;  %v10454_v6 = vsub.f32 %v15090_v52, %v10453_v0 }
 0xbc0   : > { %v10413_v42 = vand.u32 4294901760, %v10412_v62  ;;  %v10425_v22 = vand.u32 4294901760, %v10424_v23  ;;  %v10419_v17 = vand.u32 4294901760, %v10418_v29  ;;  %v10431_v8 = vand.u32 4294901760, %v10430_v30 }
 0xbc1   : > { %11734 = vmatpush1.bf16.msra.mxu1 %v15080_v43  ;;  %v10437_v3 = vand.u32 4294901760, %v10436_v20  ;;  %v10449_v7 = vand.u32 4294901760, %v10448_v21  ;;  %v10443_v60 = vand.u32 4294901760, %v10442_v27  ;;  %v10455_v56 = vand.u32 4294901760, %v10454_v6 }
 0xbc2   : > { %v11735_v46 = vpack.c.bf16 %v10425_v22, %v10413_v42  ;;  %v11737_v10 = vpack.c.bf16 %v10431_v8, %v10419_v17  ;;  %v11743_v61 = vpack.c.bf16 %v10422_v35, %v10410_v41  ;;  %v11745_v13 = vpack.c.bf16 %v15078_v48, %v15076_v49  ;;  %v10892_v48 = vpop.permute.xlu0 %10891 }
 0xbc3   : > { %v11739_v57 = vpack.c.bf16 %v10449_v7, %v10437_v3  ;;  %v11741_v59 = vpack.c.bf16 %v10455_v56, %v10443_v60  ;;  %v11747_v14 = vpack.c.bf16 %v10446_v37, %v15086_v24  ;;  %v11759_v19 = vpack.c.bf16 %v10423_v54, %v10411_v11 }
 0xbc4   : > { %10403 = vmatmul.mubr.f32.vlgmr.msra.gmra.mrb[44].mxu1 %v14350_v34  ;;  %11736 = vmatprep.subr.bf16.mxu1 %v11735_v46  ;;  %v11749_v34 = vpack.c.bf16 %v15090_v52, %v15088_v36  ;;  %v11761_v1 = vpack.c.bf16 %v10429_v39, %v10417_v40  ;;  %v11763_v2 = vpack.c.bf16 %v10447_v5, %v10435_v38 }
 0xbc5   : > { %11738 = vmatpush1.bf16.msra.mxu1 %v11737_v10  ;;  %10513 = vmatprep.mubr.f32.mxu1 %v12526_v32  ;;  %v11765_v44 = vpack.c.bf16 %v10453_v0, %v10441_v18 }
 0xbc6   : > { %11740 = vmatprep.subr.bf16.mxu1 %v11739_v57  ;;  %v10912_v41 = vpop.permute.xlu0 %10911 }
 0xbc9   : > { %11742 = vmatpush1.bf16.msra.mxu1 %v11741_v59 }
 0xbca   : > { %11744 = vmatprep.subr.bf16.mxu1 %v11743_v61 }
 0xbcc   : > { %11091 = vmatmul.mubr.msk.f32.vlgmr.msra.gmra.mrb[44].mxu1 %vm444_vm0, %v15266_v58 }
 0xbcd   : > { %11746 = vmatpush1.bf16.msra.mxu1 %v11745_v13  ;;  %10601 = vmatprep.mubr.f32.mxu1 %v12526_v32 }
 0xbce   : > { %11748 = vmatprep.subr.bf16.mxu1 %v11747_v14 }
 0xbd1   : > { %11750 = vmatpush1.bf16.msra.mxu1 %v11749_v34 }
 0xbd2   : > { %11752 = vmatprep.subr.bf16.mxu1 %v15082_v33 }
 0xbd4   : > { %10604 = vmatmul.mubr.f32.vlgmr.msra.gmra.mrb[44].mxu1 %v14285_v51  ;;  %v10888_v51 = vpop.permute.xlu1 %10887 }
 0xbd5   : > { %11754 = vmatpush1.bf16.msra.mxu1 %v15074_v12  ;;  %10682 = vmatprep.mubr.f32.mxu1 %v12526_v32 }
 0xbd6   : > { %11756 = vmatprep.subr.bf16.mxu1 %v15084_v9 }
 0xbd8   : > { %v10896_v49 = vpop.permute.xlu1 %10895 }
 0xbd9   : > { %11758 = vmatpush1.bf16.msra.mxu1 %v15080_v43 }
 0xbda   : > { %11760 = vmatprep.subr.bf16.mxu1 %v11759_v19 }
 0xbdc   : > { %10686 = vmatmul.mubr.f32.vlgmr.msra.gmra.mrb[44].mxu1 %v14311_v53 }
 0xbdd   : > { %11762 = vmatpush1.bf16.msra.mxu1 %v11761_v1  ;;  %10780 = vmatprep.mubr.f32.mxu1 %v12526_v32 }
 0xbde   : > { %11764 = vmatprep.subr.bf16.mxu1 %v11763_v2 }
 0xbe1   : > { %11766 = vmatpush1.bf16.msra.mxu1 %v11765_v44 }
 0xbe2   : > { %11768 = vmatprep.subr.bf16.mxu1 %v15082_v33 }
 0xbe4   : > { %11092 = vmatmul.mubr.msk.f32.vlgmr.msra.gmra.mrb[44].mxu1 %vm444_vm0, %v15266_v58 }
 0xbe5   : > { %11770 = vmatpush1.bf16.msra.mxu1 %v15074_v12  ;;  %10860 = vmatprep.mubr.f32.mxu1 %v12526_v32  ;;  %v10900_v12 = vpop.permute.xlu1 %10899 }
 0xbe6   : > { %11772 = vmatprep.subr.bf16.mxu1 %v15084_v9 }
 0xbe9   : > { %11774 = vmatpush1.bf16.msra.mxu1 %v15080_v43  ;;  %v10916_v32 = vpop.permute.xlu1 %10915 }
 0xbec   : > { %11093 = vmatmul.mubr.msk.f32.vlgmr.msra.gmra.mrb[44].mxu1 %vm444_vm0, %v15266_v58 }
 0xcbf   : > { %v10863_v53 = vpop.f32.mrb[44].mxu1 }
 0xcc0   : > { %v11841_v47 = vadd.f32 1e-05, %v10863_v53  ;;  %v10865_v45 = vpop.f32.mrb[45].mxu1 }
 0xcc1   : > { %v11842_v26 = vadd.f32 1e-05, %v10865_v45 }
 0xcc2   : > { %12402 = vrsqrt.f32 %v11841_v47 }
 0xcc3   : > { %12404 = vrsqrt.f32 %v11842_v26 }
 0xccc   : > { %v12403_v33 = vpop.eup %12402 }
 0xccd   : > { %v12405_v35 = vpop.eup %12404  ;;  %v10873_v43 = vrot.slane %v12403_v33, %v14415_v50 }
 0xcce   : > { %v10877_v58 = vrot.slane %v12405_v35, %v14415_v50 }
 0xccf   : > { %v10878_v9 = vmul.f32 %v10873_v43, %v15035_v28  ;;  %v10882_v24 = vmul.f32 %v10873_v43, %v15041_v15  ;;  %v10884_v37 = vmul.f32 %v10873_v43, %v15044_v4  ;;  %v10880_v36 = vmul.f32 %v10873_v43, %v15038_v25 }
 0xcd0   : > { %v10879_v52 = vmul.f32 %v10877_v58, %v15047_v31  ;;  %v10883_v11 = vmul.f32 %v10877_v58, %v15053_v16  ;;  %v10885_v54 = vmul.f32 %v10877_v58, %v15056_v55  ;;  %v10881_v50 = vmul.f32 %v10877_v58, %v15050_v63  ;;  %v10920_v31 = vpop.permute.xlu1 %10919  ;;  %v10924_v16 = vpop.permute.xlu0 %10923 }
 0xcd1   : > { %v10902_v28 = vmul.f32 %v10888_v51, %v10878_v9  ;;  %v10906_v15 = vmul.f32 %v10896_v49, %v10882_v24  ;;  %v10908_v40 = vmul.f32 %v10900_v12, %v10884_v37  ;;  %v10904_v4 = vmul.f32 %v10892_v48, %v10880_v36 }
 0xcd2   : > { %v10903_v39 = vmul.f32 %v10888_v51, %v10879_v52  ;;  %v10907_v25 = vmul.f32 %v10896_v49, %v10883_v11  ;;  %v10909_v38 = vmul.f32 %v10900_v12, %v10885_v54  ;;  %v10905_v5 = vmul.f32 %v10892_v48, %v10881_v50 }
 0xcd3   : > { %v10928_v63 = vadd.f32 %v10916_v32, %v10904_v4  ;;  %v10926_v55 = vadd.f32 %v10912_v41, %v10902_v28  ;;  %v10930_v18 = vadd.f32 %v10920_v31, %v10906_v15  ;;  %v10932_v0 = vadd.f32 %v10924_v16, %v10908_v40 }
 0xcd4   : > { %v10929_v62 = vadd.f32 %v10916_v32, %v10905_v5  ;;  %v10927_v23 = vadd.f32 %v10912_v41, %v10903_v39  ;;  %v10931_v29 = vadd.f32 %v10920_v31, %v10907_v25  ;;  %v10933_v30 = vadd.f32 %v10924_v16, %v10909_v38 }
 0xcd5   : > { %10936 = vst [vmem:[%s15141_s11 + $0x10] sm:$0xff] %v10928_v63  ;;  %10934 = vst [vmem:[%s15141_s11] sm:$0xff] %v10926_v55 }
 0xcd6   : > { %10938 = vst [vmem:[%s15141_s11 + $0x20] sm:$0xff] %v10930_v18  ;;  %10940 = vst [vmem:[%s15141_s11 + $0x30] sm:$0xff] %v10932_v0 }
 0xcd7   : > { %10937 = vst [vmem:[%s15141_s11 + $0x18] sm:$0xff] %v10929_v62  ;;  %10935 = vst [vmem:[%s15141_s11 + $0x8] sm:$0xff] %v10927_v23 }
 0xcd8   : > { %10939 = vst [vmem:[%s15141_s11 + $0x28] sm:$0xff] %v10931_v29  ;;  %10941 = vst [vmem:[%s15141_s11 + $0x38] sm:$0xff] %v10933_v30 }
 0xcd9   : > { %12467 = shalt.err (!%p12464_p12)
}
 0xcda   : > { %s12468_s10 = scalar_lea.hbm %s15154_s28, 1024  ;;  %s12472_s14 = scalar_lea.hbm %s15210_s5, 4096 }
 0xcdb   : > { %p12469_p13 = scmp.ne.s32.totalorder %s15154_s28, %s12468_s10  ;;  %p12473_p5 = scmp.lt.u32.totalorder %s15154_s28, %s15210_s5 }
 0xcdc   : > { %p12474_p9 = scmp.lt.u32.totalorder %s12472_s14, %s12468_s10  ;;  %p12476_p6 = scmp.lt.u32.totalorder %s12468_s10, %s15154_s28 }
 0xcdd   : > { %p12470_p1 = pnand %p12469_p13, %p15267_p0 }
 0xcde   : > { %p12475_p10 = por %p12474_p9, %p12473_p5 }
 0xcdf   : > { %p12471_p2 = pneg %p12470_p1 }
 0xce0   : > { %p12477_p3 = por %p12476_p6, %p12475_p10 }
 0xce2   : > { %p12478_p4 = pnand %p12477_p3, %p12471_p2 }
 0xce4   : > { %12481 = shalt.err (!%p12478_p4)
}
 0xce5   : > { %s12540_s16 = smov 256   ;;  %s12541_s22 = smov 1024  }
 0xce6   : > { %s12542_s17 = smov 16  }
 0xce7   : > { %12305 = dma.vmem_to_hbm [thread:$0]  (%p15267_p0), %s15149_s13, 1024, %s15154_s28, %s10943_s23, %s12540_s16, %s12541_s22, %s12542_s17  }
 0xce8 PF: > { %p12311_p7 = scmp.ge.s32.totalorder %s12520_s21, 2  ;;  %s10971_s26 = sand.u32 1, %s12508_s18  }
 0xce9   : > { %p15268_p8 = scmp.ne.s32.totalorder %s15241_s6, 0  ;;  %s10972_s29 = scalar_lea.sflag [#allocation4], %s10971_s26 }
 0xceb   : > { %p12308_p11 = pnand %p12311_p7, %p15268_p8 }
 0xced   : > { %12503 = dma.done.wait (!%p12308_p11), %s10972_s29, 1024  }
 0xcee   : > { %12505 = vsyncadd (!%p12308_p11), %s10972_s29, 4294966272  ;;  %p18_p12 = scmp.ge.s32.totalorder %s12598_s24, 6   ;;  %s15269_s18 = smov %s12512_s19 }
 0xcef   : > { %s15270_s19 = smov %s12516_s20  ;;  %s15271_s20 = smov %s12610_s27 }
 0xcf0   : > { %s15272_s21 = smov %s12598_s24  ;;  %20 = sbr.rel (!%p18_p12) target bundleno = 5 (0x5), region = 147 }
 0xcf7   :  { %10977 = vsyncpa [#allocation3], 1 }
 0xcf8   :  { %10979 = vsyncpa [#allocation3 + $0x1], 1 }
 0xcf9   :  { %10980 = vsyncpa [#allocation4], 1 }
 0xcfa   :  { %10982 = vsyncpa [#allocation4 + $0x1], 1 }

</bundles_post_ra>
